<compile_context>
chip_gen: v5e
topology: v5e:2x2
jax: 0.10.0
libtpu: 0.0.40
codegen_flags: <defaults>
</compile_context>

<pallas_src>
import jax
import jax.numpy as jnp
from jax import lax
from jax.experimental import pallas as pl
from jax.experimental.pallas import tpu as pltpu

EMB_DIM = 1024                    # embedding_features_dim
STRUCT_DIM = 300                  # structure_features_dim
SELECT_DIM = EMB_DIM + STRUCT_DIM # 1324
HID_DIM = 512                     # select_model_hidden_dim
NUM_HEADS = 2
D_KV = 32
KV_DIM = 2 * NUM_HEADS * D_KV     # 128 (K|V, lane-dense)
Q_DIM = NUM_HEADS * D_KV          # 64
LN_EPS = 1e-3                     # parse_nk.LayerNormalization default eps
NEG = -1e30                       # finite "minus infinity" (avoids inf-inf NaN)

_CPARAMS = pltpu.CompilerParams(
    dimension_semantics=("parallel",),          # megacore-shard the token tiles
    vmem_limit_bytes=40 * 1024 * 1024,
)


def _round_up(x, m):
    return ((x + m - 1) // m) * m


def _layer_norm(x, gamma, beta):
    # parse_nk.LayerNormalization: (x - mean) / (std_unbiased + eps) * a_2 + b_2
    d = x.shape[-1]
    mu = jnp.mean(x, axis=-1, keepdims=True)
    diff = x - mu
    var = jnp.sum(diff * diff, axis=-1, keepdims=True) * (1.0 / (d - 1))
    sigma = jnp.sqrt(var)
    inv = 1.0 / (sigma + LN_EPS)                 # exact per-row reciprocal
    return diff * inv * gamma + beta


# ----------------------------------------------------------------------------
# Kernel A: linear_pre (Linear -> LN -> ReLU -> Linear) + fused K|V projection
# ----------------------------------------------------------------------------
def _pre_kv_kernel(x_ref, w1_ref, vecs_h_ref, w2_ref, b2_ref, wkv_ref,
                   res_ref, kv_ref):
    x = x_ref[...]                                                    # [TM, Dpad] bf16
    vh = vecs_h_ref[...]                                              # [3, 512] f32
    b1, g1, be1 = vh[0:1], vh[1:2], vh[2:3]
    h = jnp.dot(x, w1_ref[...], preferred_element_type=jnp.float32) + b1
    h = jnp.maximum(_layer_norm(h, g1, be1), 0.0)
    res = jnp.dot(h.astype(jnp.bfloat16), w2_ref[...],
                  preferred_element_type=jnp.float32) + b2_ref[...]   # [TM, 1024] f32
    res_bf = res.astype(jnp.bfloat16)
    res_ref[...] = res_bf                                             # bf16 intermediate
    kv_ref[...] = jnp.dot(res_bf, wkv_ref[...],
                          preferred_element_type=jnp.float32).astype(jnp.bfloat16)


# ----------------------------------------------------------------------------
# Kernel B: attention (flash-style KV chunks) + residual + LN + linear_label
#           + mask + Gumbel hard straight-through
# ----------------------------------------------------------------------------
def _attn_label_gumbel_kernel(res_ref, kv_ref, kbias_ref, wq_ref, wo_ref,
                              vecs_e_ref, w3_ref, vecs_h_ref, w4_ref,
                              vecs_p_ref, mask_ref, o_ref):
    res_bf = res_ref[...]                                             # [TM, 1024] bf16
    tm = res_bf.shape[0]

    # q = res @ Wq (scale 1/sqrt(d_kv) folded into Wq at prep time)
    q = jnp.dot(res_bf, wq_ref[...], preferred_element_type=jnp.float32)  # [TM, 64]
    q_bf = q.astype(jnp.bfloat16)

    num_chunks = kbias_ref.shape[0]
    kv_chunk = kbias_ref.shape[1]

    def chunk_body(c, carry):
        m0, l0, a0, m1, l1, a1 = carry
        start = pl.multiple_of(c * kv_chunk, kv_chunk)
        kv = kv_ref[pl.ds(start, kv_chunk), :]                        # [C, 128] bf16
        kb = kbias_ref[pl.ds(c, 1), :]                                # [1, C] f32
        outs = []
        for h, (mh, lh, ah) in enumerate(((m0, l0, a0), (m1, l1, a1))):
            qh = q_bf[:, h * D_KV:(h + 1) * D_KV]                     # [TM, 32]
            kh = kv[:, h * D_KV:(h + 1) * D_KV]                       # [C, 32]
            vh = kv[:, Q_DIM + h * D_KV:Q_DIM + (h + 1) * D_KV]       # [C, 32]
            s = lax.dot_general(qh, kh, (((1,), (1,)), ((), ())),
                                preferred_element_type=jnp.float32) + kb  # [TM, C]
            m_new = jnp.maximum(mh, jnp.max(s, axis=-1, keepdims=True))
            alpha = jnp.exp(mh - m_new)
            p = jnp.exp(s - m_new)
            l_new = alpha * lh + jnp.sum(p, axis=-1, keepdims=True)
            a_new = alpha * ah + jnp.dot(p.astype(jnp.bfloat16), vh,
                                         preferred_element_type=jnp.float32)
            outs.extend([m_new, l_new, a_new])
        return tuple(outs)

    init = []
    for _ in range(NUM_HEADS):
        init.extend([jnp.full((tm, 1), NEG, jnp.float32),
                     jnp.zeros((tm, 1), jnp.float32),
                     jnp.zeros((tm, D_KV), jnp.float32)])
    m0, l0, a0, m1, l1, a1 = lax.fori_loop(
        0, num_chunks, chunk_body, tuple(init), unroll=(num_chunks <= 4))

    # Concatenate heads once and do a single 64-deep output projection.
    heads = jnp.concatenate([a0 * (1.0 / l0), a1 * (1.0 / l1)], axis=-1)   # [TM, 64]
    attn_out = jnp.dot(heads.astype(jnp.bfloat16), wo_ref[...],
                       preferred_element_type=jnp.float32)                  # [TM, 1024]

    ve = vecs_e_ref[...]                                              # [2, 1024]: g2, be2
    res2 = _layer_norm(attn_out + res_bf.astype(jnp.float32), ve[0:1], ve[1:2])

    # linear_label: Linear -> LN -> ReLU -> Linear
    vh3 = vecs_h_ref[...]                                             # [3, 512]: b3, g3, be3
    h1 = jnp.dot(res2.astype(jnp.bfloat16), w3_ref[...],
                 preferred_element_type=jnp.float32) + vh3[0:1]
    h1 = jnp.maximum(_layer_norm(h1, vh3[1:2], vh3[2:3]), 0.0)
    vp = vecs_p_ref[...]                                              # [2, Ppad]: b4, gumbel
    logits = jnp.dot(h1.astype(jnp.bfloat16), w4_ref[...],
                     preferred_element_type=jnp.float32) + vp[0:1]    # [TM, Ppad]

    # mask + Gumbel noise (temperature = 1) + Mask_Softmax (plus = 1.0), stable:
    #   exp(y)/(sum exp(y) + 1) == exp(y-m)/(sum exp(y-m) + exp(-m))
    y = logits + mask_ref[...] + vp[1:2]
    m = jnp.max(y, axis=-1, keepdims=True)
    e = jnp.exp(y - m)
    denom = jnp.sum(e, axis=-1, keepdims=True) + jnp.exp(jnp.minimum(-m, 80.0))
    y_soft = e * (1.0 / denom)

    # hard straight-through one-hot (first argmax, like torch.max tie-break)
    ms = jnp.max(y_soft, axis=-1, keepdims=True)
    cols = lax.broadcasted_iota(jnp.int32, y.shape, 1)
    first = jnp.min(jnp.where(y_soft == ms, cols, y.shape[-1]),
                    axis=-1, keepdims=True)
    y_hard = jnp.where(cols == first, 1.0, 0.0)
    o_ref[...] = (y_hard - y_soft) + y_soft


# ----------------------------------------------------------------------------
# Parameter init (module-faithful shapes) + padded/fused/bf16 prep
# ----------------------------------------------------------------------------
def init_params(key, n_pinyin):
    ks = jax.random.split(key, 8)
    s = 0.02
    return dict(
        pre_w1=jax.random.normal(ks[0], (SELECT_DIM, HID_DIM), jnp.float32) * s,
        pre_b1=jnp.zeros((1, HID_DIM), jnp.float32),
        pre_g=jnp.ones((1, HID_DIM), jnp.float32),
        pre_be=jnp.zeros((1, HID_DIM), jnp.float32),
        pre_w2=jax.random.normal(ks[1], (HID_DIM, EMB_DIM), jnp.float32) * s,
        pre_b2=jnp.zeros((1, EMB_DIM), jnp.float32),
        attn_wq=jax.random.normal(ks[2], (EMB_DIM, Q_DIM), jnp.float32) * s,
        attn_wk=jax.random.normal(ks[3], (EMB_DIM, Q_DIM), jnp.float32) * s,
        attn_wv=jax.random.normal(ks[4], (EMB_DIM, Q_DIM), jnp.float32) * s,
        attn_wo=jax.random.normal(ks[5], (Q_DIM, EMB_DIM), jnp.float32) * s,
        attn_g=jnp.ones((1, EMB_DIM), jnp.float32),
        attn_be=jnp.zeros((1, EMB_DIM), jnp.float32),
        lab_w1=jax.random.normal(ks[6], (EMB_DIM, HID_DIM), jnp.float32) * s,
        lab_b1=jnp.zeros((1, HID_DIM), jnp.float32),
        lab_g=jnp.ones((1, HID_DIM), jnp.float32),
        lab_be=jnp.zeros((1, HID_DIM), jnp.float32),
        lab_w2=jax.random.normal(ks[7], (HID_DIM, n_pinyin), jnp.float32) * s,
        lab_b2=jnp.zeros((1, n_pinyin), jnp.float32),
    )


def _prepare_params(params, d_pad, p_pad):
    f = params['pre_w1'].shape[0]
    p = params['lab_w2'].shape[1]
    scale = 1.0 / float(D_KV) ** 0.5
    return dict(
        w1=jnp.pad(params['pre_w1'], ((0, d_pad - f), (0, 0))).astype(jnp.bfloat16),
        vecs_a_h=jnp.concatenate(
            [params['pre_b1'], params['pre_g'], params['pre_be']], axis=0),   # (3, 512)
        w2=params['pre_w2'].astype(jnp.bfloat16),
        b2=params['pre_b2'],
        # K|V fused projection (Q dropped from the intermediate; 128 lanes, no pad)
        wkv=jnp.concatenate([params['attn_wk'], params['attn_wv']],
                            axis=1).astype(jnp.bfloat16),                     # (1024, 128)
        # Q projection with 1/sqrt(d_kv) folded in (recomputed inside Kernel B)
        wq=(params['attn_wq'] * scale).astype(jnp.bfloat16),                  # (1024, 64)
        wo=params['attn_wo'].astype(jnp.bfloat16),                            # (64, 1024)
        vecs_b_e=jnp.concatenate([params['attn_g'], params['attn_be']], axis=0),  # (2,1024)
        w3=params['lab_w1'].astype(jnp.bfloat16),
        vecs_b_h=jnp.concatenate(
            [params['lab_b1'], params['lab_g'], params['lab_be']], axis=0),   # (3, 512)
        w4=jnp.pad(params['lab_w2'], ((0, 0), (0, p_pad - p))).astype(jnp.bfloat16),
        b4=jnp.pad(params['lab_b2'], ((0, 0), (0, p_pad - p))),
    )


# ----------------------------------------------------------------------------
# Forward wrapper
# ----------------------------------------------------------------------------
def poly_phoneme_classifier_forward(params, features, mask_padded, gumbel_key):
    b, t, f = features.shape
    p = mask_padded.shape[-1]
    n = b * t

    tm = min(256, _round_up(n, 16))          # token tile (bf16 sublane-packed)
    n_pad = _round_up(n, tm)
    kv_chunk = min(512, n_pad)               # flash-style KV chunk size
    n_pad = _round_up(n_pad, kv_chunk)
    num_chunks = n_pad // kv_chunk
    d_pad = _round_up(f, 128)                # 1324 -> 1408
    p_pad = _round_up(p, 128)
    grid = (n_pad // tm,)

    w = _prepare_params(params, d_pad, p_pad)

    x = features.reshape(n, f).astype(jnp.float32)
    x = jnp.pad(x, ((0, n_pad - n), (0, d_pad - f))).astype(jnp.bfloat16)
    mask2d = jnp.pad(mask_padded.reshape(n, p).astype(jnp.float32),
                     ((0, n_pad - n), (0, p_pad - p)), constant_values=NEG)
    # additive key-validity bias, reshaped per KV chunk
    kbias = jnp.where(jnp.arange(n_pad) < n, 0.0, NEG).astype(jnp.float32)
    kbias = kbias.reshape(num_chunks, kv_chunk)

    # Gumbel noise: sampled over the LAST dim only (as in the torch code),
    # broadcast over all (B*T) rows.  Padded lanes get 0 (masked out anyway).
    eps = 1e-20
    u = jax.random.uniform(gumbel_key, (1, p), jnp.float32)
    gumbel = -jnp.log(-jnp.log(u + eps) + eps)
    gumbel = jnp.pad(gumbel, ((0, 0), (0, p_pad - p)))
    vecs_p = jnp.concatenate([w['b4'], gumbel], axis=0)          # (2, p_pad)

    resident = lambda shape: pl.BlockSpec(shape, lambda i: (0, 0))
    tiled = lambda width: pl.BlockSpec((tm, width), lambda i: (i, 0))

    # ---- Kernel A: linear_pre + K|V projection ------------------------------
    res_bf16, kv_bf16 = pl.pallas_call(
        _pre_kv_kernel,
        grid=grid,
        in_specs=[
            tiled(d_pad),                       # x tile
            resident((d_pad, HID_DIM)),         # w1
            resident((3, HID_DIM)),             # [b1; g1; be1]
            resident((HID_DIM, EMB_DIM)),       # w2
            resident((1, EMB_DIM)),             # b2
            resident((EMB_DIM, KV_DIM)),        # wkv (K|V fused)
        ],
        out_specs=[tiled(EMB_DIM), tiled(KV_DIM)],
        out_shape=[jax.ShapeDtypeStruct((n_pad, EMB_DIM), jnp.bfloat16),
                   jax.ShapeDtypeStruct((n_pad, KV_DIM), jnp.bfloat16)],
        compiler_params=_CPARAMS,
    )(x, w['w1'], w['vecs_a_h'], w['w2'], w['b2'], w['wkv'])

    # ---- Kernel B: attention + linear_label + mask + Gumbel hard ------------
    pred_pad = pl.pallas_call(
        _attn_label_gumbel_kernel,
        grid=grid,
        in_specs=[
            tiled(EMB_DIM),                     # res tile (residual, bf16)
            resident((n_pad, KV_DIM)),          # kv, full sequence, resident
            resident((num_chunks, kv_chunk)),   # key-validity bias per chunk
            resident((EMB_DIM, Q_DIM)),         # wq (scale folded)
            resident((Q_DIM, EMB_DIM)),         # wo
            resident((2, EMB_DIM)),             # [g2; be2]
            resident((EMB_DIM, HID_DIM)),       # w3
            resident((3, HID_DIM)),             # [b3; g3; be3]
            resident((HID_DIM, p_pad)),         # w4
            resident((2, p_pad)),               # [b4; gumbel]
            tiled(p_pad),                       # mask tile
        ],
        out_specs=tiled(p_pad),
        out_shape=jax.ShapeDtypeStruct((n_pad, p_pad), jnp.float32),
        compiler_params=_CPARAMS,
    )(res_bf16, kv_bf16, kbias, w['wq'], w['wo'], w['vecs_b_e'],
      w['w3'], w['vecs_b_h'], w['w4'], vecs_p, mask2d)

    return pred_pad[:n, :p].reshape(b, t, p)


if __name__ == "__main__":
    B, T, P = 2, 8, 256   # small test: batch=2, seq=8, n_pinyin_symbols=256

    root = jax.random.PRNGKey(0)
    k_param, k_feat, k_mask, k_gumbel = jax.random.split(root, 4)

    params = init_params(k_param, P)
    features = jax.random.normal(k_feat, (B, T, SELECT_DIM), jnp.float32)
    # mask_padded: 0 where a pinyin candidate is allowed, very negative otherwise
    allow = jax.random.bernoulli(k_mask, 0.05, (B, T, P))
    mask_padded = jnp.where(allow, 0.0, -1e9).astype(jnp.float32)

    out = poly_phoneme_classifier_forward(params, features, mask_padded, k_gumbel)
    out = jax.block_until_ready(out)

    assert out.shape == (B, T, P)
    assert bool(jnp.all(jnp.isfinite(out)))
    # straight-through hard output: each (b, t) row sums to ~1 (single one-hot)
    assert bool(jnp.allclose(jnp.sum(out, axis=-1), 1.0, atol=1e-4))
    print("KERNEL_OK")
</pallas_src>

<mosaic_0001>
module attributes {stable_mosaic.version = 11 : i64} {
  func.func @_pre_kv_kernel(%arg0: i32, %arg1: memref<16x1408xbf16, #tpu.memory_space<vmem>>, %arg2: memref<1408x512xbf16, #tpu.memory_space<vmem>>, %arg3: memref<3x512xf32, #tpu.memory_space<vmem>>, %arg4: memref<512x1024xbf16, #tpu.memory_space<vmem>>, %arg5: memref<1x1024xf32, #tpu.memory_space<vmem>>, %arg6: memref<1024x128xbf16, #tpu.memory_space<vmem>>, %arg7: memref<16x1024xbf16, #tpu.memory_space<vmem>>, %arg8: memref<16x128xbf16, #tpu.memory_space<vmem>>) attributes {dimension_semantics = [#tpu.dimension_semantics<parallel>], iteration_bounds = array<i64: 1>, scalar_prefetch = 0 : i64, scratch_operands = 0 : i64, tpu.core_type = #tpu.core_type<tc>, window_params = [{transform_indices = @transform_0, window_bounds = array<i64: 16, 1408>}, {pipeline_mode = #tpu.pipeline_mode<synchronous>, transform_indices = @transform_1, window_bounds = array<i64: 1408, 512>}, {pipeline_mode = #tpu.pipeline_mode<synchronous>, transform_indices = @transform_2, window_bounds = array<i64: 3, 512>}, {pipeline_mode = #tpu.pipeline_mode<synchronous>, transform_indices = @transform_3, window_bounds = array<i64: 512, 1024>}, {pipeline_mode = #tpu.pipeline_mode<synchronous>, transform_indices = @transform_4, window_bounds = array<i64: 1, 1024>}, {pipeline_mode = #tpu.pipeline_mode<synchronous>, transform_indices = @transform_5, window_bounds = array<i64: 1024, 128>}, {transform_indices = @transform_6, window_bounds = array<i64: 16, 1024>}, {transform_indices = @transform_7, window_bounds = array<i64: 16, 128>}]} {
    %c0 = arith.constant 0 : index
    %c0_0 = arith.constant 0 : index
    %0 = vector.load %arg1[%c0, %c0_0] : memref<16x1408xbf16, #tpu.memory_space<vmem>>, vector<16x1408xbf16>
    %c0_1 = arith.constant 0 : index
    %c0_2 = arith.constant 0 : index
    %1 = vector.load %arg3[%c0_1, %c0_2] : memref<3x512xf32, #tpu.memory_space<vmem>>, vector<3x512xf32>
    %2 = vector.extract_strided_slice %1 {offsets = [0, 0], sizes = [1, 512], strides = [1, 1]} : vector<3x512xf32> to vector<1x512xf32>
    %3 = vector.extract_strided_slice %1 {offsets = [1, 0], sizes = [1, 512], strides = [1, 1]} : vector<3x512xf32> to vector<1x512xf32>
    %4 = vector.extract_strided_slice %1 {offsets = [2, 0], sizes = [1, 512], strides = [1, 1]} : vector<3x512xf32> to vector<1x512xf32>
    %c0_3 = arith.constant 0 : index
    %c0_4 = arith.constant 0 : index
    %5 = vector.load %arg2[%c0_3, %c0_4] : memref<1408x512xbf16, #tpu.memory_space<vmem>>, vector<1408x512xbf16>
    %cst = arith.constant dense<0.000000e+00> : vector<16x512xf32>
    %6 = tpu.matmul %0, %5, %cst {dimension_numbers = #tpu.dot_dimension_numbers<[1], [0], [0], [1], [0, 0, 1, 1], [], []>} : vector<16x1408xbf16>, vector<1408x512xbf16>, vector<16x512xf32> -> vector<16x512xf32>
    %7 = vector.broadcast %2 : vector<1x512xf32> to vector<16x512xf32>
    %8 = arith.addf %6, %7 : vector<16x512xf32>
    %cst_5 = arith.constant dense<0.000000e+00> : vector<16xf32>
    %9 = vector.multi_reduction <add>, %8, %cst_5 [1] : vector<16x512xf32> to vector<16xf32>
    %10 = vector.shape_cast %9 : vector<16xf32> to vector<16x1xf32>
    %cst_6 = arith.constant 5.120000e+02 : f32
    %11 = vector.broadcast %cst_6 : f32 to vector<16x1xf32>
    %12 = arith.divf %10, %11 : vector<16x1xf32>
    %13 = vector.broadcast %12 : vector<16x1xf32> to vector<16x512xf32>
    %14 = arith.subf %8, %13 : vector<16x512xf32>
    %15 = arith.mulf %14, %14 : vector<16x512xf32>
    %cst_7 = arith.constant dense<0.000000e+00> : vector<16xf32>
    %16 = vector.multi_reduction <add>, %15, %cst_7 [1] : vector<16x512xf32> to vector<16xf32>
    %17 = vector.shape_cast %16 : vector<16xf32> to vector<16x1xf32>
    %cst_8 = arith.constant 0.00195694715 : f32
    %18 = vector.broadcast %cst_8 : f32 to vector<16x1xf32>
    %19 = arith.mulf %17, %18 : vector<16x1xf32>
    %20 = math.sqrt %19 : vector<16x1xf32>
    %cst_9 = arith.constant 1.000000e-03 : f32
    %21 = vector.broadcast %cst_9 : f32 to vector<16x1xf32>
    %22 = arith.addf %20, %21 : vector<16x1xf32>
    %cst_10 = arith.constant 1.000000e+00 : f32
    %23 = vector.broadcast %cst_10 : f32 to vector<16x1xf32>
    %24 = arith.divf %23, %22 : vector<16x1xf32>
    %25 = vector.broadcast %24 : vector<16x1xf32> to vector<16x512xf32>
    %26 = arith.mulf %14, %25 : vector<16x512xf32>
    %27 = vector.broadcast %3 : vector<1x512xf32> to vector<16x512xf32>
    %28 = arith.mulf %26, %27 : vector<16x512xf32>
    %29 = vector.broadcast %4 : vector<1x512xf32> to vector<16x512xf32>
    %30 = arith.addf %28, %29 : vector<16x512xf32>
    %cst_11 = arith.constant 0.000000e+00 : f32
    %31 = vector.broadcast %cst_11 : f32 to vector<16x512xf32>
    %32 = arith.maximumf %30, %31 : vector<16x512xf32>
    %33 = arith.truncf %32 : vector<16x512xf32> to vector<16x512xbf16>
    %c0_12 = arith.constant 0 : index
    %c0_13 = arith.constant 0 : index
    %34 = vector.load %arg4[%c0_12, %c0_13] : memref<512x1024xbf16, #tpu.memory_space<vmem>>, vector<512x1024xbf16>
    %cst_14 = arith.constant dense<0.000000e+00> : vector<16x1024xf32>
    %35 = tpu.matmul %33, %34, %cst_14 {dimension_numbers = #tpu.dot_dimension_numbers<[1], [0], [0], [1], [0, 0, 1, 1], [], []>} : vector<16x512xbf16>, vector<512x1024xbf16>, vector<16x1024xf32> -> vector<16x1024xf32>
    %c0_15 = arith.constant 0 : index
    %c0_16 = arith.constant 0 : index
    %36 = vector.load %arg5[%c0_15, %c0_16] : memref<1x1024xf32, #tpu.memory_space<vmem>>, vector<1x1024xf32>
    %37 = vector.broadcast %36 : vector<1x1024xf32> to vector<16x1024xf32>
    %38 = arith.addf %35, %37 : vector<16x1024xf32>
    %39 = arith.truncf %38 : vector<16x1024xf32> to vector<16x1024xbf16>
    %c0_17 = arith.constant 0 : index
    %c0_18 = arith.constant 0 : index
    %40 = vector.load %arg7[%c0_17, %c0_18] : memref<16x1024xbf16, #tpu.memory_space<vmem>>, vector<16x1024xbf16>
    tpu.vector_store %arg7[%c0_17, %c0_18], %39 {strides = array<i32>} : memref<16x1024xbf16, #tpu.memory_space<vmem>>, vector<16x1024xbf16>,
    %c0_19 = arith.constant 0 : index
    %c0_20 = arith.constant 0 : index
    %41 = vector.load %arg6[%c0_19, %c0_20] : memref<1024x128xbf16, #tpu.memory_space<vmem>>, vector<1024x128xbf16>
    %cst_21 = arith.constant dense<0.000000e+00> : vector<16x128xf32>
    %42 = tpu.matmul %39, %41, %cst_21 {dimension_numbers = #tpu.dot_dimension_numbers<[1], [0], [0], [1], [0, 0, 1, 1], [], []>} : vector<16x1024xbf16>, vector<1024x128xbf16>, vector<16x128xf32> -> vector<16x128xf32>
    %43 = arith.truncf %42 : vector<16x128xf32> to vector<16x128xbf16>
    %c0_22 = arith.constant 0 : index
    %c0_23 = arith.constant 0 : index
    %44 = vector.load %arg8[%c0_22, %c0_23] : memref<16x128xbf16, #tpu.memory_space<vmem>>, vector<16x128xbf16>
    tpu.vector_store %arg8[%c0_22, %c0_23], %43 {strides = array<i32>} : memref<16x128xbf16, #tpu.memory_space<vmem>>, vector<16x128xbf16>,
    return
  }
  func.func @transform_0(%arg0: i32) -> (i32, i32) {
    %c0_i32 = arith.constant 0 : i32
    %c0_i32_0 = arith.constant 0 : i32
    return %arg0, %c0_i32 : i32, i32
  }
  func.func @transform_1(%arg0: i32) -> (i32, i32) {
    %c0_i32 = arith.constant 0 : i32
    %c0_i32_0 = arith.constant 0 : i32
    %c0_i32_1 = arith.constant 0 : i32
    return %c0_i32, %c0_i32_0 : i32, i32
  }
  func.func @transform_2(%arg0: i32) -> (i32, i32) {
    %c0_i32 = arith.constant 0 : i32
    %c0_i32_0 = arith.constant 0 : i32
    %c0_i32_1 = arith.constant 0 : i32
    return %c0_i32, %c0_i32_0 : i32, i32
  }
  func.func @transform_3(%arg0: i32) -> (i32, i32) {
    %c0_i32 = arith.constant 0 : i32
    %c0_i32_0 = arith.constant 0 : i32
    %c0_i32_1 = arith.constant 0 : i32
    return %c0_i32, %c0_i32_0 : i32, i32
  }
  func.func @transform_4(%arg0: i32) -> (i32, i32) {
    %c0_i32 = arith.constant 0 : i32
    %c0_i32_0 = arith.constant 0 : i32
    %c0_i32_1 = arith.constant 0 : i32
    return %c0_i32, %c0_i32_0 : i32, i32
  }
  func.func @transform_5(%arg0: i32) -> (i32, i32) {
    %c0_i32 = arith.constant 0 : i32
    %c0_i32_0 = arith.constant 0 : i32
    %c0_i32_1 = arith.constant 0 : i32
    return %c0_i32, %c0_i32_0 : i32, i32
  }
  func.func @transform_6(%arg0: i32) -> (i32, i32) {
    %c0_i32 = arith.constant 0 : i32
    %c0_i32_0 = arith.constant 0 : i32
    return %arg0, %c0_i32 : i32, i32
  }
  func.func @transform_7(%arg0: i32) -> (i32, i32) {
    %c0_i32 = arith.constant 0 : i32
    %c0_i32_0 = arith.constant 0 : i32
    return %arg0, %c0_i32 : i32, i32
  }
}

</mosaic_0001>

<bundles_post_ra>
// kernel: tpu_custom_call.1
= control target key start
LH: loop header
LB: loop body
LE: loop exit
PB: predicated region body
PF: predicated region fallthrough
CT: control target
= control target key end

     0   :  { %13 = vsyncpa [#allocation3], 0  ;;  %s9918_s0 = inlined_call_operand.hbm [shape: bf16[16,1408], index: 0, kind: input, shape index: {}]   ;;  %s9919_s1 = inlined_call_operand.hbm [shape: bf16[1408,512], index: 1, kind: input, shape index: {}]   ;;  %s9920_s2 = inlined_call_operand.hbm [shape: f32[3,512], index: 2, kind: input, shape index: {}]   ;;  %s9921_s3 = inlined_call_operand.hbm [shape: bf16[512,1024], index: 3, kind: input, shape index: {}]   ;;  %s9922_s4 = inlined_call_operand.hbm [shape: f32[1,1024], index: 4, kind: input, shape index: {}]   ;;  %s9923_s5 = inlined_call_operand.hbm [shape: bf16[1024,128], index: 5, kind: input, shape index: {}]   ;;  %s9924_s6 = inlined_call_operand.hbm [shape: bf16[16,1024], index: 6, kind: output, shape index: {0}]   ;;  %s9925_s7 = inlined_call_operand.hbm [shape: bf16[16,128], index: 7, kind: output, shape index: {1}]  }
   0x1   :  { %14 = vsyncpa [#allocation6], 0 }
   0x2   :  { %15 = vsyncpa [#allocation9], 0 }
   0x3   :  { %16 = vsyncpa [#allocation12], 0 }
   0x4   :  { %17 = vsyncpa [#allocation4], 0  ;;  %s36_s26 = sshll.u32 %s9919_s1, 4  ;;  %s37_s26 = int_to_ptr.hbm [resolvable:$true] %s36_s26 }
   0x5   :  { %18 = vsyncpa [#allocation15], 0  ;;  %s9470_s27 = smov [#allocation5]   ;;  %s60_s8 = sshll.u32 %s9921_s3, 4  ;;  %s61_s8 = int_to_ptr.hbm [resolvable:$true] %s60_s8 }
   0x6   :  { %s38_s28 = sshll.u32 %s9470_s27, 4  ;;  %s9471_s9 = smov 256   ;;  %s39_s28 = int_to_ptr.vmem [resolvable:$true] %s38_s28 }
   0x7   :  { %s9472_s10 = smov 16   ;;  %s9473_s11 = smov [#allocation8]  }
   0x8   :  { %44 = dma.hbm_to_vmem [thread:$0]  %s37_s26, 45056, %s39_s28, [#allocation6], %s9471_s9, %s9471_s9, %s9472_s10  }
   0x9   :  { %s62_s12 = sshll.u32 %s9473_s11, 4  ;;  %s9474_s13 = smov 512   ;;  %s63_s12 = int_to_ptr.vmem [resolvable:$true] %s62_s12 }
   0xa   :  { %s9475_s14 = smov 32   ;;  %s23_s16 = sshll.u32 %s9918_s0, 4  ;;  %s24_s16 = int_to_ptr.hbm [resolvable:$true] %s23_s16 }
   0xb   :  { %68 = dma.hbm_to_vmem [thread:$0]  %s61_s8, 32768, %s63_s12, [#allocation9], %s9474_s13, %s9474_s13, %s9475_s14  }
   0xc   :  { %s9476_s17 = smov [#allocation2]   ;;  %s50_s20 = sshll.u32 %s9920_s2, 4  ;;  %s51_s20 = int_to_ptr.hbm [resolvable:$true] %s50_s20 }
   0xd   :  { %s25_s3 = sshll.u32 %s9476_s17, 4  ;;  %s9477_s21 = smov 704   ;;  %s26_s3 = int_to_ptr.vmem [resolvable:$true] %s25_s3 }
   0xe   :  { %s9478_s22 = smov 44   ;;  %s9479_s23 = smov [#allocation7]  }
   0xf   :  { %31 = dma.hbm_to_vmem [thread:$0]  %s24_s16, 1408, %s26_s3, [#allocation3], %s9477_s21, %s9477_s21, %s9478_s22  }
  0x10   :  { %s52_s24 = sshll.u32 %s9479_s23, 4  ;;  %s74_s27 = sshll.u32 %s9922_s4, 4  ;;  %s53_s24 = int_to_ptr.vmem [resolvable:$true] %s52_s24  ;;  %s75_s27 = int_to_ptr.hbm [resolvable:$true] %s74_s27 }
  0x11   :  { %55 = dma.hbm_to_vmem [thread:$0]  %s51_s20, 256, %s53_s24, [#allocation6]  }
  0x12   :  { %s84_s29 = sshll.u32 %s9923_s5, 4  ;;  %s9480_s30 = smov [#allocation10]   ;;  %s85_s29 = int_to_ptr.hbm [resolvable:$true] %s84_s29 }
  0x13   :  { %s76_s8 = sshll.u32 %s9480_s30, 4  ;;  %s9481_s2 = smov [#allocation11]   ;;  %s77_s8 = int_to_ptr.vmem [resolvable:$true] %s76_s8 }
  0x14   :  { %79 = dma.hbm_to_vmem [thread:$0]  %s75_s27, 128, %s77_s8, [#allocation9]  }
  0x15   :  { %s86_s9 = sshll.u32 %s9481_s2, 4  ;;  %s9482_s10 = smov 64   ;;  %s87_s9 = int_to_ptr.vmem [resolvable:$true] %s86_s9 }
  0x16   :  { %s9483_s11 = smov 4  }
  0x17   :  { %92 = dma.hbm_to_vmem [thread:$0]  %s85_s29, 8192, %s87_s9, [#allocation12], %s9482_s10, %s9482_s10, %s9483_s11  }
  0x18   :  { %9458 = dma.done.wait [#allocation3], 1408  }
  0x19   :  { %9459 = vsyncadd [#allocation3], 4294965888 }
  0x1a   :  { %9460 = dma.done.wait [#allocation6], 45312  }
  0x1b   :  { %9461 = vsyncadd [#allocation6], 4294921984 }
  0x1c   :  { %9462 = dma.done.wait [#allocation9], 32896  }
  0x1d   :  { %9463 = vsyncadd [#allocation9], 4294934400 }
  0x1e   :  { %9464 = dma.done.wait [#allocation12], 8192  }
  0x1f   :  { %9465 = vsyncadd [#allocation12], 4294959104  ;;  %v5976_v0 = vld [vmem:[#allocation5 + $0xe0] sm:$0xf]  ;;  %v8591_v1 = vld [vmem:[#allocation5 + $0xec] sm:$0xf0] }
  0x20   :  { %v6104_v2 = vld [vmem:[#allocation5 + $0x1e0] sm:$0xf]  ;;  %v5977_v3 = vor.u32 %v8591_v1, %v5976_v0  ;;  %v8623_v4 = vld [vmem:[#allocation5 + $0x1ec] sm:$0xf0]  ;;  %s9485_s4 = smov [#allocation13]   ;;  %s5784_s15 = sshll.u32 %s9924_s6, 4  ;;  %s5785_s15 = int_to_ptr.hbm [resolvable:$true] %s5784_s15 }
  0x21   :  { %v6232_v5 = vld [vmem:[#allocation5 + $0x2e0] sm:$0xf]  ;;  %v8655_v6 = vld [vmem:[#allocation5 + $0x2ec] sm:$0xf0]  ;;  %v6105_v7 = vor.u32 %v8623_v4, %v6104_v2  ;;  %s5782_s5 = sshll.u32 %s9485_s4, 4  ;;  %s9486_s6 = smov [#allocation14]   ;;  %s5783_s5 = int_to_ptr.vmem [resolvable:$true] %s5782_s5 }
  0x22   :  { %v6233_v8 = vor.u32 %v8655_v6, %v6232_v5  ;;  %v6360_v9 = vld [vmem:[#allocation5 + $0x3e0] sm:$0xf]  ;;  %v8687_v10 = vld [vmem:[#allocation5 + $0x3ec] sm:$0xf0]  ;;  %2313 = vmatpush.bf16.msra.mxu0 %v5977_v3  ;;  %s5797_s17 = sshll.u32 %s9925_s7, 4  ;;  %s5798_s17 = int_to_ptr.hbm [resolvable:$true] %s5797_s17 }
  0x23   :  { %v5960_v11 = vld [vmem:[#allocation5 + $0xc0] sm:$0xf]  ;;  %v6361_v12 = vor.u32 %v8687_v10, %v6360_v9  ;;  %v8587_v13 = vld [vmem:[#allocation5 + $0xcc] sm:$0xf0]  ;;  %2327 = vmatpush.bf16.msra.mxu1 %v6105_v7 }
  0x24   :  { %v6088_v14 = vld [vmem:[#allocation5 + $0x1c0] sm:$0xf]  ;;  %v8619_v15 = vld [vmem:[#allocation5 + $0x1cc] sm:$0xf0]  ;;  %2341 = vmatpush.bf16.msra.mxu2 %v6233_v8  ;;  %v5961_v16 = vor.u32 %v8587_v13, %v5960_v11 }
  0x25   :  { %v6089_v17 = vor.u32 %v8619_v15, %v6088_v14  ;;  %v6216_v18 = vld [vmem:[#allocation5 + $0x2c0] sm:$0xf]  ;;  %v8651_v19 = vld [vmem:[#allocation5 + $0x2cc] sm:$0xf0]  ;;  %2355 = vmatpush.bf16.msra.mxu3 %v6361_v12 }
  0x26   :  { %v6344_v20 = vld [vmem:[#allocation5 + $0x3c0] sm:$0xf]  ;;  %v6217_v21 = vor.u32 %v8651_v19, %v6216_v18  ;;  %v8683_v22 = vld [vmem:[#allocation5 + $0x3cc] sm:$0xf0]  ;;  %2314 = vmatpush.bf16.msra.mxu0 %v5961_v16 }
  0x27   :  { %v5944_v23 = vld [vmem:[#allocation5 + $0xa0] sm:$0xf]  ;;  %v8583_v24 = vld [vmem:[#allocation5 + $0xac] sm:$0xf0]  ;;  %v6345_v25 = vor.u32 %v8683_v22, %v6344_v20  ;;  %2328 = vmatpush.bf16.msra.mxu1 %v6089_v17 }
  0x28   :  { %v6072_v26 = vld [vmem:[#allocation5 + $0x1a0] sm:$0xf]  ;;  %v8615_v27 = vld [vmem:[#allocation5 + $0x1ac] sm:$0xf0]  ;;  %v5945_v29 = vor.u32 %v8583_v24, %v5944_v23  ;;  %2342 = vmatpush.bf16.msra.mxu2 %v6217_v21 }
  0x29   :  { %v6200_v28 = vld [vmem:[#allocation5 + $0x2a0] sm:$0xf]  ;;  %v8647_v30 = vld [vmem:[#allocation5 + $0x2ac] sm:$0xf0]  ;;  %v6073_v33 = vor.u32 %v8615_v27, %v6072_v26  ;;  %2356 = vmatpush.bf16.msra.mxu3 %v6345_v25 }
  0x2a   :  { %v6328_v31 = vld [vmem:[#allocation5 + $0x3a0] sm:$0xf]  ;;  %v8679_v32 = vld [vmem:[#allocation5 + $0x3ac] sm:$0xf0]  ;;  %v6201_v34 = vor.u32 %v8647_v30, %v6200_v28  ;;  %2315 = vmatpush.bf16.msra.mxu0 %v5945_v29 }
  0x2b   :  { %v5928_v35 = vld [vmem:[#allocation5 + $0x80] sm:$0xf]  ;;  %v8579_v36 = vld [vmem:[#allocation5 + $0x8c] sm:$0xf0]  ;;  %v6329_v38 = vor.u32 %v8679_v32, %v6328_v31  ;;  %2329 = vmatpush.bf16.msra.mxu1 %v6073_v33 }
  0x2c   :  { %v6056_v37 = vld [vmem:[#allocation5 + $0x180] sm:$0xf]  ;;  %v8611_v39 = vld [vmem:[#allocation5 + $0x18c] sm:$0xf0]  ;;  %v5929_v44 = vor.u32 %v8579_v36, %v5928_v35  ;;  %2343 = vmatpush.bf16.msra.mxu2 %v6201_v34 }
  0x2d   :  { %v6184_v40 = vld [vmem:[#allocation5 + $0x280] sm:$0xf]  ;;  %v8643_v41 = vld [vmem:[#allocation5 + $0x28c] sm:$0xf0]  ;;  %v6057_v45 = vor.u32 %v8611_v39, %v6056_v37  ;;  %2357 = vmatpush.bf16.msra.mxu3 %v6329_v38 }
  0x2e   :  { %v6312_v42 = vld [vmem:[#allocation5 + $0x380] sm:$0xf]  ;;  %v8675_v43 = vld [vmem:[#allocation5 + $0x38c] sm:$0xf0]  ;;  %v6185_v46 = vor.u32 %v8643_v41, %v6184_v40  ;;  %2316 = vmatpush.bf16.msra.mxu0 %v5929_v44 }
  0x2f   :  { %v5912_v47 = vld [vmem:[#allocation5 + $0x60] sm:$0xf]  ;;  %v8575_v48 = vld [vmem:[#allocation5 + $0x6c] sm:$0xf0]  ;;  %v6313_v50 = vor.u32 %v8675_v43, %v6312_v42  ;;  %2330 = vmatpush.bf16.msra.mxu1 %v6057_v45 }
  0x30   :  { %v6040_v49 = vld [vmem:[#allocation5 + $0x160] sm:$0xf]  ;;  %v8607_v51 = vld [vmem:[#allocation5 + $0x16c] sm:$0xf0]  ;;  %v5913_v56 = vor.u32 %v8575_v48, %v5912_v47  ;;  %2344 = vmatpush.bf16.msra.mxu2 %v6185_v46 }
  0x31   :  { %v6168_v52 = vld [vmem:[#allocation5 + $0x260] sm:$0xf]  ;;  %v8639_v53 = vld [vmem:[#allocation5 + $0x26c] sm:$0xf0]  ;;  %v6041_v57 = vor.u32 %v8607_v51, %v6040_v49  ;;  %2358 = vmatpush.bf16.msra.mxu3 %v6313_v50 }
  0x32   :  { %v6296_v54 = vld [vmem:[#allocation5 + $0x360] sm:$0xf]  ;;  %v8671_v55 = vld [vmem:[#allocation5 + $0x36c] sm:$0xf0]  ;;  %v6169_v58 = vor.u32 %v8639_v53, %v6168_v52  ;;  %2317 = vmatpush.bf16.msra.mxu0 %v5913_v56  ;;  %v5820_v52 = vld [vmem:[#allocation2] sm:$0xf] }
  0x33   :  { %v5896_v59 = vld [vmem:[#allocation5 + $0x40] sm:$0xf]  ;;  %v8571_v60 = vld [vmem:[#allocation5 + $0x4c] sm:$0xf0]  ;;  %v6297_v62 = vor.u32 %v8671_v55, %v6296_v54  ;;  %2331 = vmatpush.bf16.msra.mxu1 %v6041_v57  ;;  %v8555_v53 = vld [vmem:[#allocation2 + $0x28] sm:$0xf0] }
  0x34   :  { %v6024_v61 = vld [vmem:[#allocation5 + $0x140] sm:$0xf]  ;;  %v8603_v63 = vld [vmem:[#allocation5 + $0x14c] sm:$0xf0]  ;;  %v5897_v4 = vor.u32 %v8571_v60, %v5896_v59  ;;  %2345 = vmatpush.bf16.msra.mxu2 %v6169_v58  ;;  %v9551_v58 = vor.u32 %v8555_v53, %v5820_v52  ;;  %v8556_v59 = vld [vmem:[#allocation2 + $0x30] sm:$0xf0] }
  0x35   :  { %v6152_v0 = vld [vmem:[#allocation5 + $0x240] sm:$0xf]  ;;  %v8635_v1 = vld [vmem:[#allocation5 + $0x24c] sm:$0xf0]  ;;  %v6025_v5 = vor.u32 %v8603_v63, %v6024_v61  ;;  %2359 = vmatpush.bf16.msra.mxu3 %v6297_v62 }
  0x36   :  { %v6280_v2 = vld [vmem:[#allocation5 + $0x340] sm:$0xf]  ;;  %v8667_v3 = vld [vmem:[#allocation5 + $0x34c] sm:$0xf0]  ;;  %v6153_v6 = vor.u32 %v8635_v1, %v6152_v0  ;;  %2318 = vmatpush.bf16.msra.mxu0 %v5897_v4 }
  0x37   :  { %v5880_v7 = vld [vmem:[#allocation5 + $0x20] sm:$0xf]  ;;  %v8567_v8 = vld [vmem:[#allocation5 + $0x2c] sm:$0xf0]  ;;  %v6281_v10 = vor.u32 %v8667_v3, %v6280_v2  ;;  %2332 = vmatpush.bf16.msra.mxu1 %v6025_v5 }
  0x38   :  { %v6008_v9 = vld [vmem:[#allocation5 + $0x120] sm:$0xf]  ;;  %v8599_v11 = vld [vmem:[#allocation5 + $0x12c] sm:$0xf0]  ;;  %v5881_v16 = vor.u32 %v8567_v8, %v5880_v7  ;;  %2346 = vmatpush.bf16.msra.mxu2 %v6153_v6  ;;  %v8550_v6 = vld [vmem:[#allocation2 + $0x4] sm:$0xf] }
  0x39   :  { %v6136_v12 = vld [vmem:[#allocation5 + $0x220] sm:$0xf]  ;;  %v8631_v13 = vld [vmem:[#allocation5 + $0x22c] sm:$0xf0]  ;;  %v6009_v19 = vor.u32 %v8599_v11, %v6008_v9  ;;  %2360 = vmatpush.bf16.msra.mxu3 %v6281_v10  ;;  %v5822_v7 = vld [vmem:[#allocation2 + $0x2c] sm:$0xf0] }
  0x3a   :  { %v6264_v14 = vld [vmem:[#allocation5 + $0x320] sm:$0xf]  ;;  %v8663_v15 = vld [vmem:[#allocation5 + $0x32c] sm:$0xf0]  ;;  %v6137_v20 = vor.u32 %v8631_v13, %v6136_v12  ;;  %2319 = vmatpush.bf16.msra.mxu0 %v5881_v16  ;;  %v8551_v8 = vld [vmem:[#allocation2 + $0xc] sm:$0xf]  ;;  %v9557_v10 = vor.u32 %v8550_v6, %v5822_v7 }
  0x3b   :  { %v5864_v17 = vld [vmem:[#allocation5] sm:$0xf]  ;;  %v8563_v18 = vld [vmem:[#allocation5 + $0xc] sm:$0xf0]  ;;  %v6265_v24 = vor.u32 %v8663_v15, %v6264_v14  ;;  %2333 = vmatpush.bf16.msra.mxu1 %v6009_v19 }
  0x3c   :  { %v5992_v21 = vld [vmem:[#allocation5 + $0x100] sm:$0xf]  ;;  %v8595_v22 = vld [vmem:[#allocation5 + $0x10c] sm:$0xf0]  ;;  %v5865_v31 = vor.u32 %v8563_v18, %v5864_v17  ;;  %2347 = vmatpush.bf16.msra.mxu2 %v6137_v20 }
  0x3d   :  { %v6120_v23 = vld [vmem:[#allocation5 + $0x200] sm:$0xf]  ;;  %v8627_v25 = vld [vmem:[#allocation5 + $0x20c] sm:$0xf0]  ;;  %v5993_v35 = vor.u32 %v8595_v22, %v5992_v21  ;;  %2361 = vmatpush.bf16.msra.mxu3 %v6265_v24 }
  0x3e   :  { %v6248_v26 = vld [vmem:[#allocation5 + $0x300] sm:$0xf]  ;;  %v8659_v27 = vld [vmem:[#allocation5 + $0x30c] sm:$0xf0]  ;;  %v6121_v36 = vor.u32 %v8627_v25, %v6120_v23  ;;  %2320 = vmatpush.bf16.msra.mxu0 %v5865_v31 }
  0x3f   :  { %v6488_v28 = vld [vmem:[#allocation5 + $0x4e0] sm:$0xf]  ;;  %v8719_v29 = vld [vmem:[#allocation5 + $0x4ec] sm:$0xf0]  ;;  %v6249_v39 = vor.u32 %v8659_v27, %v6248_v26  ;;  %2334 = vmatpush.bf16.msra.mxu1 %v5993_v35 }
  0x40   :  { %v6616_v30 = vld [vmem:[#allocation5 + $0x5e0] sm:$0xf]  ;;  %v8751_v32 = vld [vmem:[#allocation5 + $0x5ec] sm:$0xf0]  ;;  %v6489_v40 = vor.u32 %v8719_v29, %v6488_v28  ;;  %2348 = vmatpush.bf16.msra.mxu2 %v6121_v36 }
  0x41   :  { %v6744_v33 = vld [vmem:[#allocation5 + $0x6e0] sm:$0xf]  ;;  %v8783_v34 = vld [vmem:[#allocation5 + $0x6ec] sm:$0xf0]  ;;  %v6617_v43 = vor.u32 %v8751_v32, %v6616_v30  ;;  %2362 = vmatpush.bf16.msra.mxu3 %v6249_v39  ;;  %2321 = vmatmul.bf16.vlgmr.msra.gmra.mxu0 %v9551_v58 }
  0x42   :  { %v6872_v37 = vld [vmem:[#allocation5 + $0x7e0] sm:$0xf]  ;;  %v8815_v38 = vld [vmem:[#allocation5 + $0x7ec] sm:$0xf0]  ;;  %v6745_v44 = vor.u32 %v8783_v34, %v6744_v33  ;;  %2369 = vmatpush.bf16.msrb.mxu0 %v6489_v40  ;;  %2335 = vmatmul.bf16.vlgmr.msra.gmra.mxu1 %v9557_v10 }
  0x43   :  { %v6472_v41 = vld [vmem:[#allocation5 + $0x4c0] sm:$0xf]  ;;  %v8715_v42 = vld [vmem:[#allocation5 + $0x4cc] sm:$0xf0]  ;;  %v6873_v48 = vor.u32 %v8815_v38, %v6872_v37  ;;  %2383 = vmatpush.bf16.msrb.mxu1 %v6617_v43 }
  0x44   :  { %v6600_v45 = vld [vmem:[#allocation5 + $0x5c0] sm:$0xf]  ;;  %v8747_v46 = vld [vmem:[#allocation5 + $0x5cc] sm:$0xf0]  ;;  %v6473_v55 = vor.u32 %v8715_v42, %v6472_v41  ;;  %2397 = vmatpush.bf16.msrb.mxu2 %v6745_v44 }
  0x45   :  { %v6728_v47 = vld [vmem:[#allocation5 + $0x6c0] sm:$0xf]  ;;  %v8779_v49 = vld [vmem:[#allocation5 + $0x6cc] sm:$0xf0]  ;;  %v6601_v60 = vor.u32 %v8747_v46, %v6600_v45  ;;  %2411 = vmatpush.bf16.msrb.mxu3 %v6873_v48 }
  0x46   :  { %v6856_v50 = vld [vmem:[#allocation5 + $0x7c0] sm:$0xf]  ;;  %v8811_v51 = vld [vmem:[#allocation5 + $0x7cc] sm:$0xf0]  ;;  %v6729_v61 = vor.u32 %v8779_v49, %v6728_v47  ;;  %2370 = vmatpush.bf16.msrb.mxu0 %v6473_v55 }
  0x47   :  { %v5828_v54 = vld [vmem:[#allocation2 + $0x8] sm:$0xf]  ;;  %v6456_v56 = vld [vmem:[#allocation5 + $0x4a0] sm:$0xf]  ;;  %v6857_v2 = vor.u32 %v8811_v51, %v6856_v50  ;;  %2384 = vmatpush.bf16.msrb.mxu1 %v6601_v60 }
  0x48   :  { %v8711_v57 = vld [vmem:[#allocation5 + $0x4ac] sm:$0xf0]  ;;  %v6584_v62 = vld [vmem:[#allocation5 + $0x5a0] sm:$0xf]  ;;  %v9553_v1 = vor.u32 %v8556_v59, %v5828_v54  ;;  %2398 = vmatpush.bf16.msrb.mxu2 %v6729_v61 }
  0x49   :  { %v8743_v63 = vld [vmem:[#allocation5 + $0x5ac] sm:$0xf0]  ;;  %v6712_v0 = vld [vmem:[#allocation5 + $0x6a0] sm:$0xf]  ;;  %v6457_v9 = vor.u32 %v8711_v57, %v6456_v56  ;;  %2412 = vmatpush.bf16.msrb.mxu3 %v6857_v2 }
  0x4a   :  { %v8775_v3 = vld [vmem:[#allocation5 + $0x6ac] sm:$0xf0]  ;;  %v6840_v4 = vld [vmem:[#allocation5 + $0x7a0] sm:$0xf]  ;;  %2349 = vmatmul.bf16.vlgmr.msra.gmra.mxu2 %v9553_v1  ;;  %v6585_v12 = vor.u32 %v8743_v63, %v6584_v62 }
  0x4b   :  { %v8807_v5 = vld [vmem:[#allocation5 + $0x7ac] sm:$0xf0]  ;;  %v5830_v11 = vld [vmem:[#allocation2 + $0x34] sm:$0xf0]  ;;  %v6713_v13 = vor.u32 %v8775_v3, %v6712_v0  ;;  %2371 = vmatpush.bf16.msrb.mxu0 %v6457_v9 }
  0x4c   :  { %v6440_v14 = vld [vmem:[#allocation5 + $0x480] sm:$0xf]  ;;  %v8707_v15 = vld [vmem:[#allocation5 + $0x48c] sm:$0xf0]  ;;  %v9559_v17 = vor.u32 %v8551_v8, %v5830_v11  ;;  %v6841_v18 = vor.u32 %v8807_v5, %v6840_v4  ;;  %2385 = vmatpush.bf16.msrb.mxu1 %v6585_v12 }
  0x4d   :  { %v6568_v16 = vld [vmem:[#allocation5 + $0x580] sm:$0xf]  ;;  %v8739_v19 = vld [vmem:[#allocation5 + $0x58c] sm:$0xf0]  ;;  %v6441_v24 = vor.u32 %v8707_v15, %v6440_v14  ;;  %2399 = vmatpush.bf16.msrb.mxu2 %v6713_v13 }
  0x4e   :  { %v6696_v20 = vld [vmem:[#allocation5 + $0x680] sm:$0xf]  ;;  %v8771_v21 = vld [vmem:[#allocation5 + $0x68c] sm:$0xf0]  ;;  %2363 = vmatmul.bf16.vlgmr.msra.gmra.mxu3 %v9559_v17  ;;  %v6569_v25 = vor.u32 %v8739_v19, %v6568_v16 }
  0x4f   :  { %v6824_v22 = vld [vmem:[#allocation5 + $0x780] sm:$0xf]  ;;  %v8803_v23 = vld [vmem:[#allocation5 + $0x78c] sm:$0xf0]  ;;  %v6697_v26 = vor.u32 %v8771_v21, %v6696_v20  ;;  %2413 = vmatpush.bf16.msrb.mxu3 %v6841_v18  ;;  %2372 = vmatpush.bf16.msrb.mxu0 %v6441_v24  ;;  %v8589_v18 = vld [vmem:[#allocation5 + $0xe4] sm:$0xf] }
  0x50   :  { %v6424_v27 = vld [vmem:[#allocation5 + $0x460] sm:$0xf]  ;;  %v8703_v28 = vld [vmem:[#allocation5 + $0x46c] sm:$0xf0]  ;;  %v6825_v30 = vor.u32 %v8803_v23, %v6824_v22  ;;  %2386 = vmatpush.bf16.msrb.mxu1 %v6569_v25  ;;  %v5978_v20 = vld [vmem:[#allocation5 + $0xf0] sm:$0xf0] }
  0x51   :  { %v6552_v29 = vld [vmem:[#allocation5 + $0x560] sm:$0xf]  ;;  %v8735_v31 = vld [vmem:[#allocation5 + $0x56c] sm:$0xf0]  ;;  %v6425_v36 = vor.u32 %v8703_v28, %v6424_v27  ;;  %2400 = vmatpush.bf16.msrb.mxu2 %v6697_v26  ;;  %v5836_v21 = vld [vmem:[#allocation2 + $0x10] sm:$0xf] }
  0x52   :  { %v6680_v32 = vld [vmem:[#allocation5 + $0x660] sm:$0xf]  ;;  %v8767_v33 = vld [vmem:[#allocation5 + $0x66c] sm:$0xf0]  ;;  %v6553_v37 = vor.u32 %v8735_v31, %v6552_v29  ;;  %v8557_v22 = vld [vmem:[#allocation2 + $0x38] sm:$0xf0] }
  0x53   :  { %v6808_v34 = vld [vmem:[#allocation5 + $0x760] sm:$0xf]  ;;  %v8799_v35 = vld [vmem:[#allocation5 + $0x76c] sm:$0xf0]  ;;  %v6681_v38 = vor.u32 %v8767_v33, %v6680_v32  ;;  %2414 = vmatpush.bf16.msrb.mxu3 %v6825_v30  ;;  %2373 = vmatpush.bf16.msrb.mxu0 %v6425_v36  ;;  %v8558_v26 = vld [vmem:[#allocation2 + $0x40] sm:$0xf0] }
  0x54   :  { %v6408_v39 = vld [vmem:[#allocation5 + $0x440] sm:$0xf]  ;;  %v8699_v40 = vld [vmem:[#allocation5 + $0x44c] sm:$0xf0]  ;;  %v6809_v42 = vor.u32 %v8799_v35, %v6808_v34  ;;  %2387 = vmatpush.bf16.msrb.mxu1 %v6553_v37  ;;  %v8552_v27 = vld [vmem:[#allocation2 + $0x14] sm:$0xf] }
  0x55   :  { %v6536_v41 = vld [vmem:[#allocation5 + $0x540] sm:$0xf]  ;;  %v8731_v43 = vld [vmem:[#allocation5 + $0x54c] sm:$0xf0]  ;;  %v6409_v48 = vor.u32 %v8699_v40, %v6408_v39  ;;  %2401 = vmatpush.bf16.msrb.mxu2 %v6681_v38  ;;  %v5838_v30 = vld [vmem:[#allocation2 + $0x3c] sm:$0xf0]  ;;  %v5981_v38 = vor.u32 %v8589_v18, %v5978_v20  ;;  %v9563_v39 = vor.u32 %v8557_v22, %v5836_v21 }
  0x56   :  { %v6664_v44 = vld [vmem:[#allocation5 + $0x640] sm:$0xf]  ;;  %v8763_v45 = vld [vmem:[#allocation5 + $0x64c] sm:$0xf0]  ;;  %v6537_v50 = vor.u32 %v8731_v43, %v6536_v41  ;;  %v8553_v31 = vld [vmem:[#allocation2 + $0x1c] sm:$0xf] }
  0x57   :  { %v6792_v46 = vld [vmem:[#allocation5 + $0x740] sm:$0xf]  ;;  %v8795_v47 = vld [vmem:[#allocation5 + $0x74c] sm:$0xf0]  ;;  %v6665_v51 = vor.u32 %v8763_v45, %v6664_v44  ;;  %2415 = vmatpush.bf16.msrb.mxu3 %v6809_v42  ;;  %2374 = vmatpush.bf16.msrb.mxu0 %v6409_v48  ;;  %v9567_v44 = vor.u32 %v8552_v27, %v5838_v30  ;;  %v8585_v45 = vld [vmem:[#allocation5 + $0xc4] sm:$0xf] }
  0x58   :  { %v6392_v49 = vld [vmem:[#allocation5 + $0x420] sm:$0xf]  ;;  %v8695_v52 = vld [vmem:[#allocation5 + $0x42c] sm:$0xf0]  ;;  %v6793_v55 = vor.u32 %v8795_v47, %v6792_v46  ;;  %2388 = vmatpush.bf16.msrb.mxu1 %v6537_v50  ;;  %v5962_v46 = vld [vmem:[#allocation5 + $0xd0] sm:$0xf0] }
  0x59   :  { %v6520_v53 = vld [vmem:[#allocation5 + $0x520] sm:$0xf]  ;;  %v8727_v54 = vld [vmem:[#allocation5 + $0x52c] sm:$0xf0]  ;;  %v6393_v63 = vor.u32 %v8695_v52, %v6392_v49  ;;  %2402 = vmatpush.bf16.msrb.mxu2 %v6665_v51  ;;  %v8573_v22 = vld [vmem:[#allocation5 + $0x64] sm:$0xf] }
  0x5a   :  { %v6648_v56 = vld [vmem:[#allocation5 + $0x620] sm:$0xf]  ;;  %v8759_v57 = vld [vmem:[#allocation5 + $0x62c] sm:$0xf0]  ;;  %v6521_v5 = vor.u32 %v8727_v54, %v6520_v53  ;;  %v5965_v54 = vor.u32 %v8585_v45, %v5962_v46 }
  0x5b   :  { %v6776_v59 = vld [vmem:[#allocation5 + $0x720] sm:$0xf]  ;;  %v8791_v60 = vld [vmem:[#allocation5 + $0x72c] sm:$0xf0]  ;;  %v6649_v6 = vor.u32 %v8759_v57, %v6648_v56  ;;  %2416 = vmatpush.bf16.msrb.mxu3 %v6793_v55  ;;  %2375 = vmatpush.bf16.msrb.mxu0 %v6393_v63 }
  0x5c   :  { %v6376_v61 = vld [vmem:[#allocation5 + $0x400] sm:$0xf]  ;;  %v8691_v62 = vld [vmem:[#allocation5 + $0x40c] sm:$0xf0]  ;;  %v6777_v11 = vor.u32 %v8791_v60, %v6776_v59  ;;  %2389 = vmatpush.bf16.msrb.mxu1 %v6521_v5  ;;  %v8581_v59 = vld [vmem:[#allocation5 + $0xa4] sm:$0xf] }
  0x5d   :  { %v6504_v0 = vld [vmem:[#allocation5 + $0x500] sm:$0xf]  ;;  %v8723_v2 = vld [vmem:[#allocation5 + $0x50c] sm:$0xf0]  ;;  %v6377_v19 = vor.u32 %v8691_v62, %v6376_v61  ;;  %2403 = vmatpush.bf16.msrb.mxu2 %v6649_v6  ;;  %v5946_v60 = vld [vmem:[#allocation5 + $0xb0] sm:$0xf0] }
  0x5e   :  { %v6632_v3 = vld [vmem:[#allocation5 + $0x600] sm:$0xf]  ;;  %v8755_v4 = vld [vmem:[#allocation5 + $0x60c] sm:$0xf0]  ;;  %v6505_v23 = vor.u32 %v8723_v2, %v6504_v0 }
  0x5f   :  { %v6760_v7 = vld [vmem:[#allocation5 + $0x700] sm:$0xf]  ;;  %v8787_v8 = vld [vmem:[#allocation5 + $0x70c] sm:$0xf0]  ;;  %v6633_v24 = vor.u32 %v8755_v4, %v6632_v3  ;;  %2417 = vmatpush.bf16.msrb.mxu3 %v6777_v11  ;;  %2376 = vmatpush.bf16.msrb.mxu0 %v6377_v19  ;;  %v5949_v4 = vor.u32 %v8581_v59, %v5946_v60 }
  0x60   :  { %v7000_v9 = vld [vmem:[#allocation5 + $0x8e0] sm:$0xf]  ;;  %v8847_v12 = vld [vmem:[#allocation5 + $0x8ec] sm:$0xf0]  ;;  %v6761_v28 = vor.u32 %v8787_v8, %v6760_v7  ;;  %2390 = vmatpush.bf16.msrb.mxu1 %v6505_v23  ;;  %v8577_v8 = vld [vmem:[#allocation5 + $0x84] sm:$0xf] }
  0x61   :  { %v7128_v13 = vld [vmem:[#allocation5 + $0x9e0] sm:$0xf]  ;;  %v8879_v14 = vld [vmem:[#allocation5 + $0x9ec] sm:$0xf0]  ;;  %v7001_v29 = vor.u32 %v8847_v12, %v7000_v9  ;;  %2404 = vmatpush.bf16.msrb.mxu2 %v6633_v24  ;;  %v5930_v9 = vld [vmem:[#allocation5 + $0x90] sm:$0xf0] }
  0x62   :  { %v7256_v15 = vld [vmem:[#allocation5 + $0xae0] sm:$0xf]  ;;  %v8911_v16 = vld [vmem:[#allocation5 + $0xaec] sm:$0xf0]  ;;  %v7129_v33 = vor.u32 %v8879_v14, %v7128_v13  ;;  %2377 = vmatmul.bf16.vlgmr.msrb.gmra.mxu0 %v9563_v39  ;;  %v5933_v18 = vor.u32 %v8577_v8, %v5930_v9  ;;  %v5914_v23 = vld [vmem:[#allocation5 + $0x70] sm:$0xf0] }
  0x63   :  { %v5844_v25 = vld [vmem:[#allocation2 + $0x18] sm:$0xf]  ;;  %v5846_v32 = vld [vmem:[#allocation2 + $0x44] sm:$0xf0]  ;;  %v7257_v34 = vor.u32 %v8911_v16, %v7256_v15  ;;  %2418 = vmatpush.bf16.msrb.mxu3 %v6761_v28  ;;  %2425 = vmatpush.bf16.msra.mxu0 %v7001_v29  ;;  %v5917_v30 = vor.u32 %v8573_v22, %v5914_v23  ;;  %v6362_v8 = vld [vmem:[#allocation5 + $0x3f0] sm:$0xf0] }
  0x64   :  { %v6984_v35 = vld [vmem:[#allocation5 + $0x8c0] sm:$0xf]  ;;  %v8843_v36 = vld [vmem:[#allocation5 + $0x8cc] sm:$0xf0]  ;;  %v9565_v43 = vor.u32 %v8558_v26, %v5844_v25  ;;  %v9569_v47 = vor.u32 %v8553_v31, %v5846_v32  ;;  %2439 = vmatpush.bf16.msra.mxu1 %v7129_v33  ;;  %v8717_v9 = vld [vmem:[#allocation5 + $0x4e4] sm:$0xf] }
  0x65   :  { %v7112_v37 = vld [vmem:[#allocation5 + $0x9c0] sm:$0xf]  ;;  %v8875_v40 = vld [vmem:[#allocation5 + $0x9cc] sm:$0xf0]  ;;  %v6985_v48 = vor.u32 %v8843_v36, %v6984_v35  ;;  %2453 = vmatpush.bf16.msra.mxu2 %v7257_v34  ;;  %2391 = vmatmul.bf16.vlgmr.msrb.gmra.mxu1 %v9567_v44  ;;  %v8569_v34 = vld [vmem:[#allocation5 + $0x44] sm:$0xf] }
  0x66   :  { %v7240_v41 = vld [vmem:[#allocation5 + $0xac0] sm:$0xf]  ;;  %v8907_v42 = vld [vmem:[#allocation5 + $0xacc] sm:$0xf0]  ;;  %v7113_v49 = vor.u32 %v8875_v40, %v7112_v37  ;;  %2405 = vmatmul.bf16.vlgmr.msrb.gmra.mxu2 %v9565_v43  ;;  %2419 = vmatmul.bf16.vlgmr.msrb.gmra.mxu3 %v9569_v47  ;;  %v5898_v35 = vld [vmem:[#allocation5 + $0x50] sm:$0xf0] }
  0x67   :  { %v7241_v50 = vor.u32 %v8907_v42, %v7240_v41  ;;  %v6968_v51 = vld [vmem:[#allocation5 + $0x8a0] sm:$0xf]  ;;  %v8839_v52 = vld [vmem:[#allocation5 + $0x8ac] sm:$0xf0]  ;;  %2467 = vmatpush.bf16.msra.mxu3 %v5981_v38  ;;  %2426 = vmatpush.bf16.msra.mxu0 %v6985_v48  ;;  %v5901_v45 = vor.u32 %v8569_v34, %v5898_v35  ;;  %v5854_v22 = vld [vmem:[#allocation2 + $0x4c] sm:$0xf0] }
  0x68   :  { %v7096_v53 = vld [vmem:[#allocation5 + $0x9a0] sm:$0xf]  ;;  %v8871_v55 = vld [vmem:[#allocation5 + $0x9ac] sm:$0xf0]  ;;  %v6969_v61 = vor.u32 %v8839_v52, %v6968_v51  ;;  %2440 = vmatpush.bf16.msra.mxu1 %v7113_v49  ;;  %v5882_v51 = vld [vmem:[#allocation5 + $0x30] sm:$0xf0] }
  0x69   :  { %v7224_v56 = vld [vmem:[#allocation5 + $0xaa0] sm:$0xf]  ;;  %v8903_v57 = vld [vmem:[#allocation5 + $0xaac] sm:$0xf0]  ;;  %2454 = vmatpush.bf16.msra.mxu2 %v7241_v50  ;;  %v7097_v62 = vor.u32 %v8871_v55, %v7096_v53  ;;  %v8565_v50 = vld [vmem:[#allocation5 + $0x24] sm:$0xf] }
  0x6a   :  { %v7225_v63 = vor.u32 %v8903_v57, %v7224_v56  ;;  %v6952_v0 = vld [vmem:[#allocation5 + $0x880] sm:$0xf]  ;;  %v8835_v2 = vld [vmem:[#allocation5 + $0x88c] sm:$0xf0]  ;;  %v8713_v35 = vld [vmem:[#allocation5 + $0x4c4] sm:$0xf] }
  0x6b   :  { %v7080_v3 = vld [vmem:[#allocation5 + $0x980] sm:$0xf]  ;;  %2468 = vmatpush.bf16.msra.mxu3 %v5965_v54  ;;  %v8867_v5 = vld [vmem:[#allocation5 + $0x98c] sm:$0xf0]  ;;  %2427 = vmatpush.bf16.msra.mxu0 %v6969_v61  ;;  %v6953_v11 = vor.u32 %v8835_v2, %v6952_v0  ;;  %v5866_v0 = vld [vmem:[#allocation5 + $0x10] sm:$0xf0] }
  0x6c   :  { %v7208_v6 = vld [vmem:[#allocation5 + $0xa80] sm:$0xf]  ;;  %v8899_v7 = vld [vmem:[#allocation5 + $0xa8c] sm:$0xf0]  ;;  %2441 = vmatpush.bf16.msra.mxu1 %v7097_v62  ;;  %v7081_v12 = vor.u32 %v8867_v5, %v7080_v3  ;;  %v8561_v62 = vld [vmem:[#allocation5 + $0x4] sm:$0xf] }
  0x6d   :  { %2455 = vmatpush.bf16.msra.mxu2 %v7225_v63  ;;  %v7209_v13 = vor.u32 %v8899_v7, %v7208_v6  ;;  %v6936_v14 = vld [vmem:[#allocation5 + $0x860] sm:$0xf]  ;;  %v8831_v15 = vld [vmem:[#allocation5 + $0x86c] sm:$0xf0]  ;;  %v5885_v63 = vor.u32 %v8565_v50, %v5882_v51  ;;  %v8621_v2 = vld [vmem:[#allocation5 + $0x1e4] sm:$0xf] }
  0x6e   :  { %v7064_v16 = vld [vmem:[#allocation5 + $0x960] sm:$0xf]  ;;  %v8863_v19 = vld [vmem:[#allocation5 + $0x96c] sm:$0xf0]  ;;  %v6937_v24 = vor.u32 %v8831_v15, %v6936_v14  ;;  %v6106_v3 = vld [vmem:[#allocation5 + $0x1f0] sm:$0xf0] }
  0x6f   :  { %2469 = vmatpush.bf16.msra.mxu3 %v5949_v4  ;;  %v7192_v20 = vld [vmem:[#allocation5 + $0xa60] sm:$0xf]  ;;  %v8895_v21 = vld [vmem:[#allocation5 + $0xa6c] sm:$0xf0]  ;;  %2428 = vmatpush.bf16.msra.mxu0 %v6953_v11  ;;  %v7065_v25 = vor.u32 %v8863_v19, %v7064_v16  ;;  %v8653_v4 = vld [vmem:[#allocation5 + $0x2e4] sm:$0xf]  ;;  %v6109_v19 = vor.u32 %v8621_v2, %v6106_v3 }
  0x70   :  { %2442 = vmatpush.bf16.msra.mxu1 %v7081_v12  ;;  %v7193_v26 = vor.u32 %v8895_v21, %v7192_v20  ;;  %v6920_v27 = vld [vmem:[#allocation5 + $0x840] sm:$0xf]  ;;  %v8827_v28 = vld [vmem:[#allocation5 + $0x84c] sm:$0xf0]  ;;  %v6234_v5 = vld [vmem:[#allocation5 + $0x2f0] sm:$0xf0] }
  0x71   :  { %2456 = vmatpush.bf16.msra.mxu2 %v7209_v13  ;;  %v7048_v29 = vld [vmem:[#allocation5 + $0x940] sm:$0xf]  ;;  %v8859_v31 = vld [vmem:[#allocation5 + $0x94c] sm:$0xf0]  ;;  %v6921_v36 = vor.u32 %v8827_v28, %v6920_v27  ;;  %v8685_v6 = vld [vmem:[#allocation5 + $0x3e4] sm:$0xf]  ;;  %v6237_v23 = vor.u32 %v8653_v4, %v6234_v5 }
  0x72   :  { %v7176_v32 = vld [vmem:[#allocation5 + $0xa40] sm:$0xf]  ;;  %v8891_v33 = vld [vmem:[#allocation5 + $0xa4c] sm:$0xf0]  ;;  %v7049_v37 = vor.u32 %v8859_v31, %v7048_v29  ;;  %v6490_v11 = vld [vmem:[#allocation5 + $0x4f0] sm:$0xf0] }
  0x73   :  { %2470 = vmatpush.bf16.msra.mxu3 %v5933_v18  ;;  %2429 = vmatpush.bf16.msra.mxu0 %v6937_v24  ;;  %v7177_v38 = vor.u32 %v8891_v33, %v7176_v32  ;;  %v6904_v40 = vld [vmem:[#allocation5 + $0x820] sm:$0xf]  ;;  %v8823_v41 = vld [vmem:[#allocation5 + $0x82c] sm:$0xf0]  ;;  %v5852_v14 = vld [vmem:[#allocation2 + $0x20] sm:$0xf]  ;;  %v5869_v18 = vor.u32 %v8561_v62, %v5866_v0  ;;  %v6365_v24 = vor.u32 %v8685_v6, %v6362_v8 }
  0x74   :  { %2443 = vmatpush.bf16.msra.mxu1 %v7065_v25  ;;  %v7032_v42 = vld [vmem:[#allocation5 + $0x920] sm:$0xf]  ;;  %v8855_v46 = vld [vmem:[#allocation5 + $0x92c] sm:$0xf0]  ;;  %v6905_v53 = vor.u32 %v8823_v41, %v6904_v40  ;;  %v8559_v15 = vld [vmem:[#allocation2 + $0x48] sm:$0xf0]  ;;  %v6493_v28 = vor.u32 %v8717_v9, %v6490_v11 }
  0x75   :  { %2457 = vmatpush.bf16.msra.mxu2 %v7193_v26  ;;  %v7160_v48 = vld [vmem:[#allocation5 + $0xa20] sm:$0xf]  ;;  %v8887_v49 = vld [vmem:[#allocation5 + $0xa2c] sm:$0xf0]  ;;  %v7033_v57 = vor.u32 %v8855_v46, %v7032_v42  ;;  %v8560_v20 = vld [vmem:[#allocation2 + $0x50] sm:$0xf0]  ;;  %v9575_v29 = vor.u32 %v8559_v15, %v5852_v14 }
  0x76   :  { %v6888_v52 = vld [vmem:[#allocation5 + $0x800] sm:$0xf]  ;;  %v8819_v54 = vld [vmem:[#allocation5 + $0x80c] sm:$0xf0]  ;;  %v7161_v59 = vor.u32 %v8887_v49, %v7160_v48  ;;  %v8554_v21 = vld [vmem:[#allocation2 + $0x24] sm:$0xf] }
  0x77   :  { %2471 = vmatpush.bf16.msra.mxu3 %v5917_v30  ;;  %2430 = vmatpush.bf16.msra.mxu0 %v6921_v36  ;;  %v7016_v55 = vld [vmem:[#allocation5 + $0x900] sm:$0xf]  ;;  %v8851_v56 = vld [vmem:[#allocation5 + $0x90c] sm:$0xf0]  ;;  %v6889_v7 = vor.u32 %v8819_v54, %v6888_v52  ;;  %v8617_v25 = vld [vmem:[#allocation5 + $0x1c4] sm:$0xf]  ;;  %v9579_v34 = vor.u32 %v8554_v21, %v5854_v22 }
  0x78   :  { %2444 = vmatpush.bf16.msra.mxu1 %v7049_v37  ;;  %v7144_v60 = vld [vmem:[#allocation5 + $0xa00] sm:$0xf]  ;;  %v8883_v61 = vld [vmem:[#allocation5 + $0xa0c] sm:$0xf0]  ;;  %v7017_v12 = vor.u32 %v8851_v56, %v7016_v55  ;;  %v6090_v26 = vld [vmem:[#allocation5 + $0x1d0] sm:$0xf0] }
  0x79   :  { %2458 = vmatpush.bf16.msra.mxu2 %v7177_v38  ;;  %v7145_v13 = vor.u32 %v8883_v61, %v7144_v60  ;;  %v5860_v16 = vld [vmem:[#allocation2 + $0x28] sm:$0xf]  ;;  %v8649_v27 = vld [vmem:[#allocation5 + $0x2c4] sm:$0xf]  ;;  %v6218_v30 = vld [vmem:[#allocation5 + $0x2d0] sm:$0xf0]  ;;  %v6093_v37 = vor.u32 %v8617_v25, %v6090_v26 }
  0x7a   :  { %v8681_v31 = vld [vmem:[#allocation5 + $0x3c4] sm:$0xf]  ;;  %v6346_v32 = vld [vmem:[#allocation5 + $0x3d0] sm:$0xf0]  ;;  %v9577_v33 = vor.u32 %v8560_v20, %v5860_v16  ;;  %v6221_v38 = vor.u32 %v8649_v27, %v6218_v30 }
  0x7b   :  { %2472 = vmatpush.bf16.msra.mxu3 %v5901_v45  ;;  %2431 = vmatpush.bf16.msra.mxu0 %v6905_v53  ;;  %v6474_v36 = vld [vmem:[#allocation5 + $0x4d0] sm:$0xf0]  ;;  %v6349_v40 = vor.u32 %v8681_v31, %v6346_v32  ;;  %v8613_v41 = vld [vmem:[#allocation5 + $0x1a4] sm:$0xf] }
  0x7c   :  { %2445 = vmatpush.bf16.msra.mxu1 %v7033_v57  ;;  %v6074_v42 = vld [vmem:[#allocation5 + $0x1b0] sm:$0xf0]  ;;  %v8645_v45 = vld [vmem:[#allocation5 + $0x2a4] sm:$0xf]  ;;  %v6477_v46 = vor.u32 %v8713_v35, %v6474_v36 }
  0x7d   :  { %2459 = vmatpush.bf16.msra.mxu2 %v7161_v59  ;;  %v6202_v48 = vld [vmem:[#allocation5 + $0x2b0] sm:$0xf0]  ;;  %v8677_v49 = vld [vmem:[#allocation5 + $0x3a4] sm:$0xf]  ;;  %v6077_v53 = vor.u32 %v8613_v41, %v6074_v42 }
  0x7e   :  { %v6330_v50 = vld [vmem:[#allocation5 + $0x3b0] sm:$0xf0]  ;;  %v8709_v51 = vld [vmem:[#allocation5 + $0x4a4] sm:$0xf]  ;;  %v6205_v54 = vor.u32 %v8645_v45, %v6202_v48 }
  0x7f   :  { %2473 = vmatpush.bf16.msra.mxu3 %v5885_v63  ;;  %2432 = vmatpush.bf16.msra.mxu0 %v6889_v7  ;;  %v6458_v52 = vld [vmem:[#allocation5 + $0x4b0] sm:$0xf0]  ;;  %v6333_v55 = vor.u32 %v8677_v49, %v6330_v50  ;;  %v8609_v56 = vld [vmem:[#allocation5 + $0x184] sm:$0xf] }
  0x80   :  { %2446 = vmatpush.bf16.msra.mxu1 %v7017_v12  ;;  %v6058_v57 = vld [vmem:[#allocation5 + $0x190] sm:$0xf0]  ;;  %v8641_v59 = vld [vmem:[#allocation5 + $0x284] sm:$0xf]  ;;  %v6461_v60 = vor.u32 %v8709_v51, %v6458_v52 }
  0x81   :  { %2460 = vmatpush.bf16.msra.mxu2 %v7145_v13  ;;  %v6186_v61 = vld [vmem:[#allocation5 + $0x290] sm:$0xf0]  ;;  %v8673_v62 = vld [vmem:[#allocation5 + $0x384] sm:$0xf]  ;;  %v6061_v3 = vor.u32 %v8609_v56, %v6058_v57 }
  0x82   :  { %2433 = vmatmul.bf16.vlgmr.msra.gmra.mxu0 %v9575_v29  ;;  %v6314_v63 = vld [vmem:[#allocation5 + $0x390] sm:$0xf0]  ;;  %v8705_v0 = vld [vmem:[#allocation5 + $0x484] sm:$0xf]  ;;  %v6189_v4 = vor.u32 %v8641_v59, %v6186_v61 }
  0x83   :  { %2474 = vmatpush.bf16.msra.mxu3 %v5869_v18  ;;  %2481 = vmatpush.bf16.msrb.mxu0 %v6109_v19  ;;  %v6442_v2 = vld [vmem:[#allocation5 + $0x490] sm:$0xf0]  ;;  %v6317_v5 = vor.u32 %v8673_v62, %v6314_v63  ;;  %v8605_v6 = vld [vmem:[#allocation5 + $0x164] sm:$0xf] }
  0x84   :  { %2495 = vmatpush.bf16.msrb.mxu1 %v6237_v23  ;;  %2461 = vmatmul.bf16.vlgmr.msra.gmra.mxu2 %v9577_v33  ;;  %v6042_v7 = vld [vmem:[#allocation5 + $0x170] sm:$0xf0]  ;;  %v8637_v8 = vld [vmem:[#allocation5 + $0x264] sm:$0xf]  ;;  %v6445_v9 = vor.u32 %v8705_v0, %v6442_v2 }
  0x85   :  { %2509 = vmatpush.bf16.msrb.mxu2 %v6365_v24  ;;  %2447 = vmatmul.bf16.vlgmr.msra.gmra.mxu1 %v9579_v34  ;;  %v6170_v11 = vld [vmem:[#allocation5 + $0x270] sm:$0xf0]  ;;  %v8669_v12 = vld [vmem:[#allocation5 + $0x364] sm:$0xf]  ;;  %v6045_v16 = vor.u32 %v8605_v6, %v6042_v7 }
  0x86   :  { %2475 = vmatmul.bf16.vlgmr.msra.gmra.mxu3 %v9551_v58  ;;  %v6298_v13 = vld [vmem:[#allocation5 + $0x370] sm:$0xf0]  ;;  %v8701_v14 = vld [vmem:[#allocation5 + $0x464] sm:$0xf]  ;;  %v6173_v18 = vor.u32 %v8637_v8, %v6170_v11 }
  0x87   :  { %2523 = vmatpush.bf16.msrb.mxu3 %v6493_v28  ;;  %2482 = vmatpush.bf16.msrb.mxu0 %v6093_v37  ;;  %v6426_v15 = vld [vmem:[#allocation5 + $0x470] sm:$0xf0]  ;;  %v6301_v19 = vor.u32 %v8669_v12, %v6298_v13  ;;  %v8601_v20 = vld [vmem:[#allocation5 + $0x144] sm:$0xf] }
  0x88   :  { %2496 = vmatpush.bf16.msrb.mxu1 %v6221_v38  ;;  %v6026_v21 = vld [vmem:[#allocation5 + $0x150] sm:$0xf0]  ;;  %v8633_v22 = vld [vmem:[#allocation5 + $0x244] sm:$0xf]  ;;  %v6429_v23 = vor.u32 %v8701_v14, %v6426_v15 }
  0x89   :  { %2510 = vmatpush.bf16.msrb.mxu2 %v6349_v40  ;;  %v6154_v24 = vld [vmem:[#allocation5 + $0x250] sm:$0xf0]  ;;  %v8665_v25 = vld [vmem:[#allocation5 + $0x344] sm:$0xf]  ;;  %v6029_v30 = vor.u32 %v8601_v20, %v6026_v21 }
  0x8a   :  { %v6282_v26 = vld [vmem:[#allocation5 + $0x350] sm:$0xf0]  ;;  %v8697_v27 = vld [vmem:[#allocation5 + $0x444] sm:$0xf]  ;;  %v6157_v31 = vor.u32 %v8633_v22, %v6154_v24 }
  0x8b   :  { %2524 = vmatpush.bf16.msrb.mxu3 %v6477_v46  ;;  %2483 = vmatpush.bf16.msrb.mxu0 %v6077_v53  ;;  %v6410_v28 = vld [vmem:[#allocation5 + $0x450] sm:$0xf0]  ;;  %v6285_v32 = vor.u32 %v8665_v25, %v6282_v26  ;;  %v8597_v35 = vld [vmem:[#allocation5 + $0x124] sm:$0xf] }
  0x8c   :  { %2497 = vmatpush.bf16.msrb.mxu1 %v6205_v54  ;;  %v6010_v36 = vld [vmem:[#allocation5 + $0x130] sm:$0xf0]  ;;  %v8629_v37 = vld [vmem:[#allocation5 + $0x224] sm:$0xf]  ;;  %v6413_v38 = vor.u32 %v8697_v27, %v6410_v28 }
  0x8d   :  { %2511 = vmatpush.bf16.msrb.mxu2 %v6333_v55  ;;  %v6138_v40 = vld [vmem:[#allocation5 + $0x230] sm:$0xf0]  ;;  %v8661_v41 = vld [vmem:[#allocation5 + $0x324] sm:$0xf]  ;;  %v6013_v48 = vor.u32 %v8597_v35, %v6010_v36 }
  0x8e   :  { %v6266_v42 = vld [vmem:[#allocation5 + $0x330] sm:$0xf0]  ;;  %v8693_v45 = vld [vmem:[#allocation5 + $0x424] sm:$0xf]  ;;  %v6141_v51 = vor.u32 %v8629_v37, %v6138_v40 }
  0x8f   :  { %2525 = vmatpush.bf16.msrb.mxu3 %v6461_v60  ;;  %2484 = vmatpush.bf16.msrb.mxu0 %v6061_v3  ;;  %v6394_v46 = vld [vmem:[#allocation5 + $0x430] sm:$0xf0]  ;;  %v8593_v49 = vld [vmem:[#allocation5 + $0x104] sm:$0xf]  ;;  %v6269_v52 = vor.u32 %v8661_v41, %v6266_v42 }
  0x90   :  { %2498 = vmatpush.bf16.msrb.mxu1 %v6189_v4  ;;  %v5994_v50 = vld [vmem:[#allocation5 + $0x110] sm:$0xf0]  ;;  %v8625_v53 = vld [vmem:[#allocation5 + $0x204] sm:$0xf]  ;;  %v6397_v56 = vor.u32 %v8693_v45, %v6394_v46 }
  0x91   :  { %2512 = vmatpush.bf16.msrb.mxu2 %v6317_v5  ;;  %v6122_v54 = vld [vmem:[#allocation5 + $0x210] sm:$0xf0]  ;;  %v8657_v55 = vld [vmem:[#allocation5 + $0x304] sm:$0xf]  ;;  %v5997_v0 = vor.u32 %v8593_v49, %v5994_v50 }
  0x92   :  { %v6250_v57 = vld [vmem:[#allocation5 + $0x310] sm:$0xf0]  ;;  %v8689_v59 = vld [vmem:[#allocation5 + $0x404] sm:$0xf]  ;;  %v6125_v5 = vor.u32 %v8625_v53, %v6122_v54 }
  0x93   :  { %2526 = vmatpush.bf16.msrb.mxu3 %v6445_v9  ;;  %2485 = vmatpush.bf16.msrb.mxu0 %v6045_v16  ;;  %v6378_v60 = vld [vmem:[#allocation5 + $0x410] sm:$0xf0]  ;;  %v8749_v61 = vld [vmem:[#allocation5 + $0x5e4] sm:$0xf]  ;;  %v6253_v6 = vor.u32 %v8657_v55, %v6250_v57 }
  0x94   :  { %2499 = vmatpush.bf16.msrb.mxu1 %v6173_v18  ;;  %v6618_v62 = vld [vmem:[#allocation5 + $0x5f0] sm:$0xf0]  ;;  %v8781_v63 = vld [vmem:[#allocation5 + $0x6e4] sm:$0xf]  ;;  %v6381_v9 = vor.u32 %v8689_v59, %v6378_v60 }
  0x95   :  { %2513 = vmatpush.bf16.msrb.mxu2 %v6301_v19  ;;  %v6746_v2 = vld [vmem:[#allocation5 + $0x6f0] sm:$0xf0]  ;;  %v8813_v3 = vld [vmem:[#allocation5 + $0x7e4] sm:$0xf]  ;;  %v6621_v11 = vor.u32 %v8749_v61, %v6618_v62 }
  0x96   :  { %v6874_v4 = vld [vmem:[#allocation5 + $0x7f0] sm:$0xf0]  ;;  %v8845_v7 = vld [vmem:[#allocation5 + $0x8e4] sm:$0xf]  ;;  %v6749_v12 = vor.u32 %v8781_v63, %v6746_v2 }
  0x97   :  { %2527 = vmatpush.bf16.msrb.mxu3 %v6429_v23  ;;  %2486 = vmatpush.bf16.msrb.mxu0 %v6029_v30  ;;  %v7002_v8 = vld [vmem:[#allocation5 + $0x8f0] sm:$0xf0]  ;;  %v6877_v13 = vor.u32 %v8813_v3, %v6874_v4  ;;  %v8745_v14 = vld [vmem:[#allocation5 + $0x5c4] sm:$0xf] }
  0x98   :  { %2500 = vmatpush.bf16.msrb.mxu1 %v6157_v31  ;;  %v6602_v15 = vld [vmem:[#allocation5 + $0x5d0] sm:$0xf0]  ;;  %v8777_v16 = vld [vmem:[#allocation5 + $0x6c4] sm:$0xf]  ;;  %v7005_v18 = vor.u32 %v8845_v7, %v7002_v8 }
  0x99   :  { %2514 = vmatpush.bf16.msrb.mxu2 %v6285_v32  ;;  %v6730_v19 = vld [vmem:[#allocation5 + $0x6d0] sm:$0xf0]  ;;  %v8809_v20 = vld [vmem:[#allocation5 + $0x7c4] sm:$0xf]  ;;  %v6605_v24 = vor.u32 %v8745_v14, %v6602_v15 }
  0x9a   :  { %v6858_v21 = vld [vmem:[#allocation5 + $0x7d0] sm:$0xf0]  ;;  %v8841_v22 = vld [vmem:[#allocation5 + $0x8c4] sm:$0xf]  ;;  %v6733_v25 = vor.u32 %v8777_v16, %v6730_v19 }
  0x9b   :  { %2528 = vmatpush.bf16.msrb.mxu3 %v6413_v38  ;;  %2487 = vmatpush.bf16.msrb.mxu0 %v6013_v48  ;;  %v6986_v23 = vld [vmem:[#allocation5 + $0x8d0] sm:$0xf0]  ;;  %v6861_v26 = vor.u32 %v8809_v20, %v6858_v21  ;;  %v8741_v27 = vld [vmem:[#allocation5 + $0x5a4] sm:$0xf] }
  0x9c   :  { %2501 = vmatpush.bf16.msrb.mxu1 %v6141_v51  ;;  %v6586_v28 = vld [vmem:[#allocation5 + $0x5b0] sm:$0xf0]  ;;  %v8773_v30 = vld [vmem:[#allocation5 + $0x6a4] sm:$0xf]  ;;  %v6989_v31 = vor.u32 %v8841_v22, %v6986_v23 }
  0x9d   :  { %2515 = vmatpush.bf16.msrb.mxu2 %v6269_v52  ;;  %v6714_v32 = vld [vmem:[#allocation5 + $0x6b0] sm:$0xf0]  ;;  %v8805_v35 = vld [vmem:[#allocation5 + $0x7a4] sm:$0xf]  ;;  %v6589_v40 = vor.u32 %v8741_v27, %v6586_v28 }
  0x9e   :  { %v6842_v36 = vld [vmem:[#allocation5 + $0x7b0] sm:$0xf0]  ;;  %v8837_v37 = vld [vmem:[#allocation5 + $0x8a4] sm:$0xf]  ;;  %v6717_v41 = vor.u32 %v8773_v30, %v6714_v32 }
  0x9f   :  { %2529 = vmatpush.bf16.msrb.mxu3 %v6397_v56  ;;  %2488 = vmatpush.bf16.msrb.mxu0 %v5997_v0  ;;  %v6970_v38 = vld [vmem:[#allocation5 + $0x8b0] sm:$0xf0]  ;;  %v6845_v42 = vor.u32 %v8805_v35, %v6842_v36  ;;  %v8737_v45 = vld [vmem:[#allocation5 + $0x584] sm:$0xf] }
  0xa0   :  { %2502 = vmatpush.bf16.msrb.mxu1 %v6125_v5  ;;  %v6570_v46 = vld [vmem:[#allocation5 + $0x590] sm:$0xf0]  ;;  %v8769_v48 = vld [vmem:[#allocation5 + $0x684] sm:$0xf]  ;;  %v6973_v49 = vor.u32 %v8837_v37, %v6970_v38 }
  0xa1   :  { %2516 = vmatpush.bf16.msrb.mxu2 %v6253_v6  ;;  %v6698_v50 = vld [vmem:[#allocation5 + $0x690] sm:$0xf0]  ;;  %v8801_v51 = vld [vmem:[#allocation5 + $0x784] sm:$0xf]  ;;  %v6573_v55 = vor.u32 %v8737_v45, %v6570_v46 }
  0xa2   :  { %2489 = vmatmul.bf16.vlgmr.msrb.gmra.mxu0 %v9557_v10  ;;  %v6826_v52 = vld [vmem:[#allocation5 + $0x790] sm:$0xf0]  ;;  %v8833_v53 = vld [vmem:[#allocation5 + $0x884] sm:$0xf]  ;;  %v6701_v56 = vor.u32 %v8769_v48, %v6698_v50 }
  0xa3   :  { %2530 = vmatpush.bf16.msrb.mxu3 %v6381_v9  ;;  %2537 = vmatpush.bf16.msra.mxu0 %v6621_v11  ;;  %v6954_v54 = vld [vmem:[#allocation5 + $0x890] sm:$0xf0]  ;;  %v6829_v57 = vor.u32 %v8801_v51, %v6826_v52  ;;  %v8733_v59 = vld [vmem:[#allocation5 + $0x564] sm:$0xf] }
  0xa4   :  { %2551 = vmatpush.bf16.msra.mxu1 %v6749_v12  ;;  %2517 = vmatmul.bf16.vlgmr.msrb.gmra.mxu2 %v9559_v17  ;;  %v6554_v60 = vld [vmem:[#allocation5 + $0x570] sm:$0xf0]  ;;  %v8765_v61 = vld [vmem:[#allocation5 + $0x664] sm:$0xf]  ;;  %v6957_v62 = vor.u32 %v8833_v53, %v6954_v54 }
  0xa5   :  { %2565 = vmatpush.bf16.msra.mxu2 %v6877_v13  ;;  %2503 = vmatmul.bf16.vlgmr.msrb.gmra.mxu1 %v9553_v1  ;;  %v6682_v63 = vld [vmem:[#allocation5 + $0x670] sm:$0xf0]  ;;  %v8797_v0 = vld [vmem:[#allocation5 + $0x764] sm:$0xf]  ;;  %v6557_v5 = vor.u32 %v8733_v59, %v6554_v60  ;;  %v6112_v60 = vld [vmem:[#allocation5 + $0x1e8] sm:$0xf] }
  0xa6   :  { %2531 = vmatmul.bf16.vlgmr.msrb.gmra.mxu3 %v9563_v39  ;;  %v6810_v2 = vld [vmem:[#allocation5 + $0x770] sm:$0xf0]  ;;  %v8829_v3 = vld [vmem:[#allocation5 + $0x864] sm:$0xf]  ;;  %v6685_v6 = vor.u32 %v8765_v61, %v6682_v63  ;;  %v8624_v61 = vld [vmem:[#allocation5 + $0x1f4] sm:$0xf0] }
  0xa7   :  { %2579 = vmatpush.bf16.msra.mxu3 %v7005_v18  ;;  %2538 = vmatpush.bf16.msra.mxu0 %v6605_v24  ;;  %v6938_v4 = vld [vmem:[#allocation5 + $0x870] sm:$0xf0]  ;;  %v6813_v7 = vor.u32 %v8797_v0, %v6810_v2  ;;  %v8729_v8 = vld [vmem:[#allocation5 + $0x544] sm:$0xf] }
  0xa8   :  { %2552 = vmatpush.bf16.msra.mxu1 %v6733_v25  ;;  %v6538_v9 = vld [vmem:[#allocation5 + $0x550] sm:$0xf0]  ;;  %v8761_v11 = vld [vmem:[#allocation5 + $0x644] sm:$0xf]  ;;  %v6941_v12 = vor.u32 %v8829_v3, %v6938_v4 }
  0xa9   :  { %2566 = vmatpush.bf16.msra.mxu2 %v6861_v26  ;;  %v6666_v13 = vld [vmem:[#allocation5 + $0x650] sm:$0xf0]  ;;  %v8793_v14 = vld [vmem:[#allocation5 + $0x744] sm:$0xf]  ;;  %v6541_v19 = vor.u32 %v8729_v8, %v6538_v9  ;;  %v5968_v9 = vld [vmem:[#allocation5 + $0xc8] sm:$0xf] }
  0xaa   :  { %v6794_v15 = vld [vmem:[#allocation5 + $0x750] sm:$0xf0]  ;;  %v8825_v16 = vld [vmem:[#allocation5 + $0x844] sm:$0xf]  ;;  %v6669_v20 = vor.u32 %v8761_v11, %v6666_v13  ;;  %v8588_v11 = vld [vmem:[#allocation5 + $0xd4] sm:$0xf0] }
  0xab   :  { %2580 = vmatpush.bf16.msra.mxu3 %v6989_v31  ;;  %2539 = vmatpush.bf16.msra.mxu0 %v6589_v40  ;;  %v6922_v18 = vld [vmem:[#allocation5 + $0x850] sm:$0xf0]  ;;  %v6797_v21 = vor.u32 %v8793_v14, %v6794_v15  ;;  %v8725_v22 = vld [vmem:[#allocation5 + $0x524] sm:$0xf]  ;;  %v8620_v13 = vld [vmem:[#allocation5 + $0x1d4] sm:$0xf0] }
  0xac   :  { %2553 = vmatpush.bf16.msra.mxu1 %v6717_v41  ;;  %v6522_v23 = vld [vmem:[#allocation5 + $0x530] sm:$0xf0]  ;;  %v8757_v24 = vld [vmem:[#allocation5 + $0x624] sm:$0xf]  ;;  %v6925_v25 = vor.u32 %v8825_v16, %v6922_v18  ;;  %v5969_v18 = vor.u32 %v8588_v11, %v5968_v9 }
  0xad   :  { %2567 = vmatpush.bf16.msra.mxu2 %v6845_v42  ;;  %v6650_v26 = vld [vmem:[#allocation5 + $0x630] sm:$0xf0]  ;;  %v8789_v27 = vld [vmem:[#allocation5 + $0x724] sm:$0xf]  ;;  %v6525_v32 = vor.u32 %v8725_v22, %v6522_v23 }
  0xae   :  { %v6778_v28 = vld [vmem:[#allocation5 + $0x730] sm:$0xf0]  ;;  %v8821_v30 = vld [vmem:[#allocation5 + $0x824] sm:$0xf]  ;;  %v6653_v37 = vor.u32 %v8757_v24, %v6650_v26  ;;  %v5952_v24 = vld [vmem:[#allocation5 + $0xa8] sm:$0xf] }
  0xaf   :  { %2581 = vmatpush.bf16.msra.mxu3 %v6973_v49  ;;  %2540 = vmatpush.bf16.msra.mxu0 %v6573_v55  ;;  %v6906_v31 = vld [vmem:[#allocation5 + $0x830] sm:$0xf0]  ;;  %v8721_v35 = vld [vmem:[#allocation5 + $0x504] sm:$0xf]  ;;  %v6781_v38 = vor.u32 %v8789_v27, %v6778_v28  ;;  %v5984_v55 = vld [vmem:[#allocation5 + $0xe8] sm:$0xf] }
  0xb0   :  { %2554 = vmatpush.bf16.msra.mxu1 %v6701_v56  ;;  %v6506_v36 = vld [vmem:[#allocation5 + $0x510] sm:$0xf0]  ;;  %v8753_v40 = vld [vmem:[#allocation5 + $0x604] sm:$0xf]  ;;  %v6909_v45 = vor.u32 %v8821_v30, %v6906_v31  ;;  %v8592_v56 = vld [vmem:[#allocation5 + $0xf4] sm:$0xf0] }
  0xb1   :  { %2568 = vmatpush.bf16.msra.mxu2 %v6829_v57  ;;  %v6634_v41 = vld [vmem:[#allocation5 + $0x610] sm:$0xf0]  ;;  %v8785_v42 = vld [vmem:[#allocation5 + $0x704] sm:$0xf]  ;;  %v6509_v53 = vor.u32 %v8721_v35, %v6506_v36  ;;  %v5985_v3 = vor.u32 %v8592_v56, %v5984_v55  ;;  %v6080_v26 = vld [vmem:[#allocation5 + $0x1a8] sm:$0xf] }
  0xb2   :  { %v6762_v46 = vld [vmem:[#allocation5 + $0x710] sm:$0xf0]  ;;  %v8817_v48 = vld [vmem:[#allocation5 + $0x804] sm:$0xf]  ;;  %v6637_v57 = vor.u32 %v8753_v40, %v6634_v41  ;;  %v8616_v27 = vld [vmem:[#allocation5 + $0x1b4] sm:$0xf0] }
  0xb3   :  { %2582 = vmatpush.bf16.msra.mxu3 %v6957_v62  ;;  %2541 = vmatpush.bf16.msra.mxu0 %v6557_v5  ;;  %v6890_v49 = vld [vmem:[#allocation5 + $0x810] sm:$0xf0]  ;;  %v8877_v50 = vld [vmem:[#allocation5 + $0x9e4] sm:$0xf]  ;;  %v6765_v59 = vor.u32 %v8785_v42, %v6762_v46  ;;  %v5936_v41 = vld [vmem:[#allocation5 + $0x88] sm:$0xf] }
  0xb4   :  { %2555 = vmatpush.bf16.msra.mxu1 %v6685_v6  ;;  %v7130_v51 = vld [vmem:[#allocation5 + $0x9f0] sm:$0xf0]  ;;  %v8909_v52 = vld [vmem:[#allocation5 + $0xae4] sm:$0xf]  ;;  %v6893_v62 = vor.u32 %v8817_v48, %v6890_v49  ;;  %v8580_v42 = vld [vmem:[#allocation5 + $0x94] sm:$0xf0] }
  0xb5   :  { %2569 = vmatpush.bf16.msra.mxu2 %v6813_v7  ;;  %v7258_v54 = vld [vmem:[#allocation5 + $0xaf0] sm:$0xf0]  ;;  %v7133_v63 = vor.u32 %v8877_v50, %v7130_v51  ;;  %v8873_v0 = vld [vmem:[#allocation5 + $0x9c4] sm:$0xf]  ;;  %v6113_v7 = vor.u32 %v8624_v61, %v6112_v60  ;;  %v8612_v46 = vld [vmem:[#allocation5 + $0x194] sm:$0xf0] }
  0xb6   :  { %v7261_v2 = vor.u32 %v8909_v52, %v7258_v54  ;;  %v7114_v4 = vld [vmem:[#allocation5 + $0x9d0] sm:$0xf0]  ;;  %v8905_v5 = vld [vmem:[#allocation5 + $0xac4] sm:$0xf]  ;;  %v5937_v52 = vor.u32 %v8580_v42, %v5936_v41  ;;  %v8576_v60 = vld [vmem:[#allocation5 + $0x74] sm:$0xf0] }
  0xb7   :  { %2583 = vmatpush.bf16.msra.mxu3 %v6941_v12  ;;  %2542 = vmatpush.bf16.msra.mxu0 %v6541_v19  ;;  %v9589_v6 = vld [vmem:[#allocation7] sm:$0x77]  ;;  %v7242_v8 = vld [vmem:[#allocation5 + $0xad0] sm:$0xf0]  ;;  %v6096_v12 = vld [vmem:[#allocation5 + $0x1c8] sm:$0xf]  ;;  %v7117_v14 = vor.u32 %v8873_v0, %v7114_v4 }
  0xb8   :  { %2556 = vmatpush.bf16.msra.mxu1 %v6669_v20  ;;  %v485_v15 = vperm.slane %v9589_v6, 0  ;;  %v7245_v16 = vor.u32 %v8905_v5, %v7242_v8  ;;  %v8869_v19 = vld [vmem:[#allocation5 + $0x9a4] sm:$0xf]  ;;  %v7098_v20 = vld [vmem:[#allocation5 + $0x9b0] sm:$0xf0]  ;;  %v6097_v22 = vor.u32 %v8620_v13, %v6096_v12 }
  0xb9   :  { %2570 = vmatpush.bf16.msra.mxu2 %v6797_v21  ;;  %v8901_v21 = vld [vmem:[#allocation5 + $0xaa4] sm:$0xf]  ;;  %v7226_v23 = vld [vmem:[#allocation5 + $0xab0] sm:$0xf0]  ;;  %v7101_v28 = vor.u32 %v8869_v19, %v7098_v20  ;;  %v6048_v61 = vld [vmem:[#allocation5 + $0x168] sm:$0xf] }
  0xba   :  { %v9596_v30 = vperm.slane %v485_v15, 0  ;;  %v7229_v31 = vor.u32 %v8901_v21, %v7226_v23  ;;  %v8865_v35 = vld [vmem:[#allocation5 + $0x984] sm:$0xf]  ;;  %v7082_v36 = vld [vmem:[#allocation5 + $0x990] sm:$0xf0] }
  0xbb   :  { %2584 = vmatpush.bf16.msra.mxu3 %v6925_v25  ;;  %2543 = vmatpush.bf16.msra.mxu0 %v6525_v32  ;;  %v8584_v25 = vld [vmem:[#allocation5 + $0xb4] sm:$0xf0]  ;;  %v7210_v40 = vld [vmem:[#allocation5 + $0xa90] sm:$0xf0]  ;;  %v7085_v49 = vor.u32 %v8865_v35, %v7082_v36  ;;  %v8893_v55 = vld [vmem:[#allocation5 + $0xa64] sm:$0xf] }
  0xbc   :  { %2557 = vmatpush.bf16.msra.mxu1 %v6653_v37  ;;  %v5953_v32 = vor.u32 %v8584_v25, %v5952_v24  ;;  %v8897_v37 = vld [vmem:[#allocation5 + $0xa84] sm:$0xf]  ;;  %v7066_v54 = vld [vmem:[#allocation5 + $0x970] sm:$0xf0]  ;;  %v5904_v12 = vld [vmem:[#allocation5 + $0x48] sm:$0xf] }
  0xbd   :  { %2571 = vmatpush.bf16.msra.mxu2 %v6781_v38  ;;  %v6081_v38 = vor.u32 %v8616_v27, %v6080_v26  ;;  %v7213_v51 = vor.u32 %v8897_v37, %v7210_v40  ;;  %v8857_v5 = vld [vmem:[#allocation5 + $0x944] sm:$0xf]  ;;  %v7178_v11 = vld [vmem:[#allocation5 + $0xa50] sm:$0xf0]  ;;  %v8572_v13 = vld [vmem:[#allocation5 + $0x54] sm:$0xf0] }
  0xbe   :  { %v2322_v48 = vpop.f32.mrf.mxu0  ;;  %v8889_v8 = vld [vmem:[#allocation5 + $0xa44] sm:$0xf]  ;;  %v6032_v15 = vld [vmem:[#allocation5 + $0x148] sm:$0xf]  ;;  %v5905_v21 = vor.u32 %v8572_v13, %v5904_v12  ;;  %v7034_v23 = vld [vmem:[#allocation5 + $0x930] sm:$0xf0] }
  0xbf   :  { %2585 = vmatpush.bf16.msra.mxu3 %v6909_v45  ;;  %2544 = vmatpush.bf16.msra.mxu0 %v6509_v53  ;;  %v6064_v45 = vld [vmem:[#allocation5 + $0x188] sm:$0xf]  ;;  %v2323_v50 = vadd.f32 %v2322_v48, %v9596_v30  ;;  %v8861_v53 = vld [vmem:[#allocation5 + $0x964] sm:$0xf]  ;;  %v7181_v20 = vor.u32 %v8889_v8, %v7178_v11  ;;  %v7162_v26 = vld [vmem:[#allocation5 + $0xa30] sm:$0xf0] }
  0xc0   :  { %2558 = vmatpush.bf16.msra.mxu1 %v6637_v57  ;;  %v6065_v56 = vor.u32 %v8612_v46, %v6064_v45  ;;  %v7194_v57 = vld [vmem:[#allocation5 + $0xa70] sm:$0xf0]  ;;  %v7069_v0 = vor.u32 %v8861_v53, %v7066_v54  ;;  %v8885_v24 = vld [vmem:[#allocation5 + $0xa24] sm:$0xf]  ;;  %v5888_v27 = vld [vmem:[#allocation5 + $0x28] sm:$0xf] }
  0xc1   :  { %2572 = vmatpush.bf16.msra.mxu2 %v6765_v59  ;;  %v5920_v59 = vld [vmem:[#allocation5 + $0x68] sm:$0xf]  ;;  %v8600_v35 = vld [vmem:[#allocation5 + $0x134] sm:$0xf0]  ;;  %v7018_v40 = vld [vmem:[#allocation5 + $0x910] sm:$0xf0]  ;;  %v7165_v41 = vor.u32 %v8885_v24, %v7162_v26 }
  0xc2   :  { %2545 = vmatmul.bf16.vlgmr.msra.gmra.mxu0 %v9567_v44  ;;  %v5921_v4 = vor.u32 %v8576_v60, %v5920_v59  ;;  %v8881_v45 = vld [vmem:[#allocation5 + $0xa04] sm:$0xf]  ;;  %v7146_v46 = vld [vmem:[#allocation5 + $0xa10] sm:$0xf0]  ;;  %v5872_v48 = vld [vmem:[#allocation5 + $0x8] sm:$0xf] }
  0xc3   :  { %2586 = vmatpush.bf16.msra.mxu3 %v6893_v62  ;;  %2593 = vmatpush.bf16.msrb.mxu0 %v7133_v63  ;;  %v8608_v62 = vld [vmem:[#allocation5 + $0x174] sm:$0xf0]  ;;  %v2336_v63 = vpop.f32.mrf.mxu1  ;;  %v6240_v53 = vld [vmem:[#allocation5 + $0x2e8] sm:$0xf] }
  0xc4   :  { %2607 = vmatpush.bf16.msrb.mxu1 %v7261_v2  ;;  %2573 = vmatmul.bf16.vlgmr.msra.gmra.mxu2 %v9569_v47  ;;  %v2337_v2 = vadd.f32 %v2336_v63, %v2323_v50  ;;  %v6049_v9 = vor.u32 %v8608_v62, %v6048_v61  ;;  %v8564_v50 = vld [vmem:[#allocation5 + $0x14] sm:$0xf0]  ;;  %v6496_v59 = vld [vmem:[#allocation5 + $0x4e8] sm:$0xf]  ;;  %v7149_v61 = vor.u32 %v8881_v45, %v7146_v46 }
  0xc5   :  { %2621 = vmatpush.bf16.msrb.mxu2 %v5985_v3  ;;  %2559 = vmatmul.bf16.vlgmr.msra.gmra.mxu1 %v9565_v43  ;;  %v7197_v3 = vor.u32 %v8893_v55, %v7194_v57  ;;  %v8656_v54 = vld [vmem:[#allocation5 + $0x2f4] sm:$0xf0]  ;;  %v6368_v55 = vld [vmem:[#allocation5 + $0x3e8] sm:$0xf]  ;;  %v5873_v62 = vor.u32 %v8564_v50, %v5872_v48 }
  0xc6   :  { %2587 = vmatmul.bf16.vlgmr.msra.gmra.mxu3 %v9575_v29  ;;  %v8688_v57 = vld [vmem:[#allocation5 + $0x3f4] sm:$0xf0]  ;;  %v6624_v63 = vld [vmem:[#allocation5 + $0x5e8] sm:$0xf] }
  0xc7   :  { %2635 = vmatpush.bf16.msrb.mxu3 %v6113_v7  ;;  %2594 = vmatpush.bf16.msrb.mxu0 %v7117_v14  ;;  %v7050_v7 = vld [vmem:[#allocation5 + $0x950] sm:$0xf0]  ;;  %v8720_v60 = vld [vmem:[#allocation5 + $0x4f4] sm:$0xf0]  ;;  %v6224_v8 = vld [vmem:[#allocation5 + $0x2c8] sm:$0xf] }
  0xc8   :  { %2608 = vmatpush.bf16.msrb.mxu1 %v7245_v16  ;;  %v8604_v16 = vld [vmem:[#allocation5 + $0x154] sm:$0xf0]  ;;  %v7053_v19 = vor.u32 %v8857_v5, %v7050_v7  ;;  %v6497_v5 = vor.u32 %v8720_v60, %v6496_v59  ;;  %v9601_v7 = vpop.f32.mrf.mxu0  ;;  %v6352_v11 = vld [vmem:[#allocation5 + $0x3c8] sm:$0xf] }
  0xc9   :  { %2622 = vmatpush.bf16.msrb.mxu2 %v5969_v18  ;;  %v6033_v25 = vor.u32 %v8604_v16, %v6032_v15  ;;  %v8684_v13 = vld [vmem:[#allocation5 + $0x3d4] sm:$0xf0]  ;;  %v6608_v16 = vld [vmem:[#allocation5 + $0x5c8] sm:$0xf] }
  0xca   :  { %v8716_v15 = vld [vmem:[#allocation5 + $0x4d4] sm:$0xf0]  ;;  %v6320_v46 = vld [vmem:[#allocation5 + $0x388] sm:$0xf] }
  0xcb   :  { %2636 = vmatpush.bf16.msrb.mxu3 %v6097_v22  ;;  %2595 = vmatpush.bf16.msrb.mxu0 %v7101_v28  ;;  %v8853_v22 = vld [vmem:[#allocation5 + $0x924] sm:$0xf]  ;;  %v8568_v28 = vld [vmem:[#allocation5 + $0x34] sm:$0xf0] }
  0xcc   :  { %2609 = vmatpush.bf16.msrb.mxu1 %v7229_v31  ;;  %v7037_v37 = vor.u32 %v8853_v22, %v7034_v23  ;;  %v5889_v42 = vor.u32 %v8568_v28, %v5888_v27  ;;  %v6208_v23 = vld [vmem:[#allocation5 + $0x2a8] sm:$0xf]  ;;  %v8648_v24 = vld [vmem:[#allocation5 + $0x2b4] sm:$0xf0] }
  0xcd   :  { %2623 = vmatpush.bf16.msrb.mxu2 %v5953_v32  ;;  %v2350_v14 = vpop.f32.mrf.mxu2  ;;  %v6016_v32 = vld [vmem:[#allocation5 + $0x128] sm:$0xf]  ;;  %v8680_v27 = vld [vmem:[#allocation5 + $0x3b4] sm:$0xf0] }
  0xce   :  { %v2351_v18 = vadd.f32 %v2350_v14, %v2337_v2  ;;  %v6480_v14 = vld [vmem:[#allocation5 + $0x4c8] sm:$0xf]  ;;  %v8644_v45 = vld [vmem:[#allocation5 + $0x294] sm:$0xf0] }
  0xcf   :  { %2637 = vmatpush.bf16.msrb.mxu3 %v6081_v38  ;;  %2596 = vmatpush.bf16.msrb.mxu0 %v7085_v49  ;;  %v8849_v38 = vld [vmem:[#allocation5 + $0x904] sm:$0xf]  ;;  %v6017_v49 = vor.u32 %v8600_v35, %v6016_v32  ;;  %v6481_v22 = vor.u32 %v8716_v15, %v6480_v14  ;;  %v6464_v28 = vld [vmem:[#allocation5 + $0x4a8] sm:$0xf]  ;;  %v8744_v35 = vld [vmem:[#allocation5 + $0x5b4] sm:$0xf0] }
  0xd0   :  { %2610 = vmatpush.bf16.msrb.mxu1 %v7213_v51  ;;  %v6000_v51 = vld [vmem:[#allocation5 + $0x108] sm:$0xf]  ;;  %v8676_v50 = vld [vmem:[#allocation5 + $0x394] sm:$0xf0] }
  0xd1   :  { %2624 = vmatpush.bf16.msrb.mxu2 %v5937_v52  ;;  %v2364_v31 = vpop.f32.mrf.mxu3  ;;  %v8596_v52 = vld [vmem:[#allocation5 + $0x114] sm:$0xf0]  ;;  %v6592_v32 = vld [vmem:[#allocation5 + $0x5a8] sm:$0xf]  ;;  %v6321_v59 = vor.u32 %v8676_v50, %v6320_v46 }
  0xd2   :  { %v9599_v36 = vadd.f32 %v2364_v31, %v2351_v18  ;;  %v6001_v2 = vor.u32 %v8596_v52, %v6000_v51  ;;  %v8748_v18 = vld [vmem:[#allocation5 + $0x5d4] sm:$0xf0]  ;;  %v6593_v48 = vor.u32 %v8744_v35, %v6592_v32  ;;  %v6448_v51 = vld [vmem:[#allocation5 + $0x488] sm:$0xf] }
  0xd3   :  { %2638 = vmatpush.bf16.msrb.mxu3 %v6065_v56  ;;  %2597 = vmatpush.bf16.msrb.mxu0 %v7069_v0  ;;  %v7021_v56 = vor.u32 %v8849_v38, %v7018_v40  ;;  %v8752_v0 = vld [vmem:[#allocation5 + $0x5f4] sm:$0xf0]  ;;  %v6609_v26 = vor.u32 %v8748_v18, %v6608_v16  ;;  %v6160_v14 = vld [vmem:[#allocation5 + $0x248] sm:$0xf] }
  0xd4   :  { %2611 = vmatpush.bf16.msrb.mxu1 %v7197_v3  ;;  %v6241_v3 = vor.u32 %v8656_v54, %v6240_v53  ;;  %v6625_v12 = vor.u32 %v8752_v0, %v6624_v63  ;;  %v8712_v31 = vld [vmem:[#allocation5 + $0x4b4] sm:$0xf0]  ;;  %v6576_v54 = vld [vmem:[#allocation5 + $0x588] sm:$0xf] }
  0xd5   :  { %2625 = vmatpush.bf16.msrb.mxu2 %v5921_v4  ;;  %v6369_v4 = vor.u32 %v8688_v57, %v6368_v55  ;;  %v9608_v38 = vpop.f32.mrf.mxu2  ;;  %v8708_v52 = vld [vmem:[#allocation5 + $0x494] sm:$0xf0]  ;;  %v6304_v0 = vld [vmem:[#allocation5 + $0x368] sm:$0xf] }
  0xd6   :  { %v8740_v55 = vld [vmem:[#allocation5 + $0x594] sm:$0xf0]  ;;  %v6449_v60 = vor.u32 %v8708_v52, %v6448_v51  ;;  %v6288_v16 = vld [vmem:[#allocation5 + $0x348] sm:$0xf] }
  0xd7   :  { %2639 = vmatpush.bf16.msrb.mxu3 %v6049_v9  ;;  %2598 = vmatpush.bf16.msrb.mxu0 %v7053_v19  ;;  %v8652_v9 = vld [vmem:[#allocation5 + $0x2d4] sm:$0xf0]  ;;  %v9603_v19 = vpop.f32.mrf.mxu1  ;;  %v6400_v46 = vld [vmem:[#allocation5 + $0x428] sm:$0xf] }
  0xd8   :  { %2612 = vmatpush.bf16.msrb.mxu1 %v7181_v20  ;;  %v6225_v20 = vor.u32 %v8652_v9, %v6224_v8  ;;  %v8640_v63 = vld [vmem:[#allocation5 + $0x274] sm:$0xf0]  ;;  %v6560_v9 = vld [vmem:[#allocation5 + $0x568] sm:$0xf] }
  0xd9   :  { %2626 = vmatpush.bf16.msrb.mxu2 %v5905_v21  ;;  %v6353_v21 = vor.u32 %v8684_v13, %v6352_v11  ;;  %v8704_v8 = vld [vmem:[#allocation5 + $0x474] sm:$0xf0]  ;;  %v6528_v50 = vld [vmem:[#allocation5 + $0x528] sm:$0xf] }
  0xda   :  { %v8736_v11 = vld [vmem:[#allocation5 + $0x574] sm:$0xf0] }
  0xdb   :  { %2640 = vmatpush.bf16.msrb.mxu3 %v6033_v25  ;;  %2599 = vmatpush.bf16.msrb.mxu0 %v7037_v37  ;;  %v6336_v25 = vld [vmem:[#allocation5 + $0x3a8] sm:$0xf]  ;;  %v6209_v37 = vor.u32 %v8648_v24, %v6208_v23  ;;  %v8636_v15 = vld [vmem:[#allocation5 + $0x254] sm:$0xf0]  ;;  %v6561_v18 = vor.u32 %v8736_v11, %v6560_v9 }
  0xdc   :  { %2613 = vmatpush.bf16.msrb.mxu1 %v7165_v41  ;;  %v6337_v40 = vor.u32 %v8680_v27, %v6336_v25  ;;  %v6465_v41 = vor.u32 %v8712_v31, %v6464_v28  ;;  %v8700_v23 = vld [vmem:[#allocation5 + $0x454] sm:$0xf0]  ;;  %v6544_v25 = vld [vmem:[#allocation5 + $0x548] sm:$0xf]  ;;  %v6161_v28 = vor.u32 %v8636_v15, %v6160_v14 }
  0xdd   :  { %2627 = vmatpush.bf16.msrb.mxu2 %v5889_v42  ;;  %v6192_v42 = vld [vmem:[#allocation5 + $0x288] sm:$0xf]  ;;  %v8728_v51 = vld [vmem:[#allocation5 + $0x534] sm:$0xf0] }
  0xde   :  { %v6193_v57 = vor.u32 %v8644_v45, %v6192_v42  ;;  %v8664_v45 = vld [vmem:[#allocation5 + $0x334] sm:$0xf0]  ;;  %v7008_v9 = vld [vmem:[#allocation5 + $0x8e8] sm:$0xf] }
  0xdf   :  { %2641 = vmatpush.bf16.msrb.mxu3 %v6017_v49  ;;  %2600 = vmatpush.bf16.msrb.mxu0 %v7021_v56  ;;  %v9611_v49 = vpop.f32.mrf.mxu3  ;;  %v2378_v53 = vpop.f32.mrf.mxu0  ;;  %v8848_v11 = vld [vmem:[#allocation5 + $0x8f4] sm:$0xf0] }
  0xe0   :  { %2614 = vmatpush.bf16.msrb.mxu1 %v7149_v61  ;;  %v2379_v56 = vadd.f32 %v2378_v53, %v9599_v36  ;;  %v6128_v53 = vld [vmem:[#allocation5 + $0x208] sm:$0xf]  ;;  %v8880_v14 = vld [vmem:[#allocation5 + $0x9f4] sm:$0xf0] }
  0xe1   :  { %2628 = vmatpush.bf16.msrb.mxu2 %v5873_v62  ;;  %v6176_v62 = vld [vmem:[#allocation5 + $0x268] sm:$0xf] }
  0xe2   :  { %2601 = vmatmul.bf16.vlgmr.msrb.gmra.mxu0 %v9579_v34  ;;  %v2392_v61 = vpop.f32.mrf.mxu1 }
  0xe3   :  { %2642 = vmatpush.bf16.msrb.mxu3 %v6001_v2  ;;  %2649 = vmatpush.bf16.msra.mxu0 %v6241_v3  ;;  %v6577_v2 = vor.u32 %v8740_v55, %v6576_v54  ;;  %v2393_v3 = vadd.f32 %v2392_v61, %v2379_v56  ;;  %v8628_v54 = vld [vmem:[#allocation5 + $0x214] sm:$0xf0]  ;;  %v6529_v61 = vor.u32 %v8728_v51, %v6528_v50 }
  0xe4   :  { %2663 = vmatpush.bf16.msra.mxu1 %v6369_v4  ;;  %2629 = vmatmul.bf16.vlgmr.msrb.gmra.mxu2 %v9551_v58  ;;  %v8672_v4 = vld [vmem:[#allocation5 + $0x374] sm:$0xf0] }
  0xe5   :  { %2677 = vmatpush.bf16.msra.mxu2 %v6497_v5  ;;  %2615 = vmatmul.bf16.vlgmr.msrb.gmra.mxu1 %v9577_v33  ;;  %v6432_v5 = vld [vmem:[#allocation5 + $0x468] sm:$0xf]  ;;  %v6305_v36 = vor.u32 %v8672_v4, %v6304_v0  ;;  %v8724_v0 = vld [vmem:[#allocation5 + $0x514] sm:$0xf0] }
  0xe6   :  { %2643 = vmatmul.bf16.vlgmr.msrb.gmra.mxu3 %v9557_v10  ;;  %v6433_v13 = vor.u32 %v8704_v8, %v6432_v5  ;;  %v6880_v4 = vld [vmem:[#allocation5 + $0x7e8] sm:$0xf]  ;;  %v6129_v5 = vor.u32 %v8628_v54, %v6128_v53  ;;  %v8816_v8 = vld [vmem:[#allocation5 + $0x7f4] sm:$0xf0] }
  0xe7   :  { %2691 = vmatpush.bf16.msra.mxu3 %v6625_v12  ;;  %2650 = vmatpush.bf16.msra.mxu0 %v6225_v20  ;;  %v6177_v12 = vor.u32 %v8640_v63, %v6176_v62  ;;  %v8692_v62 = vld [vmem:[#allocation5 + $0x414] sm:$0xf0]  ;;  %v6512_v63 = vld [vmem:[#allocation5 + $0x508] sm:$0xf] }
  0xe8   :  { %2664 = vmatpush.bf16.msra.mxu1 %v6353_v21  ;;  %v8668_v21 = vld [vmem:[#allocation5 + $0x354] sm:$0xf0]  ;;  %v6513_v15 = vor.u32 %v8724_v0, %v6512_v63  ;;  %v7104_v54 = vld [vmem:[#allocation5 + $0x9a8] sm:$0xf] }
  0xe9   :  { %2678 = vmatpush.bf16.msra.mxu2 %v6481_v22  ;;  %v2406_v20 = vpop.f32.mrf.mxu2  ;;  %v6416_v22 = vld [vmem:[#allocation5 + $0x448] sm:$0xf]  ;;  %v2420_v27 = vpop.f32.mrf.mxu3  ;;  %v6289_v32 = vor.u32 %v8668_v21, %v6288_v16  ;;  %v8808_v51 = vld [vmem:[#allocation5 + $0x7b4] sm:$0xf0] }
  0xea   :  { %v2407_v24 = vadd.f32 %v2406_v20, %v2393_v3  ;;  %v6417_v35 = vor.u32 %v8700_v23, %v6416_v22  ;;  %v8784_v3 = vld [vmem:[#allocation5 + $0x6f4] sm:$0xf0]  ;;  %v7009_v20 = vor.u32 %v8848_v11, %v7008_v9  ;;  %v6736_v21 = vld [vmem:[#allocation5 + $0x6c8] sm:$0xf] }
  0xeb   :  { %2692 = vmatpush.bf16.msra.mxu3 %v6609_v26  ;;  %2651 = vmatpush.bf16.msra.mxu0 %v6209_v37  ;;  %v8732_v26 = vld [vmem:[#allocation5 + $0x554] sm:$0xf0]  ;;  %v6144_v37 = vld [vmem:[#allocation5 + $0x228] sm:$0xf] }
  0xec   :  { %2665 = vmatpush.bf16.msra.mxu1 %v6337_v40  ;;  %v9614_v31 = vadd.f32 %v2420_v27, %v2407_v24  ;;  %v8632_v40 = vld [vmem:[#allocation5 + $0x234] sm:$0xf0]  ;;  %v6545_v42 = vor.u32 %v8732_v26, %v6544_v25  ;;  %v6864_v23 = vld [vmem:[#allocation5 + $0x7c8] sm:$0xf] }
  0xed   :  { %2679 = vmatpush.bf16.msra.mxu2 %v6465_v41  ;;  %v6272_v41 = vld [vmem:[#allocation5 + $0x328] sm:$0xf]  ;;  %v6145_v52 = vor.u32 %v8632_v40, %v6144_v37  ;;  %v8780_v22 = vld [vmem:[#allocation5 + $0x6d4] sm:$0xf0]  ;;  %v9618_v37 = vpop.f32.mrf.mxu1 }
  0xee   :  { %v6273_v55 = vor.u32 %v8664_v45, %v6272_v41  ;;  %v8812_v25 = vld [vmem:[#allocation5 + $0x7d4] sm:$0xf0]  ;;  %v6992_v26 = vld [vmem:[#allocation5 + $0x8c8] sm:$0xf]  ;;  %v6737_v40 = vor.u32 %v8780_v22, %v6736_v21 }
  0xef   :  { %2693 = vmatpush.bf16.msra.mxu3 %v6593_v48  ;;  %2652 = vmatpush.bf16.msra.mxu0 %v6193_v57  ;;  %v8696_v48 = vld [vmem:[#allocation5 + $0x434] sm:$0xf0]  ;;  %v6256_v57 = vld [vmem:[#allocation5 + $0x308] sm:$0xf]  ;;  %v6865_v41 = vor.u32 %v8812_v25, %v6864_v23 }
  0xf0   :  { %2666 = vmatpush.bf16.msra.mxu1 %v6321_v59  ;;  %v6401_v56 = vor.u32 %v8696_v48, %v6400_v46  ;;  %v8660_v59 = vld [vmem:[#allocation5 + $0x314] sm:$0xf0]  ;;  %v6720_v45 = vld [vmem:[#allocation5 + $0x6a8] sm:$0xf] }
  0xf1   :  { %2680 = vmatpush.bf16.msra.mxu2 %v6449_v60  ;;  %v6384_v60 = vld [vmem:[#allocation5 + $0x408] sm:$0xf]  ;;  %v8844_v27 = vld [vmem:[#allocation5 + $0x8d4] sm:$0xf0]  ;;  %v9624_v63 = vpop.f32.mrf.mxu2 }
  0xf2   :  { %v8776_v46 = vld [vmem:[#allocation5 + $0x6b4] sm:$0xf0]  ;;  %v6848_v48 = vld [vmem:[#allocation5 + $0x7a8] sm:$0xf] }
  0xf3   :  { %2694 = vmatpush.bf16.msra.mxu3 %v6577_v2  ;;  %2653 = vmatpush.bf16.msra.mxu0 %v6177_v12  ;;  %v6752_v2 = vld [vmem:[#allocation5 + $0x6e8] sm:$0xf]  ;;  %v6257_v12 = vor.u32 %v8660_v59, %v6256_v57  ;;  %v8840_v53 = vld [vmem:[#allocation5 + $0x8b4] sm:$0xf0]  ;;  %v6849_v57 = vor.u32 %v8808_v51, %v6848_v48 }
  0xf4   :  { %2667 = vmatpush.bf16.msra.mxu1 %v6305_v36  ;;  %v6385_v36 = vor.u32 %v8692_v62, %v6384_v60  ;;  %v6753_v16 = vor.u32 %v8784_v3, %v6752_v2  ;;  %v6704_v60 = vld [vmem:[#allocation5 + $0x688] sm:$0xf]  ;;  %v8804_v2 = vld [vmem:[#allocation5 + $0x794] sm:$0xf0] }
  0xf5   :  { %2681 = vmatpush.bf16.msra.mxu2 %v6433_v13  ;;  %v7136_v13 = vld [vmem:[#allocation5 + $0x9e8] sm:$0xf]  ;;  %v8868_v9 = vld [vmem:[#allocation5 + $0x994] sm:$0xf0] }
  0xf6   :  { %v7137_v24 = vor.u32 %v8880_v14, %v7136_v13  ;;  %v6832_v62 = vld [vmem:[#allocation5 + $0x788] sm:$0xf]  ;;  %v8800_v22 = vld [vmem:[#allocation5 + $0x774] sm:$0xf0] }
  0xf7   :  { %2695 = vmatpush.bf16.msra.mxu3 %v6561_v18  ;;  %2654 = vmatpush.bf16.msra.mxu0 %v6161_v28  ;;  %v6881_v18 = vor.u32 %v8816_v8, %v6880_v4  ;;  %v9616_v28 = vpop.f32.mrf.mxu0  ;;  %v6960_v3 = vld [vmem:[#allocation5 + $0x888] sm:$0xf]  ;;  %v8836_v4 = vld [vmem:[#allocation5 + $0x894] sm:$0xf0]  ;;  %v6833_v13 = vor.u32 %v8804_v2, %v6832_v62 }
  0xf8   :  { %2668 = vmatpush.bf16.msra.mxu1 %v6289_v32  ;;  %v7120_v32 = vld [vmem:[#allocation5 + $0x9c8] sm:$0xf]  ;;  %v6961_v14 = vor.u32 %v8836_v4, %v6960_v3  ;;  %v8824_v3 = vld [vmem:[#allocation5 + $0x834] sm:$0xf0] }
  0xf9   :  { %2682 = vmatpush.bf16.msra.mxu2 %v6417_v35  ;;  %v8876_v35 = vld [vmem:[#allocation5 + $0x9d4] sm:$0xf0]  ;;  %v7088_v8 = vld [vmem:[#allocation5 + $0x988] sm:$0xf] }
  0xfa   :  { %v7121_v50 = vor.u32 %v8876_v35, %v7120_v32  ;;  %v6944_v23 = vld [vmem:[#allocation5 + $0x868] sm:$0xf] }
  0xfb   :  { %2696 = vmatpush.bf16.msra.mxu3 %v6545_v42  ;;  %2655 = vmatpush.bf16.msra.mxu0 %v6145_v52  ;;  %v6993_v42 = vor.u32 %v8844_v27, %v6992_v26  ;;  %v6976_v52 = vld [vmem:[#allocation5 + $0x8a8] sm:$0xf]  ;;  %v8864_v26 = vld [vmem:[#allocation5 + $0x974] sm:$0xf0] }
  0xfc   :  { %2669 = vmatpush.bf16.msra.mxu1 %v6273_v55  ;;  %v8872_v55 = vld [vmem:[#allocation5 + $0x9b4] sm:$0xf0]  ;;  %v6977_v59 = vor.u32 %v8840_v53, %v6976_v52  ;;  %v7072_v25 = vld [vmem:[#allocation5 + $0x968] sm:$0xf] }
  0xfd   :  { %2683 = vmatpush.bf16.msra.mxu2 %v6401_v56  ;;  %v6721_v56 = vor.u32 %v8776_v46, %v6720_v45  ;;  %v7105_v0 = vor.u32 %v8872_v55, %v7104_v54  ;;  %v6672_v35 = vld [vmem:[#allocation5 + $0x648] sm:$0xf]  ;;  %v8796_v46 = vld [vmem:[#allocation5 + $0x754] sm:$0xf0] }
  0xfe   :  { %v6928_v48 = vld [vmem:[#allocation5 + $0x848] sm:$0xf]  ;;  %v8860_v53 = vld [vmem:[#allocation5 + $0x954] sm:$0xf0] }
  0xff   :  { %2697 = vmatpush.bf16.msra.mxu3 %v6529_v61  ;;  %2656 = vmatpush.bf16.msra.mxu0 %v6129_v5  ;;  %v8772_v61 = vld [vmem:[#allocation5 + $0x694] sm:$0xf0]  ;;  %v2434_v5 = vpop.f32.mrf.mxu0  ;;  %v7056_v52 = vld [vmem:[#allocation5 + $0x948] sm:$0xf] }
 0x100   :  { %2670 = vmatpush.bf16.msra.mxu1 %v6257_v12  ;;  %v2435_v11 = vadd.f32 %v2434_v5, %v9614_v31  ;;  %v6705_v12 = vor.u32 %v8772_v61, %v6704_v60  ;;  %v6784_v60 = vld [vmem:[#allocation5 + $0x728] sm:$0xf]  ;;  %v9629_v61 = vpop.f32.mrf.mxu3  ;;  %v7057_v62 = vor.u32 %v8860_v53, %v7056_v52  ;;  %v8856_v5 = vld [vmem:[#allocation5 + $0x934] sm:$0xf0] }
 0x101   :  { %2684 = vmatpush.bf16.msra.mxu2 %v6385_v36  ;;  %v6912_v2 = vld [vmem:[#allocation5 + $0x828] sm:$0xf] }
 0x102   :  { %2657 = vmatmul.bf16.vlgmr.msra.gmra.mxu0 %v9553_v1  ;;  %v2448_v36 = vpop.f32.mrf.mxu1  ;;  %v7040_v4 = vld [vmem:[#allocation5 + $0x928] sm:$0xf] }
 0x103   :  { %2698 = vmatpush.bf16.msra.mxu3 %v6513_v15  ;;  %2705 = vmatpush.bf16.msrb.mxu0 %v6753_v16  ;;  %v6688_v15 = vld [vmem:[#allocation5 + $0x668] sm:$0xf]  ;;  %v8768_v16 = vld [vmem:[#allocation5 + $0x674] sm:$0xf0]  ;;  %v2449_v21 = vadd.f32 %v2448_v36, %v2435_v11  ;;  %v6913_v36 = vor.u32 %v8824_v3, %v6912_v2  ;;  %v6226_v2 = vld [vmem:[#allocation5 + $0x2d8] sm:$0xf0] }
 0x104   :  { %2719 = vmatpush.bf16.msrb.mxu1 %v6881_v18  ;;  %2685 = vmatmul.bf16.vlgmr.msra.gmra.mxu2 %v9563_v39  ;;  %v6816_v18 = vld [vmem:[#allocation5 + $0x768] sm:$0xf]  ;;  %v6689_v27 = vor.u32 %v8768_v16, %v6688_v15  ;;  %v8756_v11 = vld [vmem:[#allocation5 + $0x614] sm:$0xf0]  ;;  %v7041_v16 = vor.u32 %v8856_v5, %v7040_v4 }
 0x105   :  { %2733 = vmatpush.bf16.msrb.mxu2 %v7009_v20  ;;  %2671 = vmatmul.bf16.vlgmr.msra.gmra.mxu1 %v9559_v17  ;;  %v7089_v20 = vor.u32 %v8868_v9, %v7088_v8  ;;  %v6817_v31 = vor.u32 %v8800_v22, %v6816_v18  ;;  %v6640_v9 = vld [vmem:[#allocation5 + $0x608] sm:$0xf]  ;;  %v8820_v18 = vld [vmem:[#allocation5 + $0x814] sm:$0xf0] }
 0x106   :  { %2699 = vmatmul.bf16.vlgmr.msra.gmra.mxu3 %v9567_v44  ;;  %v6896_v15 = vld [vmem:[#allocation5 + $0x808] sm:$0xf] }
 0x107   :  { %2747 = vmatpush.bf16.msrb.mxu3 %v7137_v24  ;;  %2706 = vmatpush.bf16.msrb.mxu0 %v6737_v40  ;;  %v8832_v24 = vld [vmem:[#allocation5 + $0x874] sm:$0xf0]  ;;  %v2462_v45 = vpop.f32.mrf.mxu2  ;;  %v7264_v22 = vld [vmem:[#allocation5 + $0xae8] sm:$0xf] }
 0x108   :  { %2720 = vmatpush.bf16.msrb.mxu1 %v6865_v41  ;;  %v6945_v32 = vor.u32 %v8832_v24, %v6944_v23  ;;  %v8764_v40 = vld [vmem:[#allocation5 + $0x654] sm:$0xf0]  ;;  %v6800_v41 = vld [vmem:[#allocation5 + $0x748] sm:$0xf]  ;;  %v9627_v51 = vadd.f32 %v2462_v45, %v2449_v21  ;;  %v8590_v24 = vld [vmem:[#allocation5 + $0xec] sm:$0xf] }
 0x109   :  { %2734 = vmatpush.bf16.msrb.mxu2 %v6993_v42  ;;  %v7073_v42 = vor.u32 %v8864_v26, %v7072_v25  ;;  %v6673_v54 = vor.u32 %v8764_v40, %v6672_v35  ;;  %v6801_v55 = vor.u32 %v8796_v46, %v6800_v41  ;;  %v8852_v21 = vld [vmem:[#allocation5 + $0x914] sm:$0xf0]  ;;  %v6641_v25 = vor.u32 %v8756_v11, %v6640_v9  ;;  %v5986_v26 = vld [vmem:[#allocation5 + $0xf8] sm:$0xf0]  ;;  %v8654_v40 = vld [vmem:[#allocation5 + $0x2ec] sm:$0xf] }
 0x10a   :  { %v8912_v23 = vld [vmem:[#allocation5 + $0xaf4] sm:$0xf0]  ;;  %v6897_v35 = vor.u32 %v8820_v18, %v6896_v15  ;;  %v6242_v41 = vld [vmem:[#allocation5 + $0x2f8] sm:$0xf0]  ;;  %v486_v46 = vperm.slane %v9589_v6, 4  ;;  %v9636_v4 = vpop.f32.mrf.mxu1 }
 0x10b   :  { %2748 = vmatpush.bf16.msrb.mxu3 %v7121_v50  ;;  %2707 = vmatpush.bf16.msrb.mxu0 %v6721_v56  ;;  %v8828_v50 = vld [vmem:[#allocation5 + $0x854] sm:$0xf0]  ;;  %v7265_v45 = vor.u32 %v8912_v23, %v7264_v22  ;;  %v7248_v53 = vld [vmem:[#allocation5 + $0xac8] sm:$0xf]  ;;  %9928 = vst [vmem:[#allocation22_spill] sm:$0xff] %v9636_v4 }
 0x10c   :  { %2721 = vmatpush.bf16.msrb.mxu1 %v6849_v57  ;;  %v6929_v56 = vor.u32 %v8828_v50, %v6928_v48  ;;  %v6656_v57 = vld [vmem:[#allocation5 + $0x628] sm:$0xf]  ;;  %v2476_v48 = vpop.f32.mrf.mxu3  ;;  %v5989_v50 = vor.u32 %v8590_v24, %v5986_v26  ;;  %v9634_v6 = vperm.slane %v486_v46, 0  ;;  %v8904_v11 = vld [vmem:[#allocation5 + $0xab4] sm:$0xf0] }
 0x10d   :  { %2735 = vmatpush.bf16.msrb.mxu2 %v6977_v59  ;;  %v8760_v59 = vld [vmem:[#allocation5 + $0x634] sm:$0xf0]  ;;  %v7232_v9 = vld [vmem:[#allocation5 + $0xaa8] sm:$0xf]  ;;  %v6082_v15 = vld [vmem:[#allocation5 + $0x1b8] sm:$0xf0] }
 0x10e   :  { %v6657_v8 = vor.u32 %v8760_v59, %v6656_v57  ;;  %v5970_v57 = vld [vmem:[#allocation5 + $0xd8] sm:$0xf0]  ;;  %v8618_v59 = vld [vmem:[#allocation5 + $0x1cc] sm:$0xf]  ;;  %v7216_v24 = vld [vmem:[#allocation5 + $0xa88] sm:$0xf] }
 0x10f   :  { %2749 = vmatpush.bf16.msrb.mxu3 %v7105_v0  ;;  %2708 = vmatpush.bf16.msrb.mxu0 %v6705_v12  ;;  %v8792_v0 = vld [vmem:[#allocation5 + $0x734] sm:$0xf0]  ;;  %v6210_v18 = vld [vmem:[#allocation5 + $0x2b8] sm:$0xf0]  ;;  %v8578_v26 = vld [vmem:[#allocation5 + $0x8c] sm:$0xf] }
 0x110   :  { %2722 = vmatpush.bf16.msrb.mxu1 %v6833_v13  ;;  %v6785_v12 = vor.u32 %v8792_v0, %v6784_v60  ;;  %v6768_v13 = vld [vmem:[#allocation5 + $0x708] sm:$0xf]  ;;  %v6098_v60 = vld [vmem:[#allocation5 + $0x1d8] sm:$0xf0]  ;;  %v8650_v0 = vld [vmem:[#allocation5 + $0x2cc] sm:$0xf] }
 0x111   :  { %2736 = vmatpush.bf16.msrb.mxu2 %v6961_v14  ;;  %v8788_v14 = vld [vmem:[#allocation5 + $0x714] sm:$0xf0]  ;;  %v6194_v46 = vld [vmem:[#allocation5 + $0x298] sm:$0xf0] }
 0x113   :  { %2750 = vmatpush.bf16.msrb.mxu3 %v7089_v20  ;;  %2709 = vmatpush.bf16.msrb.mxu0 %v6689_v27  ;;  %v7024_v20 = vld [vmem:[#allocation5 + $0x908] sm:$0xf]  ;;  %v8622_v27 = vld [vmem:[#allocation5 + $0x1ec] sm:$0xf] }
 0x114   :  { %2723 = vmatpush.bf16.msrb.mxu1 %v6817_v31  ;;  %v6114_v31 = vld [vmem:[#allocation5 + $0x1f8] sm:$0xf0] }
 0x115   :  { %2737 = vmatpush.bf16.msrb.mxu2 %v6945_v32  ;;  %v6769_v32 = vor.u32 %v8788_v14, %v6768_v13  ;;  %v6117_v52 = vor.u32 %v8622_v27, %v6114_v31  ;;  %v5954_v13 = vld [vmem:[#allocation5 + $0xb8] sm:$0xf0]  ;;  %v8614_v14 = vld [vmem:[#allocation5 + $0x1ac] sm:$0xf]  ;;  %v9643_v27 = vpop.f32.mrf.mxu2 }
 0x116   :  { %v6085_v23 = vor.u32 %v8614_v14, %v6082_v15  ;;  %9929 = vst [vmem:[#allocation23_spill] sm:$0xff] %v9643_v27  ;;  %v8570_v14 = vld [vmem:[#allocation5 + $0x4c] sm:$0xf] }
 0x117   :  { %2751 = vmatpush.bf16.msrb.mxu3 %v7073_v42  ;;  %2710 = vmatpush.bf16.msrb.mxu0 %v6673_v54  ;;  %v7025_v42 = vor.u32 %v8852_v21, %v7024_v20  ;;  %v8908_v54 = vld [vmem:[#allocation5 + $0xad4] sm:$0xf0]  ;;  %v2477_v20 = vadd.f32 %v2476_v48, %v9634_v6  ;;  %v7233_v21 = vor.u32 %v8904_v11, %v7232_v9 }
 0x118   :  { %2724 = vmatpush.bf16.msrb.mxu1 %v6801_v55  ;;  %v8586_v55 = vld [vmem:[#allocation5 + $0xcc] sm:$0xf]  ;;  %v7249_v3 = vor.u32 %v8908_v54, %v7248_v53 }
 0x119   :  { %2738 = vmatpush.bf16.msrb.mxu2 %v6929_v56  ;;  %v6245_v56 = vor.u32 %v8654_v40, %v6242_v41  ;;  %v5973_v5 = vor.u32 %v8586_v55, %v5970_v57  ;;  %v8610_v40 = vld [vmem:[#allocation5 + $0x18c] sm:$0xf]  ;;  %v6066_v41 = vld [vmem:[#allocation5 + $0x198] sm:$0xf0]  ;;  %v7200_v55 = vld [vmem:[#allocation5 + $0xa68] sm:$0xf] }
 0x11a   :  { %v6069_v53 = vor.u32 %v8610_v40, %v6066_v41  ;;  %v8574_v57 = vld [vmem:[#allocation5 + $0x6c] sm:$0xf]  ;;  %v7168_v41 = vld [vmem:[#allocation5 + $0xa28] sm:$0xf] }
 0x11b   :  { %2752 = vmatpush.bf16.msrb.mxu3 %v7057_v62  ;;  %2711 = vmatpush.bf16.msrb.mxu0 %v6657_v8  ;;  %v9632_v62 = vpop.f32.mrf.mxu0  ;;  %v6101_v8 = vor.u32 %v8618_v59, %v6098_v60 }
 0x11c   :  { %2725 = vmatpush.bf16.msrb.mxu1 %v6785_v12  ;;  %v8582_v12 = vld [vmem:[#allocation5 + $0xac] sm:$0xf] }
 0x11d   :  { %2739 = vmatpush.bf16.msrb.mxu2 %v6913_v36  ;;  %v6229_v36 = vor.u32 %v8650_v0, %v6226_v2  ;;  %v5957_v22 = vor.u32 %v8582_v12, %v5954_v13  ;;  %v5922_v0 = vld [vmem:[#allocation5 + $0x78] sm:$0xf0]  ;;  %v8606_v2 = vld [vmem:[#allocation5 + $0x16c] sm:$0xf]  ;;  %v8892_v13 = vld [vmem:[#allocation5 + $0xa54] sm:$0xf0] }
 0x11e   :  { %v5925_v11 = vor.u32 %v8574_v57, %v5922_v0  ;;  %v8884_v57 = vld [vmem:[#allocation5 + $0xa14] sm:$0xf0]  ;;  %v8562_v0 = vld [vmem:[#allocation5 + $0xc] sm:$0xf] }
 0x11f   :  { %2753 = vmatpush.bf16.msrb.mxu3 %v7041_v16  ;;  %2712 = vmatpush.bf16.msrb.mxu0 %v6641_v25  ;;  %v8646_v16 = vld [vmem:[#allocation5 + $0x2ac] sm:$0xf]  ;;  %v8900_v25 = vld [vmem:[#allocation5 + $0xa94] sm:$0xf0] }
 0x120   :  { %2726 = vmatpush.bf16.msrb.mxu1 %v6769_v32  ;;  %v6213_v31 = vor.u32 %v8646_v16, %v6210_v18  ;;  %v9645_v32 = vpop.f32.mrf.mxu3  ;;  %v5906_v18 = vld [vmem:[#allocation5 + $0x58] sm:$0xf0] }
 0x121   :  { %2740 = vmatpush.bf16.msrb.mxu2 %v6897_v35  ;;  %v5938_v35 = vld [vmem:[#allocation5 + $0x98] sm:$0xf0] }
 0x122   :  { %2713 = vmatmul.bf16.vlgmr.msrb.gmra.mxu0 %v9565_v43  ;;  %v2504_v54 = vpop.f32.mrf.mxu1 }
 0x123   :  { %2754 = vmatpush.bf16.msrb.mxu3 %v7025_v42  ;;  %2761 = vmatpush.bf16.msra.mxu0 %v7265_v45  ;;  %v2490_v42 = vpop.f32.mrf.mxu0  ;;  %v8642_v45 = vld [vmem:[#allocation5 + $0x28c] sm:$0xf] }
 0x124   :  { %2775 = vmatpush.bf16.msra.mxu1 %v5989_v50  ;;  %2741 = vmatmul.bf16.vlgmr.msrb.gmra.mxu2 %v9575_v29  ;;  %v2491_v48 = vadd.f32 %v2490_v42, %v2477_v20  ;;  %v7217_v50 = vor.u32 %v8900_v25, %v7216_v24  ;;  %v6197_v59 = vor.u32 %v8642_v45, %v6194_v46  ;;  %v8602_v20 = vld [vmem:[#allocation5 + $0x14c] sm:$0xf]  ;;  %v6162_v24 = vld [vmem:[#allocation5 + $0x258] sm:$0xf0]  ;;  %v8888_v42 = vld [vmem:[#allocation5 + $0xa34] sm:$0xf0] }
 0x125   :  { %2789 = vmatpush.bf16.msra.mxu2 %v6117_v52  ;;  %2727 = vmatmul.bf16.vlgmr.msrb.gmra.mxu1 %v9569_v47  ;;  %v5941_v52 = vor.u32 %v8578_v26, %v5938_v35  ;;  %v5909_v35 = vor.u32 %v8570_v14, %v5906_v18  ;;  %v8566_v45 = vld [vmem:[#allocation5 + $0x2c] sm:$0xf]  ;;  %v6626_v18 = vld [vmem:[#allocation5 + $0x5f8] sm:$0xf0] }
 0x126   :  { %2755 = vmatmul.bf16.vlgmr.msrb.gmra.mxu3 %v9579_v34  ;;  %v2505_v60 = vadd.f32 %v2504_v54, %v2491_v48  ;;  %v5890_v48 = vld [vmem:[#allocation5 + $0x38] sm:$0xf0] }
 0x127   :  { %2803 = vmatpush.bf16.msra.mxu3 %v6245_v56  ;;  %2762 = vmatpush.bf16.msra.mxu0 %v7249_v3  ;;  %v8896_v56 = vld [vmem:[#allocation5 + $0xa74] sm:$0xf0]  ;;  %v6050_v3 = vld [vmem:[#allocation5 + $0x178] sm:$0xf0]  ;;  %v2518_v16 = vpop.f32.mrf.mxu2 }
 0x128   :  { %2776 = vmatpush.bf16.msra.mxu1 %v5973_v5  ;;  %v8638_v5 = vld [vmem:[#allocation5 + $0x26c] sm:$0xf]  ;;  %v7201_v9 = vor.u32 %v8896_v56, %v7200_v55  ;;  %v6053_v12 = vor.u32 %v8606_v2, %v6050_v3  ;;  %v6146_v54 = vld [vmem:[#allocation5 + $0x238] sm:$0xf0]  ;;  %v7169_v55 = vor.u32 %v8888_v42, %v7168_v41  ;;  %v7152_v56 = vld [vmem:[#allocation5 + $0xa08] sm:$0xf] }
 0x129   :  { %2790 = vmatpush.bf16.msra.mxu2 %v6101_v8  ;;  %v6178_v8 = vld [vmem:[#allocation5 + $0x278] sm:$0xf0]  ;;  %v2532_v25 = vpop.f32.mrf.mxu3  ;;  %v8594_v3 = vld [vmem:[#allocation5 + $0x10c] sm:$0xf]  ;;  %v7153_v14 = vor.u32 %v8884_v57, %v7152_v56 }
 0x12a   :  { %v6181_v15 = vor.u32 %v8638_v5, %v6178_v8  ;;  %v5874_v2 = vld [vmem:[#allocation5 + $0x18] sm:$0xf0]  ;;  %v8714_v42 = vld [vmem:[#allocation5 + $0x4cc] sm:$0xf] }
 0x12b   :  { %2804 = vmatpush.bf16.msra.mxu3 %v6229_v36  ;;  %2763 = vmatpush.bf16.msra.mxu0 %v7233_v21  ;;  %v7184_v36 = vld [vmem:[#allocation5 + $0xa48] sm:$0xf]  ;;  %v6034_v21 = vld [vmem:[#allocation5 + $0x158] sm:$0xf0] }
 0x12c   :  { %2777 = vmatpush.bf16.msra.mxu1 %v5957_v22  ;;  %v2519_v22 = vadd.f32 %v2518_v16, %v2505_v60  ;;  %v7185_v26 = vor.u32 %v8892_v13, %v7184_v36  ;;  %v6037_v40 = vor.u32 %v8602_v20, %v6034_v21  ;;  %v6002_v8 = vld [vmem:[#allocation5 + $0x118] sm:$0xf0]  ;;  %v8718_v13 = vld [vmem:[#allocation5 + $0x4ec] sm:$0xf]  ;;  %v5877_v20 = vor.u32 %v8562_v0, %v5874_v2 }
 0x12d   :  { %2791 = vmatpush.bf16.msra.mxu2 %v6085_v23  ;;  %v8634_v23 = vld [vmem:[#allocation5 + $0x24c] sm:$0xf]  ;;  %v6370_v36 = vld [vmem:[#allocation5 + $0x3f8] sm:$0xf0]  ;;  %v6005_v21 = vor.u32 %v8594_v3, %v6002_v8 }
 0x12e   :  { %v6165_v46 = vor.u32 %v8634_v23, %v6162_v24  ;;  %v8750_v16 = vld [vmem:[#allocation5 + $0x5ec] sm:$0xf]  ;;  %v6754_v23 = vld [vmem:[#allocation5 + $0x6f8] sm:$0xf0] }
 0x12f   :  { %2805 = vmatpush.bf16.msra.mxu3 %v6213_v31  ;;  %2764 = vmatpush.bf16.msra.mxu0 %v7217_v50  ;;  %v9647_v31 = vadd.f32 %v2532_v25, %v2519_v22  ;;  %v8598_v50 = vld [vmem:[#allocation5 + $0x12c] sm:$0xf]  ;;  %v6354_v41 = vld [vmem:[#allocation5 + $0x3d8] sm:$0xf0] }
 0x130   :  { %2778 = vmatpush.bf16.msra.mxu1 %v5941_v52  ;;  %v6018_v52 = vld [vmem:[#allocation5 + $0x138] sm:$0xf0]  ;;  %v8782_v22 = vld [vmem:[#allocation5 + $0x6ec] sm:$0xf] }
 0x131   :  { %2792 = vmatpush.bf16.msra.mxu2 %v6069_v53  ;;  %v8630_v53 = vld [vmem:[#allocation5 + $0x22c] sm:$0xf]  ;;  %v6021_v60 = vor.u32 %v8598_v50, %v6018_v52  ;;  %v6610_v50 = vld [vmem:[#allocation5 + $0x5d8] sm:$0xf0]  ;;  %v9649_v52 = vpop.f32.mrf.mxu0 }
 0x132   :  { %v6149_v5 = vor.u32 %v8630_v53, %v6146_v54  ;;  %v8778_v53 = vld [vmem:[#allocation5 + $0x6cc] sm:$0xf]  ;;  %v6738_v54 = vld [vmem:[#allocation5 + $0x6d8] sm:$0xf0] }
 0x133   :  { %2806 = vmatpush.bf16.msra.mxu3 %v6197_v59  ;;  %2765 = vmatpush.bf16.msra.mxu0 %v7201_v9  ;;  %v5893_v59 = vor.u32 %v8566_v45, %v5890_v48  ;;  %v8626_v9 = vld [vmem:[#allocation5 + $0x20c] sm:$0xf]  ;;  %v6757_v45 = vor.u32 %v8782_v22, %v6754_v23  ;;  %v6338_v0 = vld [vmem:[#allocation5 + $0x3b8] sm:$0xf0]  ;;  %v6741_v3 = vor.u32 %v8778_v53, %v6738_v54 }
 0x134   :  { %2779 = vmatpush.bf16.msra.mxu1 %v5925_v11  ;;  %v6130_v11 = vld [vmem:[#allocation5 + $0x218] sm:$0xf0]  ;;  %v8746_v48 = vld [vmem:[#allocation5 + $0x5cc] sm:$0xf] }
 0x135   :  { %2793 = vmatpush.bf16.msra.mxu2 %v6053_v12  ;;  %v8686_v12 = vld [vmem:[#allocation5 + $0x3ec] sm:$0xf]  ;;  %v6133_v24 = vor.u32 %v8626_v9, %v6130_v11  ;;  %v6594_v9 = vld [vmem:[#allocation5 + $0x5b8] sm:$0xf0] }
 0x136   :  { %v6373_v25 = vor.u32 %v8686_v12, %v6370_v36  ;;  %v8710_v2 = vld [vmem:[#allocation5 + $0x4ac] sm:$0xf]  ;;  %v6722_v12 = vld [vmem:[#allocation5 + $0x6b8] sm:$0xf0] }
 0x137   :  { %2807 = vmatpush.bf16.msra.mxu3 %v6181_v15  ;;  %2766 = vmatpush.bf16.msra.mxu0 %v7185_v26  ;;  %v6498_v15 = vld [vmem:[#allocation5 + $0x4f8] sm:$0xf0]  ;;  %v8742_v8 = vld [vmem:[#allocation5 + $0x5ac] sm:$0xf] }
 0x138   :  { %2780 = vmatpush.bf16.msra.mxu1 %v5909_v35  ;;  %v6501_v26 = vor.u32 %v8718_v13, %v6498_v15  ;;  %v6629_v35 = vor.u32 %v8750_v16, %v6626_v18  ;;  %v8774_v11 = vld [vmem:[#allocation5 + $0x6ac] sm:$0xf]  ;;  %v6322_v16 = vld [vmem:[#allocation5 + $0x398] sm:$0xf0] }
 0x139   :  { %2794 = vmatpush.bf16.msra.mxu2 %v6037_v40  ;;  %v8682_v40 = vld [vmem:[#allocation5 + $0x3cc] sm:$0xf]  ;;  %v6450_v22 = vld [vmem:[#allocation5 + $0x498] sm:$0xf0] }
 0x13a   :  { %v6357_v56 = vor.u32 %v8682_v40, %v6354_v41  ;;  %v8674_v15 = vld [vmem:[#allocation5 + $0x38c] sm:$0xf]  ;;  %v6434_v54 = vld [vmem:[#allocation5 + $0x478] sm:$0xf0] }
 0x13b   :  { %2808 = vmatpush.bf16.msra.mxu3 %v6165_v46  ;;  %2767 = vmatpush.bf16.msra.mxu0 %v7169_v55  ;;  %v6482_v46 = vld [vmem:[#allocation5 + $0x4d8] sm:$0xf0]  ;;  %v9651_v55 = vpop.f32.mrf.mxu1  ;;  %v8706_v18 = vld [vmem:[#allocation5 + $0x48c] sm:$0xf] }
 0x13c   :  { %2781 = vmatpush.bf16.msra.mxu1 %v5893_v59  ;;  %v6485_v57 = vor.u32 %v8714_v42, %v6482_v46  ;;  %v6613_v59 = vor.u32 %v8746_v48, %v6610_v50  ;;  %v8738_v23 = vld [vmem:[#allocation5 + $0x58c] sm:$0xf]  ;;  %v6453_v41 = vor.u32 %v8706_v18, %v6450_v22  ;;  %v6306_v46 = vld [vmem:[#allocation5 + $0x378] sm:$0xf0] }
 0x13d   :  { %2795 = vmatpush.bf16.msra.mxu2 %v6021_v60  ;;  %v8678_v60 = vld [vmem:[#allocation5 + $0x3ac] sm:$0xf]  ;;  %v6674_v18 = vld [vmem:[#allocation5 + $0x658] sm:$0xf0] }
 0x13e   :  { %v6341_v36 = vor.u32 %v8678_v60, %v6338_v0  ;;  %v8702_v48 = vld [vmem:[#allocation5 + $0x46c] sm:$0xf]  ;;  %v6690_v60 = vld [vmem:[#allocation5 + $0x678] sm:$0xf0] }
 0x13f   :  { %2809 = vmatpush.bf16.msra.mxu3 %v6149_v5  ;;  %2768 = vmatpush.bf16.msra.mxu0 %v7153_v14  ;;  %v6466_v5 = vld [vmem:[#allocation5 + $0x4b8] sm:$0xf0]  ;;  %v6597_v14 = vor.u32 %v8742_v8, %v6594_v9  ;;  %v8698_v8 = vld [vmem:[#allocation5 + $0x44c] sm:$0xf] }
 0x140   :  { %2782 = vmatpush.bf16.msra.mxu1 %v5877_v20  ;;  %v6469_v13 = vor.u32 %v8710_v2, %v6466_v5  ;;  %v9657_v20 = vpop.f32.mrf.mxu2  ;;  %v6290_v5 = vld [vmem:[#allocation5 + $0x358] sm:$0xf0] }
 0x141   :  { %2796 = vmatpush.bf16.msra.mxu2 %v6005_v21  ;;  %v6725_v21 = vor.u32 %v8774_v11, %v6722_v12  ;;  %v6418_v12 = vld [vmem:[#allocation5 + $0x458] sm:$0xf0] }
 0x142   :  { %2769 = vmatmul.bf16.vlgmr.msra.gmra.mxu0 %v9577_v33 }
 0x143   :  { %2810 = vmatpush.bf16.msra.mxu3 %v6133_v24  ;;  %2817 = vmatpush.bf16.msrb.mxu0 %v6373_v25  ;;  %v9659_v24 = vpop.f32.mrf.mxu3  ;;  %v8770_v25 = vld [vmem:[#allocation5 + $0x68c] sm:$0xf]  ;;  %v2560_v40 = vpop.f32.mrf.mxu1 }
 0x144   :  { %2831 = vmatpush.bf16.msrb.mxu1 %v6501_v26  ;;  %2797 = vmatmul.bf16.vlgmr.msra.gmra.mxu2 %v9557_v10  ;;  %v6578_v10 = vld [vmem:[#allocation5 + $0x598] sm:$0xf0] }
 0x145   :  { %2845 = vmatpush.bf16.msrb.mxu2 %v6629_v35  ;;  %2783 = vmatmul.bf16.vlgmr.msra.gmra.mxu1 %v9551_v58  ;;  %v2546_v58 = vpop.f32.mrf.mxu0  ;;  %v6706_v26 = vld [vmem:[#allocation5 + $0x698] sm:$0xf0]  ;;  %v6325_v35 = vor.u32 %v8674_v15, %v6322_v16  ;;  %v6581_v42 = vor.u32 %v8738_v23, %v6578_v10  ;;  %v8762_v16 = vld [vmem:[#allocation5 + $0x64c] sm:$0xf]  ;;  %v6421_v23 = vor.u32 %v8698_v8, %v6418_v12 }
 0x146   :  { %2811 = vmatmul.bf16.vlgmr.msra.gmra.mxu3 %v9553_v1  ;;  %v2547_v1 = vadd.f32 %v2546_v58, %v9647_v31  ;;  %v6709_v50 = vor.u32 %v8770_v25, %v6706_v26  ;;  %v6437_v31 = vor.u32 %v8702_v48, %v6434_v54  ;;  %v8662_v58 = vld [vmem:[#allocation5 + $0x32c] sm:$0xf]  ;;  %v6274_v25 = vld [vmem:[#allocation5 + $0x338] sm:$0xf0] }
 0x147   :  { %2859 = vmatpush.bf16.msrb.mxu3 %v6757_v45  ;;  %2818 = vmatpush.bf16.msrb.mxu0 %v6357_v56  ;;  %v8670_v45 = vld [vmem:[#allocation5 + $0x36c] sm:$0xf] }
 0x148   :  { %2832 = vmatpush.bf16.msrb.mxu1 %v6485_v57  ;;  %v2561_v53 = vadd.f32 %v2560_v40, %v2547_v1  ;;  %v8734_v56 = vld [vmem:[#allocation5 + $0x56c] sm:$0xf]  ;;  %v6562_v57 = vld [vmem:[#allocation5 + $0x578] sm:$0xf0]  ;;  %v6309_v0 = vor.u32 %v8670_v45, %v6306_v46  ;;  %v2574_v11 = vpop.f32.mrf.mxu2  ;;  %v6677_v1 = vor.u32 %v8762_v16, %v6674_v18  ;;  %v6277_v46 = vor.u32 %v8662_v58, %v6274_v25 }
 0x149   :  { %2846 = vmatpush.bf16.msrb.mxu2 %v6613_v59  ;;  %v8766_v59 = vld [vmem:[#allocation5 + $0x66c] sm:$0xf]  ;;  %v6565_v2 = vor.u32 %v8734_v56, %v6562_v57  ;;  %v6658_v45 = vld [vmem:[#allocation5 + $0x638] sm:$0xf0] }
 0x14a   :  { %v6693_v9 = vor.u32 %v8766_v59, %v6690_v60  ;;  %v8694_v26 = vld [vmem:[#allocation5 + $0x42c] sm:$0xf]  ;;  %v6386_v57 = vld [vmem:[#allocation5 + $0x418] sm:$0xf0] }
 0x14b   :  { %2860 = vmatpush.bf16.msrb.mxu3 %v6741_v3  ;;  %2819 = vmatpush.bf16.msrb.mxu0 %v6341_v36  ;;  %v8666_v3 = vld [vmem:[#allocation5 + $0x34c] sm:$0xf]  ;;  %v2588_v15 = vpop.f32.mrf.mxu3  ;;  %v7266_v16 = vld [vmem:[#allocation5 + $0xaf8] sm:$0xf0] }
 0x14c   :  { %2833 = vmatpush.bf16.msrb.mxu1 %v6469_v13  ;;  %v8730_v36 = vld [vmem:[#allocation5 + $0x54c] sm:$0xf]  ;;  %v6546_v13 = vld [vmem:[#allocation5 + $0x558] sm:$0xf0] }
 0x14d   :  { %2847 = vmatpush.bf16.msrb.mxu2 %v6597_v14  ;;  %v2575_v14 = vadd.f32 %v2574_v11, %v2561_v53  ;;  %v6549_v10 = vor.u32 %v8730_v36, %v6546_v13  ;;  %v8726_v40 = vld [vmem:[#allocation5 + $0x52c] sm:$0xf]  ;;  %v7010_v11 = vld [vmem:[#allocation5 + $0x8f8] sm:$0xf0] }
 0x14e   :  { %v8658_v48 = vld [vmem:[#allocation5 + $0x30c] sm:$0xf]  ;;  %v7138_v36 = vld [vmem:[#allocation5 + $0x9f8] sm:$0xf0] }
 0x14f   :  { %2861 = vmatpush.bf16.msrb.mxu3 %v6725_v21  ;;  %2820 = vmatpush.bf16.msrb.mxu0 %v6325_v35  ;;  %v6293_v21 = vor.u32 %v8666_v3, %v6290_v5  ;;  %v9662_v22 = vadd.f32 %v2588_v15, %v2575_v14  ;;  %v6402_v35 = vld [vmem:[#allocation5 + $0x438] sm:$0xf0]  ;;  %v8690_v56 = vld [vmem:[#allocation5 + $0x40c] sm:$0xf] }
 0x150   :  { %2834 = vmatpush.bf16.msrb.mxu1 %v6453_v41  ;;  %v6530_v41 = vld [vmem:[#allocation5 + $0x538] sm:$0xf0]  ;;  %v6405_v53 = vor.u32 %v8694_v26, %v6402_v35  ;;  %v8722_v59 = vld [vmem:[#allocation5 + $0x50c] sm:$0xf]  ;;  %v6389_v13 = vor.u32 %v8690_v56, %v6386_v57 }
 0x151   :  { %2848 = vmatpush.bf16.msrb.mxu2 %v6581_v42  ;;  %v8758_v42 = vld [vmem:[#allocation5 + $0x62c] sm:$0xf]  ;;  %v6533_v54 = vor.u32 %v8726_v40, %v6530_v41  ;;  %v6882_v5 = vld [vmem:[#allocation5 + $0x7f8] sm:$0xf0] }
 0x152   :  { %v6661_v60 = vor.u32 %v8758_v42, %v6658_v45  ;;  %v8814_v3 = vld [vmem:[#allocation5 + $0x7ec] sm:$0xf]  ;;  %v6866_v25 = vld [vmem:[#allocation5 + $0x7d8] sm:$0xf0]  ;;  %v9664_v42 = vpop.f32.mrf.mxu0 }
 0x153   :  { %2862 = vmatpush.bf16.msrb.mxu3 %v6709_v50  ;;  %2821 = vmatpush.bf16.msrb.mxu0 %v6309_v0  ;;  %v6258_v50 = vld [vmem:[#allocation5 + $0x318] sm:$0xf0]  ;;  %v8846_v8 = vld [vmem:[#allocation5 + $0x8ec] sm:$0xf] }
 0x154   :  { %2835 = vmatpush.bf16.msrb.mxu1 %v6437_v31  ;;  %v6514_v0 = vld [vmem:[#allocation5 + $0x518] sm:$0xf0]  ;;  %v8754_v31 = vld [vmem:[#allocation5 + $0x60c] sm:$0xf] }
 0x155   :  { %2849 = vmatpush.bf16.msrb.mxu2 %v6565_v2  ;;  %v6642_v2 = vld [vmem:[#allocation5 + $0x618] sm:$0xf0]  ;;  %v8878_v12 = vld [vmem:[#allocation5 + $0x9ec] sm:$0xf]  ;;  %v6517_v14 = vor.u32 %v8722_v59, %v6514_v0 }
 0x156   :  { %v8910_v15 = vld [vmem:[#allocation5 + $0xaec] sm:$0xf]  ;;  %v6645_v18 = vor.u32 %v8754_v31, %v6642_v2  ;;  %v6994_v35 = vld [vmem:[#allocation5 + $0x8d8] sm:$0xf0] }
 0x157   :  { %2863 = vmatpush.bf16.msrb.mxu3 %v6693_v9  ;;  %2822 = vmatpush.bf16.msrb.mxu0 %v6293_v21  ;;  %v6261_v9 = vor.u32 %v8658_v48, %v6258_v50  ;;  %v6885_v21 = vor.u32 %v8814_v3, %v6882_v5  ;;  %v8810_v58 = vld [vmem:[#allocation5 + $0x7cc] sm:$0xf]  ;;  %v7122_v41 = vld [vmem:[#allocation5 + $0x9d8] sm:$0xf0]  ;;  %v9666_v48 = vpop.f32.mrf.mxu1 }
 0x158   :  { %2836 = vmatpush.bf16.msrb.mxu1 %v6421_v23  ;;  %v7013_v23 = vor.u32 %v8846_v8, %v7010_v11  ;;  %v8842_v26 = vld [vmem:[#allocation5 + $0x8cc] sm:$0xf]  ;;  %v6869_v50 = vor.u32 %v8810_v58, %v6866_v25  ;;  %v6850_v57 = vld [vmem:[#allocation5 + $0x7b8] sm:$0xf0] }
 0x159   :  { %2850 = vmatpush.bf16.msrb.mxu2 %v6549_v10  ;;  %v7141_v10 = vor.u32 %v8878_v12, %v7138_v36  ;;  %v8874_v40 = vld [vmem:[#allocation5 + $0x9cc] sm:$0xf]  ;;  %v6978_v0 = vld [vmem:[#allocation5 + $0x8b8] sm:$0xf0] }
 0x15a   :  { %v8906_v45 = vld [vmem:[#allocation5 + $0xacc] sm:$0xf]  ;;  %v7106_v2 = vld [vmem:[#allocation5 + $0x9b8] sm:$0xf0] }
 0x15b   :  { %2864 = vmatpush.bf16.msrb.mxu3 %v6677_v1  ;;  %2823 = vmatpush.bf16.msrb.mxu0 %v6277_v46  ;;  %v7269_v1 = vor.u32 %v8910_v15, %v7266_v16  ;;  %v7250_v46 = vld [vmem:[#allocation5 + $0xad8] sm:$0xf0]  ;;  %v8806_v56 = vld [vmem:[#allocation5 + $0x7ac] sm:$0xf] }
 0x15c   :  { %2837 = vmatpush.bf16.msrb.mxu1 %v6405_v53  ;;  %v6997_v53 = vor.u32 %v8842_v26, %v6994_v35  ;;  %v8838_v59 = vld [vmem:[#allocation5 + $0x8ac] sm:$0xf]  ;;  %v7234_v5 = vld [vmem:[#allocation5 + $0xab8] sm:$0xf0]  ;;  %v6853_v8 = vor.u32 %v8806_v56, %v6850_v57 }
 0x15d   :  { %2851 = vmatpush.bf16.msrb.mxu2 %v6533_v54  ;;  %v7125_v54 = vor.u32 %v8874_v40, %v7122_v41  ;;  %v8870_v31 = vld [vmem:[#allocation5 + $0x9ac] sm:$0xf]  ;;  %v6818_v26 = vld [vmem:[#allocation5 + $0x778] sm:$0xf0] }
 0x15e   :  { %v8902_v3 = vld [vmem:[#allocation5 + $0xaac] sm:$0xf]  ;;  %v7109_v11 = vor.u32 %v8870_v31, %v7106_v2  ;;  %v6946_v41 = vld [vmem:[#allocation5 + $0x878] sm:$0xf0] }
 0x15f   :  { %2865 = vmatpush.bf16.msrb.mxu3 %v6661_v60  ;;  %2824 = vmatpush.bf16.msrb.mxu0 %v6261_v9  ;;  %v7253_v60 = vor.u32 %v8906_v45, %v7250_v46  ;;  %v6981_v9 = vor.u32 %v8838_v59, %v6978_v0  ;;  %v8802_v12 = vld [vmem:[#allocation5 + $0x78c] sm:$0xf]  ;;  %v2602_v16 = vpop.f32.mrf.mxu0  ;;  %v7074_v46 = vld [vmem:[#allocation5 + $0x978] sm:$0xf0] }
 0x160   :  { %2838 = vmatpush.bf16.msrb.mxu1 %v6389_v13  ;;  %v8834_v36 = vld [vmem:[#allocation5 + $0x88c] sm:$0xf]  ;;  %v7237_v13 = vor.u32 %v8902_v3, %v7234_v5  ;;  %v6802_v59 = vld [vmem:[#allocation5 + $0x758] sm:$0xf0] }
 0x161   :  { %2852 = vmatpush.bf16.msrb.mxu2 %v6517_v14  ;;  %v6962_v14 = vld [vmem:[#allocation5 + $0x898] sm:$0xf0]  ;;  %v8866_v15 = vld [vmem:[#allocation5 + $0x98c] sm:$0xf] }
 0x162   :  { %2825 = vmatmul.bf16.vlgmr.msrb.gmra.mxu0 %v9559_v17  ;;  %v6834_v17 = vld [vmem:[#allocation5 + $0x798] sm:$0xf0]  ;;  %v8798_v25 = vld [vmem:[#allocation5 + $0x76c] sm:$0xf] }
 0x163   :  { %2866 = vmatpush.bf16.msrb.mxu3 %v6645_v18  ;;  %2873 = vmatpush.bf16.msra.mxu0 %v6885_v21  ;;  %v7218_v18 = vld [vmem:[#allocation5 + $0xa98] sm:$0xf0]  ;;  %v6837_v21 = vor.u32 %v8802_v12, %v6834_v17  ;;  %v8862_v45 = vld [vmem:[#allocation5 + $0x96c] sm:$0xf] }
 0x164   :  { %2887 = vmatpush.bf16.msra.mxu1 %v7013_v23  ;;  %2853 = vmatmul.bf16.vlgmr.msrb.gmra.mxu2 %v9567_v44  ;;  %v7090_v44 = vld [vmem:[#allocation5 + $0x998] sm:$0xf0]  ;;  %v2616_v23 = vpop.f32.mrf.mxu1  ;;  %v7077_v56 = vor.u32 %v8862_v45, %v7074_v46  ;;  %v8794_v57 = vld [vmem:[#allocation5 + $0x74c] sm:$0xf] }
 0x165   :  { %2901 = vmatpush.bf16.msra.mxu2 %v7141_v10  ;;  %2839 = vmatmul.bf16.vlgmr.msrb.gmra.mxu1 %v9563_v39  ;;  %v8898_v39 = vld [vmem:[#allocation5 + $0xa8c] sm:$0xf]  ;;  %v6965_v10 = vor.u32 %v8834_v36, %v6962_v14  ;;  %v7093_v58 = vor.u32 %v8866_v15, %v7090_v44  ;;  %v6930_v31 = vld [vmem:[#allocation5 + $0x858] sm:$0xf0] }
 0x166   :  { %2867 = vmatmul.bf16.vlgmr.msrb.gmra.mxu3 %v9565_v43  ;;  %v2603_v43 = vadd.f32 %v2602_v16, %v9662_v22  ;;  %v7221_v35 = vor.u32 %v8898_v39, %v7218_v18  ;;  %v6821_v22 = vor.u32 %v8798_v25, %v6818_v26  ;;  %v8858_v2 = vld [vmem:[#allocation5 + $0x94c] sm:$0xf]  ;;  %v7058_v3 = vld [vmem:[#allocation5 + $0x958] sm:$0xf0] }
 0x167   :  { %2915 = vmatpush.bf16.msra.mxu3 %v7269_v1  ;;  %2874 = vmatpush.bf16.msra.mxu0 %v6869_v50  ;;  %v8830_v1 = vld [vmem:[#allocation5 + $0x86c] sm:$0xf]  ;;  %v7061_v12 = vor.u32 %v8858_v2, %v7058_v3  ;;  %v6786_v36 = vld [vmem:[#allocation5 + $0x738] sm:$0xf0] }
 0x168   :  { %2888 = vmatpush.bf16.msra.mxu1 %v6997_v53  ;;  %v9673_v40 = vadd.f32 %v2616_v23, %v2603_v43  ;;  %v8894_v50 = vld [vmem:[#allocation5 + $0xa6c] sm:$0xf]  ;;  %v7202_v53 = vld [vmem:[#allocation5 + $0xa78] sm:$0xf0] }
 0x169   :  { %2902 = vmatpush.bf16.msra.mxu2 %v7125_v54  ;;  %v6949_v54 = vor.u32 %v8830_v1, %v6946_v41  ;;  %v7205_v0 = vor.u32 %v8894_v50, %v7202_v53  ;;  %v8890_v5 = vld [vmem:[#allocation5 + $0xa4c] sm:$0xf]  ;;  %v6914_v15 = vld [vmem:[#allocation5 + $0x838] sm:$0xf0] }
 0x16a   :  { %v8790_v17 = vld [vmem:[#allocation5 + $0x72c] sm:$0xf]  ;;  %v7042_v16 = vld [vmem:[#allocation5 + $0x938] sm:$0xf0] }
 0x16b   :  { %2916 = vmatpush.bf16.msra.mxu3 %v7253_v60  ;;  %2875 = vmatpush.bf16.msra.mxu0 %v6853_v8  ;;  %v8826_v60 = vld [vmem:[#allocation5 + $0x84c] sm:$0xf]  ;;  %v7186_v8 = vld [vmem:[#allocation5 + $0xa58] sm:$0xf0]  ;;  %v6789_v43 = vor.u32 %v8790_v17, %v6786_v36 }
 0x16c   :  { %2889 = vmatpush.bf16.msra.mxu1 %v6981_v9  ;;  %v6805_v9 = vor.u32 %v8794_v57, %v6802_v59  ;;  %v7189_v14 = vor.u32 %v8890_v5, %v7186_v8  ;;  %v8854_v44 = vld [vmem:[#allocation5 + $0x92c] sm:$0xf]  ;;  %v7170_v18 = vld [vmem:[#allocation5 + $0xa38] sm:$0xf0]  ;;  %v9681_v57 = vpop.f32.mrf.mxu3 }
 0x16d   :  { %2903 = vmatpush.bf16.msra.mxu2 %v7109_v11  ;;  %v6933_v11 = vor.u32 %v8826_v60, %v6930_v31  ;;  %v8886_v39 = vld [vmem:[#allocation5 + $0xa2c] sm:$0xf]  ;;  %v7045_v23 = vor.u32 %v8854_v44, %v7042_v16  ;;  %v6898_v1 = vld [vmem:[#allocation5 + $0x818] sm:$0xf0]  ;;  %v9685_v31 = vpop.f32.mrf.mxu1 }
 0x16e   :  { %v8818_v25 = vld [vmem:[#allocation5 + $0x80c] sm:$0xf]  ;;  %v7173_v26 = vor.u32 %v8886_v39, %v7170_v18  ;;  %v7026_v41 = vld [vmem:[#allocation5 + $0x918] sm:$0xf0]  ;;  %9930 = vst [vmem:[#allocation24_spill] sm:$0xff] %v9685_v31 }
 0x16f   :  { %2917 = vmatpush.bf16.msra.mxu3 %v7237_v13  ;;  %2876 = vmatpush.bf16.msra.mxu0 %v6837_v21  ;;  %v8822_v13 = vld [vmem:[#allocation5 + $0x82c] sm:$0xf]  ;;  %v7154_v46 = vld [vmem:[#allocation5 + $0xa18] sm:$0xf0]  ;;  %v6901_v53 = vor.u32 %v8818_v25, %v6898_v1 }
 0x170   :  { %2890 = vmatpush.bf16.msra.mxu1 %v6965_v10  ;;  %v6917_v21 = vor.u32 %v8822_v13, %v6914_v15  ;;  %v8786_v10 = vld [vmem:[#allocation5 + $0x70c] sm:$0xf] }
 0x171   :  { %2904 = vmatpush.bf16.msra.mxu2 %v7093_v58  ;;  %v6770_v58 = vld [vmem:[#allocation5 + $0x718] sm:$0xf0]  ;;  %v8882_v45 = vld [vmem:[#allocation5 + $0xa0c] sm:$0xf] }
 0x172   :  { %v6773_v50 = vor.u32 %v8786_v10, %v6770_v58  ;;  %v9697_v44 = vld [vmem:[#allocation7 + $0x8] sm:$0x77] }
 0x173   :  { %2918 = vmatpush.bf16.msra.mxu3 %v7221_v35  ;;  %2877 = vmatpush.bf16.msra.mxu0 %v6821_v22  ;;  %v8850_v35 = vld [vmem:[#allocation5 + $0x90c] sm:$0xf]  ;;  %9931 = vst [vmem:[#allocation25_spill] sm:$0xff] %v9697_v44  ;;  %v487_v18 = vperm.slane %v9697_v44, 0  ;;  %v488_v10 = vperm.slane %v9697_v44, 4 }
 0x174   :  { %2891 = vmatpush.bf16.msra.mxu1 %v6949_v54  ;;  %v7029_v22 = vor.u32 %v8850_v35, %v7026_v41  ;;  %v7157_v54 = vor.u32 %v8882_v45, %v7154_v46  ;;  %v2644_v60 = vpop.f32.mrf.mxu3 }
 0x175   :  { %2905 = vmatpush.bf16.msra.mxu2 %v7077_v56  ;;  %v9679_v56 = vpop.f32.mrf.mxu2  ;;  %v496_v1 = vperm.slane %v488_v10, 0 }
 0x177   :  { %2919 = vmatpush.bf16.msra.mxu3 %v7205_v0  ;;  %2878 = vmatpush.bf16.msra.mxu0 %v6805_v9  ;;  %v9683_v0 = vpop.f32.mrf.mxu0 }
 0x178   :  { %2892 = vmatpush.bf16.msra.mxu1 %v6933_v11 }
 0x179   :  { %2906 = vmatpush.bf16.msra.mxu2 %v7061_v12 }
 0x17b   :  { %2920 = vmatpush.bf16.msra.mxu3 %v7189_v14  ;;  %2879 = vmatpush.bf16.msra.mxu0 %v6789_v43 }
 0x17c   :  { %2893 = vmatpush.bf16.msra.mxu1 %v6917_v21  ;;  %v2646_v3 = vpop.f32.mrf.mxu3 }
 0x17d   :  { %2907 = vmatpush.bf16.msra.mxu2 %v7045_v23  ;;  %v2630_v59 = vpop.f32.mrf.mxu2  ;;  %v495_v23 = vperm.slane %v487_v18, 0 }
 0x17f   :  { %2921 = vmatpush.bf16.msra.mxu3 %v7173_v26  ;;  %2880 = vmatpush.bf16.msra.mxu0 %v6773_v50  ;;  %v2658_v5 = vpop.f32.mrf.mxu0  ;;  %v2631_v26 = vadd.f32 %v2630_v59, %v495_v23  ;;  %v2325_v50 = vadd.f32 %v9601_v7, %v9596_v30 }
 0x180   :  { %2894 = vmatpush.bf16.msra.mxu1 %v6901_v53 }
 0x181   :  { %2908 = vmatpush.bf16.msra.mxu2 %v7029_v22  ;;  %v2645_v45 = vadd.f32 %v2644_v60, %v2631_v26  ;;  %v2479_v22 = vadd.f32 %v9645_v32, %v9634_v6  ;;  %v2339_v59 = vadd.f32 %v9603_v19, %v2325_v50 }
 0x182   :  { %2881 = vmatmul.bf16.vlgmr.msra.gmra.mxu0 %v9569_v47  ;;  %v2672_v47 = vpop.f32.mrf.mxu1 }
 0x183   :  { %2922 = vmatpush.bf16.msra.mxu3 %v7157_v54  ;;  %2895 = vmatmul.bf16.vlgmr.msra.gmra.mxu1 %v9575_v29  ;;  %v2659_v54 = vadd.f32 %v2658_v5, %v2645_v45  ;;  %v2493_v10 = vadd.f32 %v9649_v52, %v2479_v22  ;;  %v2353_v30 = vadd.f32 %v9608_v38, %v2339_v59 }
 0x184   :  { %2909 = vmatmul.bf16.vlgmr.msra.gmra.mxu2 %v9579_v34 }
 0x185   :  { %v2632_v2 = vpop.f32.mrf.mxu2  ;;  %v2507_v7 = vadd.f32 %v9651_v55, %v2493_v10  ;;  %v2367_v19 = vadd.f32 %v9611_v49, %v2353_v30 }
 0x186   :  { %2923 = vmatmul.bf16.vlgmr.msra.gmra.mxu3 %v9577_v33  ;;  %v2633_v44 = vadd.f32 %v2632_v2, %v495_v23 }
 0x187   :  { %v2660_v9 = vpop.f32.mrf.mxu0  ;;  %v2521_v5 = vadd.f32 %v9657_v20, %v2507_v7  ;;  %v2381_v55 = vadd.f32 %v9616_v28, %v2367_v19 }
 0x189   :  { %v2700_v29 = vpop.f32.mrf.mxu3 }
 0x18a   :  { %v2674_v34 = vpop.f32.mrf.mxu1 }
 0x18d   :  { %v2686_v8 = vpop.f32.mrf.mxu2 }
 0x191   :  { %v9687_v33 = vpop.f32.mrf.mxu3 }
 0x195   :  { %v2688_v11 = vpop.f32.mrf.mxu2 }
 0x19f   :  { %v2714_v12 = vpop.f32.mrf.mxu0 }
 0x1a2   :  { %v2728_v17 = vpop.f32.mrf.mxu1 }
 0x1a7   :  { %v9689_v36 = vpop.f32.mrf.mxu2  ;;  %v9693_v14 = vpop.f32.mrf.mxu0 }
 0x1a9   :  { %v9691_v13 = vpop.f32.mrf.mxu3 }
 0x1aa   :  { %v9695_v15 = vpop.f32.mrf.mxu1 }
 0x1af   :  { %v9699_v16 = vpop.f32.mrf.mxu2 }
 0x1b1   :  { %v9701_v39 = vpop.f32.mrf.mxu3 }
 0x1b2   :  { %9932 = vst [vmem:[#allocation26_spill] sm:$0xff] %v9701_v39 }
 0x1bf   :  { %v9704_v43 = vpop.f32.mrf.mxu0 }
 0x1c2   :  { %v2784_v21 = vpop.f32.mrf.mxu1 }
 0x1c3   :  { %v2785_v46 = vadd.f32 %v2784_v21, %v496_v1  ;;  %v2647_v21 = vadd.f32 %v2646_v3, %v2633_v44  ;;  %v2535_v3 = vadd.f32 %v9659_v24, %v2521_v5  ;;  %v9937_v5 = vld [vmem:[#allocation23_spill] sm:$0xff] }
 0x1c5   :  { %v2661_v2 = vadd.f32 %v2660_v9, %v2647_v21  ;;  %v9934_v21 = vld [vmem:[#allocation22_spill] sm:$0xff] }
 0x1c7   :  { %v2798_v58 = vpop.f32.mrf.mxu2  ;;  %v9707_v35 = vpop.f32.mrf.mxu0  ;;  %v2675_v44 = vadd.f32 %v2674_v34, %v2661_v2 }
 0x1c8   :  { %9933 = vst [vmem:[#allocation27_spill] sm:$0xff] %v9707_v35  ;;  %v2799_v18 = vadd.f32 %v2798_v58, %v2785_v46  ;;  %v2673_v35 = vadd.f32 %v2672_v47, %v2659_v54 }
 0x1c9   :  { %v2812_v25 = vpop.f32.mrf.mxu3 }
 0x1ca   :  { %v2786_v41 = vpop.f32.mrf.mxu1  ;;  %v2813_v31 = vadd.f32 %v2812_v25, %v2799_v18  ;;  %v2687_v4 = vadd.f32 %v2686_v8, %v2673_v35 }
 0x1cb   :  { %v2787_v26 = vadd.f32 %v2786_v41, %v496_v1  ;;  %v2395_v41 = vadd.f32 %v9618_v37, %v2381_v55 }
 0x1cc   :  { %v2701_v52 = vadd.f32 %v2700_v29, %v2687_v4 }
 0x1cd   :  { %v2409_v28 = vadd.f32 %v9624_v63, %v2395_v41 }
 0x1ce   :  { %v2715_v1 = vadd.f32 %v2714_v12, %v2701_v52 }
 0x1cf   :  { %v2800_v53 = vpop.f32.mrf.mxu2 }
 0x1d0   :  { %v2801_v23 = vadd.f32 %v2800_v53, %v2787_v26  ;;  %v2729_v9 = vadd.f32 %v2728_v17, %v2715_v1  ;;  %v9935_v26 = vld [vmem:[#allocation24_spill] sm:$0xff]  ;;  %v9484_v1 = vmov 512.0  }
 0x1d1   :  { %v2814_v27 = vpop.f32.mrf.mxu3  ;;  %9255 = vrcp.f32 %v9484_v1 }
 0x1d2   :  { %v2815_v38 = vadd.f32 %v2814_v27, %v2801_v23  ;;  %v2743_v24 = vadd.f32 %v9689_v36, %v2729_v9 }
 0x1d4   :  { %v2757_v37 = vadd.f32 %v9691_v13, %v2743_v24 }
 0x1d6   :  { %v2771_v53 = vadd.f32 %v9704_v43, %v2757_v37 }
 0x1df   :  { %v2826_v39 = vpop.f32.mrf.mxu0 }
 0x1e0   :  { %v2827_v6 = vadd.f32 %v2826_v39, %v2813_v31  ;;  %v2549_v31 = vadd.f32 %v9664_v42, %v2535_v3  ;;  %v2689_v39 = vadd.f32 %v2688_v11, %v2675_v44 }
 0x1e2   :  { %v2840_v60 = vpop.f32.mrf.mxu1  ;;  %v2563_v4 = vadd.f32 %v9666_v48, %v2549_v31  ;;  %v2703_v29 = vadd.f32 %v9687_v33, %v2689_v39  ;;  %v2423_v48 = vadd.f32 %v9629_v61, %v2409_v28 }
 0x1e3   :  { %v2841_v47 = vadd.f32 %v2840_v60, %v2827_v6 }
 0x1e4   :  { %v2577_v42 = vadd.f32 %v9679_v56, %v2563_v4  ;;  %v2717_v11 = vadd.f32 %v9693_v14, %v2703_v29  ;;  %v2437_v63 = vadd.f32 %v9632_v62, %v2423_v48  ;;  %v2929_v56 = vadd.f32 %v9673_v40, %v9627_v51  ;;  %v9936_v62 = vld [vmem:[#allocation26_spill] sm:$0xff] }
 0x1e6   :  { %v2591_v33 = vadd.f32 %v9681_v57, %v2577_v42  ;;  %v2731_v36 = vadd.f32 %v9695_v15, %v2717_v11  ;;  %v2930_v15 = vadd.f32 %v2929_v56, %v2771_v53  ;;  %v2451_v43 = vadd.f32 %v9934_v21, %v2437_v63  ;;  %v7496_v56 = vld [vmem:[#allocation8 + $0x1c0] sm:$0xf] }
 0x1e7   :  { %v2854_v32 = vpop.f32.mrf.mxu2  ;;  %v2828_v25 = vpop.f32.mrf.mxu0 }
 0x1e8   :  { %v2855_v20 = vadd.f32 %v2854_v32, %v2841_v47  ;;  %v2829_v35 = vadd.f32 %v2828_v25, %v2815_v38  ;;  %v2605_v54 = vadd.f32 %v9683_v0, %v2591_v33  ;;  %v2745_v13 = vadd.f32 %v9699_v16, %v2731_v36  ;;  %v9938_v0 = vld [vmem:[#allocation27_spill] sm:$0xff]  ;;  %v9256_v38 = vpop.eup %9255 }
 0x1e9   :  { %v2868_v58 = vpop.f32.mrf.mxu3  ;;  %v2465_v2 = vadd.f32 %v9937_v5, %v2451_v43  ;;  %v2940_v55 = vmul.f32 512.0, %v9256_v38  ;;  %vm2944_vm0 = vweird.f32 %v9256_v38  ;;  %v7464_v43 = vld [vmem:[#allocation8 + $0x180] sm:$0xf] }
 0x1ea   :  { %v2842_v8 = vpop.f32.mrf.mxu1  ;;  %v2869_v34 = vadd.f32 %v2868_v58, %v2855_v20  ;;  %v2619_v30 = vadd.f32 %v9935_v26, %v2605_v54  ;;  %v2759_v7 = vadd.f32 %v9936_v62, %v2745_v13  ;;  %v7752_v54 = vld [vmem:[#allocation8 + $0x3c0] sm:$0xf] }
 0x1eb   :  { %v2843_v17 = vadd.f32 %v2842_v8, %v2829_v35  ;;  %v2941_v8 = vsub.f32 1.0, %v2940_v55  ;;  %v8965_v26 = vld [vmem:[#allocation8 + $0x19c] sm:$0xf0] }
 0x1ec   :  { %v2773_v23 = vadd.f32 %v9938_v0, %v2759_v7  ;;  %v2934_v19 = vadd.f32 %v2619_v30, %v2465_v2  ;;  %v7465_v62 = vor.u32 %v8965_v26, %v7464_v43  ;;  %v9029_v7 = vld [vmem:[#allocation8 + $0x39c] sm:$0xf0] }
 0x1ed   :  { %v2942_v31 = vmul.f32 %v9256_v38, %v2941_v8  ;;  %v8232_v0 = vld [vmem:[#allocation8 + $0x780] sm:$0xf] }
 0x1ee   :  { %v2935_v3 = vadd.f32 %v2934_v19, %v2773_v23  ;;  %v8957_v19 = vld [vmem:[#allocation8 + $0x15c] sm:$0xf0] }
 0x1ef   :  { %v2856_v49 = vpop.f32.mrf.mxu2  ;;  %v2943_v39 = vadd.f32 %v9256_v38, %v2942_v31  ;;  %v8200_v55 = vld [vmem:[#allocation8 + $0x740] sm:$0xf] }
 0x1f0   :  { %v2857_v50 = vadd.f32 %v2856_v49, %v2843_v17  ;;  %v9149_v8 = vld [vmem:[#allocation8 + $0x75c] sm:$0xf0] }
 0x1f1   :  { %v2870_v27 = vpop.f32.mrf.mxu3  ;;  %v2945_v20 = vsel %vm2944_vm0, %v9256_v38, %v2943_v39  ;;  %v8201_v31 = vor.u32 %v9149_v8, %v8200_v55  ;;  %v7400_v39 = vld [vmem:[#allocation8 + $0x100] sm:$0xf] }
 0x1f2   :  { %v2871_v18 = vadd.f32 %v2870_v27, %v2857_v50  ;;  %v8104_v26 = vld [vmem:[#allocation8 + $0x680] sm:$0xf] }
 0x1f3   :  { %v7784_v55 = vld [vmem:[#allocation8 + $0x400] sm:$0xf] }
 0x1f4   :  { %v9045_v8 = vld [vmem:[#allocation8 + $0x41c] sm:$0xf0] }
 0x1ff   :  { %v2882_v12 = vpop.f32.mrf.mxu0 }
 0x200   :  { %v2883_v45 = vadd.f32 %v2882_v12, %v2869_v34  ;;  %v2896_v46 = vpop.f32.mrf.mxu1 }
 0x202   :  { %v2897_v22 = vadd.f32 %v2896_v46, %v2883_v45 }
 0x207   :  { %v2910_v14 = vpop.f32.mrf.mxu2  ;;  %v2884_v10 = vpop.f32.mrf.mxu0 }
 0x208   :  { %v2911_v59 = vadd.f32 %v2910_v14, %v2897_v22  ;;  %v2885_v60 = vadd.f32 %v2884_v10, %v2871_v18  ;;  %v2898_v32 = vpop.f32.mrf.mxu1  ;;  %v8973_v14 = vld [vmem:[#allocation8 + $0x1dc] sm:$0xf0] }
 0x209   :  { %v2924_v61 = vpop.f32.mrf.mxu3  ;;  %v7497_v13 = vor.u32 %v8973_v14, %v7496_v56  ;;  %v9037_v18 = vld [vmem:[#allocation8 + $0x3dc] sm:$0xf0] }
 0x20a   :  { %v2925_v57 = vadd.f32 %v2924_v61, %v2911_v59  ;;  %v2899_v16 = vadd.f32 %v2898_v32, %v2885_v60  ;;  %v8008_v59 = vld [vmem:[#allocation8 + $0x5c0] sm:$0xf]  ;;  %v7753_v10 = vor.u32 %v9037_v18, %v7752_v54 }
 0x20b   :  { %v9101_v61 = vld [vmem:[#allocation8 + $0x5dc] sm:$0xf0]  ;;  %4646 = vmatpush.bf16.msrb.mxu0 %v7497_v13 }
 0x20c   :  { %v2931_v6 = vadd.f32 %v2930_v15, %v2925_v57  ;;  %v8264_v60 = vld [vmem:[#allocation8 + $0x7c0] sm:$0xf]  ;;  %4660 = vmatpush.bf16.msrb.mxu1 %v7753_v10 }
 0x20d   :  { %v9165_v15 = vld [vmem:[#allocation8 + $0x7dc] sm:$0xf0] }
 0x20e   :  { %2932 = vadd.xlane.f32.xlu0 %v2931_v6  ;;  %v8265_v21 = vor.u32 %v9165_v15, %v8264_v60  ;;  %v7976_v6 = vld [vmem:[#allocation8 + $0x580] sm:$0xf] }
 0x20f   :  { %v2912_v58 = vpop.f32.mrf.mxu2  ;;  %v9093_v32 = vld [vmem:[#allocation8 + $0x59c] sm:$0xf0]  ;;  %4647 = vmatpush.bf16.msrb.mxu0 %v7465_v62 }
 0x210   :  { %v2913_v52 = vadd.f32 %v2912_v58, %v2899_v16  ;;  %4688 = vmatpush.bf16.msrb.mxu3 %v8265_v21  ;;  %v7432_v58 = vld [vmem:[#allocation8 + $0x140] sm:$0xf] }
 0x211   :  { %v2926_v47 = vpop.f32.mrf.mxu3  ;;  %v8136_v14 = vld [vmem:[#allocation8 + $0x6c0] sm:$0xf] }
 0x212   :  { %v2927_v25 = vadd.f32 %v2926_v47, %v2913_v52  ;;  %v7688_v52 = vld [vmem:[#allocation8 + $0x340] sm:$0xf]  ;;  %v7433_v47 = vor.u32 %v8957_v19, %v7432_v58 }
 0x213   :  { %v9133_v54 = vld [vmem:[#allocation8 + $0x6dc] sm:$0xf0] }
 0x214   :  { %v2936_v44 = vadd.f32 %v2935_v3, %v2927_v25  ;;  %v7944_v3 = vld [vmem:[#allocation8 + $0x540] sm:$0xf]  ;;  %4648 = vmatpush.bf16.msrb.mxu0 %v7433_v47  ;;  %v8137_v13 = vor.u32 %v9133_v54, %v8136_v14  ;;  %v9025_v14 = vld [vmem:[#allocation8 + $0x384] sm:$0xf] }
 0x215   :  { %v7336_v18 = vld [vmem:[#allocation8 + $0x80] sm:$0xf]  ;;  %v7722_v54 = vld [vmem:[#allocation8 + $0x3a0] sm:$0xf0] }
 0x216   :  { %2937 = vadd.xlane.f32.xlu0 %v2936_v44  ;;  %v9085_v44 = vld [vmem:[#allocation8 + $0x55c] sm:$0xf0] }
 0x217   :  { %v7945_v38 = vor.u32 %v9085_v44, %v7944_v3  ;;  %v7848_v60 = vld [vmem:[#allocation8 + $0x480] sm:$0xf] }
 0x218   :  { %v9061_v15 = vld [vmem:[#allocation8 + $0x49c] sm:$0xf0] }
 0x219   :  { %v7849_v43 = vor.u32 %v9061_v15, %v7848_v60  ;;  %v8072_v19 = vld [vmem:[#allocation8 + $0x640] sm:$0xf]  ;;  %v8953_v15 = vld [vmem:[#allocation8 + $0x144] sm:$0xf] }
 0x21a   :  { %v8917_v3 = vld [vmem:[#allocation8 + $0x1c] sm:$0xf0] }
 0x21b   :  { %v7528_v44 = vld [vmem:[#allocation8 + $0x200] sm:$0xf] }
 0x281   :  { %v2933_v9 = vpop.xlane.xlu0 %2932 }
 0x282   :  { %v2946_v35 = vmul.f32 %v2945_v20, %v2933_v9  ;;  %v7656_v9 = vld [vmem:[#allocation8 + $0x300] sm:$0xf] }
 0x284   :  { %v9745_v41 = vsub.f32 %v9627_v51, %v2946_v35  ;;  %v9748_v49 = vsub.f32 %v9673_v40, %v2946_v35  ;;  %v9750_v4 = vsub.f32 %v2771_v53, %v2946_v35  ;;  %v9752_v29 = vsub.f32 %v2925_v57, %v2946_v35 }
 0x285   :  { %v8009_v57 = vor.u32 %v9101_v61, %v8008_v59  ;;  %v8933_v59 = vld [vmem:[#allocation8 + $0x9c] sm:$0xf0] }
 0x286   :  { %v2956_v24 = vmul.f32 %v9745_v41, %v9745_v41  ;;  %v2957_v34 = vmul.f32 %v9748_v49, %v9748_v49  ;;  %v2958_v27 = vmul.f32 %v9750_v4, %v9750_v4  ;;  %v2959_v40 = vmul.f32 %v9752_v29, %v9752_v29  ;;  %v7592_v61 = vld [vmem:[#allocation8 + $0x280] sm:$0xf] }
 0x287   :  { %4674 = vmatpush.bf16.msrb.mxu2 %v8009_v57  ;;  %v7337_v10 = vor.u32 %v8933_v59, %v7336_v18  ;;  %v8997_v57 = vld [vmem:[#allocation8 + $0x29c] sm:$0xf0]  ;;  %v7725_v18 = vor.u32 %v9025_v14, %v7722_v54  ;;  %v7978_v59 = vld [vmem:[#allocation8 + $0x5a0] sm:$0xf0] }
 0x288   :  { %v2964_v12 = vadd.f32 %v2957_v34, %v2956_v24  ;;  %v9013_v24 = vld [vmem:[#allocation8 + $0x31c] sm:$0xf0]  ;;  %v7593_v21 = vor.u32 %v8997_v57, %v7592_v61  ;;  %v9153_v61 = vld [vmem:[#allocation8 + $0x784] sm:$0xf] }
 0x289   :  { %v2938_v28 = vpop.xlane.xlu0 %2937  ;;  %v7912_v34 = vld [vmem:[#allocation8 + $0x500] sm:$0xf]  ;;  %v7338_v14 = vld [vmem:[#allocation8 + $0xa0] sm:$0xf0] }
 0x28a   :  { %v2947_v51 = vmul.f32 %v2945_v20, %v2938_v28  ;;  %v2965_v42 = vadd.f32 %v2964_v12, %v2958_v27  ;;  %v8949_v20 = vld [vmem:[#allocation8 + $0x11c] sm:$0xf0]  ;;  %v7657_v12 = vor.u32 %v9013_v24, %v7656_v9  ;;  %v8969_v24 = vld [vmem:[#allocation8 + $0x1c4] sm:$0xf] }
 0x28b   :  { %v7401_v35 = vor.u32 %v8949_v20, %v7400_v39  ;;  %v9077_v27 = vld [vmem:[#allocation8 + $0x51c] sm:$0xf0]  ;;  %v7785_v20 = vor.u32 %v9045_v8, %v7784_v55  ;;  %v7914_v55 = vld [vmem:[#allocation8 + $0x520] sm:$0xf0] }
 0x28c   :  { %v9762_v11 = vsub.f32 %v2465_v2, %v2947_v51  ;;  %v9764_v17 = vsub.f32 %v2619_v30, %v2947_v51  ;;  %v2966_v45 = vadd.f32 %v2965_v42, %v2959_v40  ;;  %v9766_v46 = vsub.f32 %v2773_v23, %v2947_v51  ;;  %v7720_v30 = vld [vmem:[#allocation8 + $0x380] sm:$0xf]  ;;  %v9137_v8 = vld [vmem:[#allocation8 + $0x704] sm:$0xf] }
 0x28d   :  { %v9768_v37 = vsub.f32 %v2927_v25, %v2947_v51  ;;  %v7721_v5 = vor.u32 %v9029_v7, %v7720_v30  ;;  %v7977_v2 = vor.u32 %v9093_v32, %v7976_v6  ;;  %v9157_v23 = vld [vmem:[#allocation8 + $0x79c] sm:$0xf0]  ;;  %v7913_v28 = vor.u32 %v9077_v27, %v7912_v34  ;;  %4649 = vmatpush.bf16.msrb.mxu0 %v7401_v35  ;;  %v8993_v54 = vld [vmem:[#allocation8 + $0x284] sm:$0xf] }
 0x28e   :  { %2967 = vadd.xlane.f32.xlu1 %v2966_v45  ;;  %v2960_v50 = vmul.f32 %v9762_v11, %v9762_v11  ;;  %v2961_v48 = vmul.f32 %v9764_v17, %v9764_v17  ;;  %v2962_v33 = vmul.f32 %v9766_v46, %v9766_v46  ;;  %v8233_v16 = vor.u32 %v9157_v23, %v8232_v0  ;;  %v9021_v25 = vld [vmem:[#allocation8 + $0x35c] sm:$0xf0] }
 0x28f   :  { %v2963_v53 = vmul.f32 %v9768_v37, %v9768_v37  ;;  %4661 = vmatpush.bf16.msrb.mxu1 %v7721_v5  ;;  %4675 = vmatpush.bf16.msrb.mxu2 %v7977_v2  ;;  %v7689_v1 = vor.u32 %v9021_v25, %v7688_v52  ;;  %v8168_v51 = vld [vmem:[#allocation8 + $0x700] sm:$0xf] }
 0x290   :  { %v2969_v36 = vadd.f32 %v2961_v48, %v2960_v50  ;;  %4689 = vmatpush.bf16.msrb.mxu3 %v8233_v16  ;;  %v9141_v40 = vld [vmem:[#allocation8 + $0x71c] sm:$0xf0] }
 0x291   :  { %v8169_v42 = vor.u32 %v9141_v40, %v8168_v51  ;;  %v7368_v45 = vld [vmem:[#allocation8 + $0xc0] sm:$0xf]  ;;  %v7754_v40 = vld [vmem:[#allocation8 + $0x3e0] sm:$0xf0] }
 0x292   :  { %v2970_v22 = vadd.f32 %v2969_v36, %v2962_v33  ;;  %v8941_v50 = vld [vmem:[#allocation8 + $0xdc] sm:$0xf0] }
 0x293   :  { %4662 = vmatpush.bf16.msrb.mxu1 %v7689_v1  ;;  %4676 = vmatpush.bf16.msrb.mxu2 %v7945_v38  ;;  %v7624_v48 = vld [vmem:[#allocation8 + $0x2c0] sm:$0xf]  ;;  %v7369_v33 = vor.u32 %v8941_v50, %v7368_v45  ;;  %v8010_v45 = vld [vmem:[#allocation8 + $0x5e0] sm:$0xf0] }
 0x294   :  { %v2971_v63 = vadd.f32 %v2970_v22, %v2963_v53  ;;  %4690 = vmatpush.bf16.msrb.mxu3 %v8201_v31  ;;  %v9005_v36 = vld [vmem:[#allocation8 + $0x2dc] sm:$0xf0]  ;;  %v9161_v50 = vld [vmem:[#allocation8 + $0x7c4] sm:$0xf] }
 0x295   :  { %v7880_v53 = vld [vmem:[#allocation8 + $0x4c0] sm:$0xf]  ;;  %4650 = vmatpush.bf16.msrb.mxu0 %v7369_v33 }
 0x296   :  { %2972 = vadd.xlane.f32.xlu1 %v2971_v63  ;;  %v9069_v22 = vld [vmem:[#allocation8 + $0x4dc] sm:$0xf0]  ;;  %v7625_v63 = vor.u32 %v9005_v36, %v7624_v48  ;;  %v8266_v36 = vld [vmem:[#allocation8 + $0x7e0] sm:$0xf0] }
 0x297   :  { %4663 = vmatpush.bf16.msrb.mxu1 %v7657_v12  ;;  %4677 = vmatpush.bf16.msrb.mxu2 %v7913_v28  ;;  %v7881_v56 = vor.u32 %v9069_v22, %v7880_v53  ;;  %v9125_v30 = vld [vmem:[#allocation8 + $0x69c] sm:$0xf0]  ;;  %v7498_v12 = vld [vmem:[#allocation8 + $0x1e0] sm:$0xf0] }
 0x298   :  { %4691 = vmatpush.bf16.msrb.mxu3 %v8169_v42  ;;  %v8105_v62 = vor.u32 %v9125_v30, %v8104_v26  ;;  %v7304_v7 = vld [vmem:[#allocation8 + $0x40] sm:$0xf]  ;;  %v9033_v28 = vld [vmem:[#allocation8 + $0x3c4] sm:$0xf]  ;;  %v7501_v51 = vor.u32 %v8969_v24, %v7498_v12 }
 0x299   :  { %4651 = vmatpush.bf16.msrb.mxu0 %v7337_v10  ;;  %v8925_v6 = vld [vmem:[#allocation8 + $0x5c] sm:$0xf0]  ;;  %v9097_v42 = vld [vmem:[#allocation8 + $0x5c4] sm:$0xf]  ;;  %v7757_v48 = vor.u32 %v9033_v28, %v7754_v40 }
 0x29a   :  { %v7560_v32 = vld [vmem:[#allocation8 + $0x240] sm:$0xf]  ;;  %v7305_v5 = vor.u32 %v8925_v6, %v7304_v7  ;;  %v8013_v33 = vor.u32 %v9097_v42, %v8010_v45  ;;  %v8961_v53 = vld [vmem:[#allocation8 + $0x184] sm:$0xf] }
 0x29b   :  { %4664 = vmatpush.bf16.msrb.mxu1 %v7625_v63  ;;  %4678 = vmatpush.bf16.msrb.mxu2 %v7881_v56  ;;  %v8989_v2 = vld [vmem:[#allocation8 + $0x25c] sm:$0xf0]  ;;  %v7466_v22 = vld [vmem:[#allocation8 + $0x1a0] sm:$0xf0]  ;;  %v8269_v63 = vor.u32 %v9161_v50, %v8266_v36 }
 0x29c   :  { %4692 = vmatpush.bf16.msrb.mxu3 %v8137_v13  ;;  %v7816_v0 = vld [vmem:[#allocation8 + $0x440] sm:$0xf]  ;;  %v7561_v16 = vor.u32 %v8989_v2, %v7560_v32  ;;  %v7469_v56 = vor.u32 %v8961_v53, %v7466_v22  ;;  %v9089_v13 = vld [vmem:[#allocation8 + $0x584] sm:$0xf] }
 0x29d   :  { %v9053_v23 = vld [vmem:[#allocation8 + $0x45c] sm:$0xf0]  ;;  %4652 = vmatpush.bf16.msrb.mxu0 %v7305_v5  ;;  %v8234_v10 = vld [vmem:[#allocation8 + $0x7a0] sm:$0xf0]  ;;  %v7981_v57 = vor.u32 %v9089_v13, %v7978_v59 }
 0x29e   :  { %v7817_v58 = vor.u32 %v9053_v23, %v7816_v0  ;;  %v9117_v52 = vld [vmem:[#allocation8 + $0x65c] sm:$0xf0]  ;;  %v8237_v60 = vor.u32 %v9153_v61, %v8234_v10  ;;  %v9081_v7 = vld [vmem:[#allocation8 + $0x544] sm:$0xf] }
 0x29f   :  { %4665 = vmatpush.bf16.msrb.mxu1 %v7593_v21  ;;  %4679 = vmatpush.bf16.msrb.mxu2 %v7849_v43  ;;  %v8073_v47 = vor.u32 %v9117_v52, %v8072_v19  ;;  %v7272_v25 = vld [vmem:[#allocation8] sm:$0xf]  ;;  %v7434_v21 = vld [vmem:[#allocation8 + $0x160] sm:$0xf0] }
 0x2a0   :  { %4693 = vmatpush.bf16.msrb.mxu3 %v8105_v62  ;;  %v7273_v1 = vor.u32 %v8917_v3, %v7272_v25  ;;  %v8981_v38 = vld [vmem:[#allocation8 + $0x21c] sm:$0xf0]  ;;  %v9017_v43 = vld [vmem:[#allocation8 + $0x344] sm:$0xf]  ;;  %v7437_v30 = vor.u32 %v8953_v15, %v7434_v21 }
 0x2a1   :  { %v7529_v39 = vor.u32 %v8981_v38, %v7528_v44  ;;  %v8040_v9 = vld [vmem:[#allocation8 + $0x600] sm:$0xf]  ;;  %v7690_v62 = vld [vmem:[#allocation8 + $0x360] sm:$0xf0] }
 0x2a2   :  { %v9109_v35 = vld [vmem:[#allocation8 + $0x61c] sm:$0xf0]  ;;  %4653 = vmatpush.bf16.msrb.mxu0 %v7273_v1  ;;  %v7946_v6 = vld [vmem:[#allocation8 + $0x560] sm:$0xf0] }
 0x2a3   :  { %4666 = vmatpush.bf16.msrb.mxu1 %v7561_v16  ;;  %4680 = vmatpush.bf16.msrb.mxu2 %v7817_v58  ;;  %v8041_v27 = vor.u32 %v9109_v35, %v8040_v9  ;;  %v9145_v2 = vld [vmem:[#allocation8 + $0x744] sm:$0xf]  ;;  %v7693_v16 = vor.u32 %v9017_v43, %v7690_v62  ;;  %v7949_v58 = vor.u32 %v9081_v7, %v7946_v6 }
 0x2a4   :  { %4694 = vmatpush.bf16.msrb.mxu3 %v8073_v47  ;;  %v8202_v0 = vld [vmem:[#allocation8 + $0x760] sm:$0xf0] }
 0x2a5   :  { %v8205_v19 = vor.u32 %v9145_v2, %v8202_v0  ;;  %v8945_v52 = vld [vmem:[#allocation8 + $0x104] sm:$0xf] }
 0x2a6   :  { %4702 = vmatpush.bf16.msra.mxu0 %v7501_v51  ;;  %v7402_v25 = vld [vmem:[#allocation8 + $0x120] sm:$0xf0] }
 0x2a7   :  { %4667 = vmatpush.bf16.msrb.mxu1 %v7529_v39  ;;  %4681 = vmatpush.bf16.msrb.mxu2 %v7785_v20  ;;  %v9009_v3 = vld [vmem:[#allocation8 + $0x304] sm:$0xf]  ;;  %v7405_v1 = vor.u32 %v8945_v52, %v7402_v25 }
 0x2a8   :  { %4695 = vmatpush.bf16.msrb.mxu3 %v8041_v27  ;;  %v7658_v44 = vld [vmem:[#allocation8 + $0x320] sm:$0xf0] }
 0x2a9   :  { %v9073_v38 = vld [vmem:[#allocation8 + $0x504] sm:$0xf]  ;;  %v7661_v39 = vor.u32 %v9009_v3, %v7658_v44 }
 0x2aa   :  { %4703 = vmatpush.bf16.msra.mxu0 %v7469_v56  ;;  %v7917_v20 = vor.u32 %v9073_v38, %v7914_v55  ;;  %v8170_v9 = vld [vmem:[#allocation8 + $0x720] sm:$0xf0] }
 0x2ab   :  { %4716 = vmatpush.bf16.msra.mxu1 %v7757_v48  ;;  %4730 = vmatpush.bf16.msra.mxu2 %v8013_v33  ;;  %v8173_v35 = vor.u32 %v9137_v8, %v8170_v9  ;;  %v8937_v24 = vld [vmem:[#allocation8 + $0xc4] sm:$0xf] }
 0x2ac   :  { %4744 = vmatpush.bf16.msra.mxu3 %v8269_v63  ;;  %v7370_v27 = vld [vmem:[#allocation8 + $0xe0] sm:$0xf0] }
 0x2ad   :  { %v9001_v12 = vld [vmem:[#allocation8 + $0x2c4] sm:$0xf]  ;;  %v7373_v51 = vor.u32 %v8937_v24, %v7370_v27 }
 0x2ae   :  { %4704 = vmatpush.bf16.msra.mxu0 %v7437_v30  ;;  %v7626_v40 = vld [vmem:[#allocation8 + $0x2e0] sm:$0xf0] }
 0x2af   :  { %4717 = vmatpush.bf16.msra.mxu1 %v7725_v18  ;;  %4731 = vmatpush.bf16.msra.mxu2 %v7981_v57  ;;  %v9065_v42 = vld [vmem:[#allocation8 + $0x4c4] sm:$0xf]  ;;  %v7629_v50 = vor.u32 %v9001_v12, %v7626_v40 }
 0x2b0   :  { %4745 = vmatpush.bf16.msra.mxu3 %v8237_v60  ;;  %v7882_v48 = vld [vmem:[#allocation8 + $0x4e0] sm:$0xf0] }
 0x2b1   :  { %v9129_v33 = vld [vmem:[#allocation8 + $0x6c4] sm:$0xf]  ;;  %v7885_v63 = vor.u32 %v9065_v42, %v7882_v48 }
 0x2b2   :  { %4705 = vmatpush.bf16.msra.mxu0 %v7405_v1  ;;  %v8138_v36 = vld [vmem:[#allocation8 + $0x6e0] sm:$0xf0] }
 0x2b3   :  { %4718 = vmatpush.bf16.msra.mxu1 %v7693_v16  ;;  %4732 = vmatpush.bf16.msra.mxu2 %v7949_v58  ;;  %v8929_v56 = vld [vmem:[#allocation8 + $0x84] sm:$0xf]  ;;  %v8141_v13 = vor.u32 %v9129_v33, %v8138_v36 }
 0x2b4   :  { %4746 = vmatpush.bf16.msra.mxu3 %v8205_v19  ;;  %v7594_v18 = vld [vmem:[#allocation8 + $0x2a0] sm:$0xf0]  ;;  %v7341_v60 = vor.u32 %v8929_v56, %v7338_v14 }
 0x2b5   :  { %v9057_v59 = vld [vmem:[#allocation8 + $0x484] sm:$0xf]  ;;  %v7597_v6 = vor.u32 %v8993_v54, %v7594_v18  ;;  %v9265_v54 = vld [vmem:[#allocation7] sm:$0x77] }
 0x2b6   :  { %v7850_v61 = vld [vmem:[#allocation8 + $0x4a0] sm:$0xf0]  ;;  %4706 = vmatpush.bf16.msra.mxu0 %v7373_v51  ;;  %v3041_v18 = vperm.slane %v9265_v54, 5 }
 0x2b7   :  { %4719 = vmatpush.bf16.msra.mxu1 %v7661_v39  ;;  %4733 = vmatpush.bf16.msra.mxu2 %v7917_v20  ;;  %v9121_v15 = vld [vmem:[#allocation8 + $0x684] sm:$0xf] }
 0x2b8   :  { %4747 = vmatpush.bf16.msra.mxu3 %v8173_v35  ;;  %v8106_v21 = vld [vmem:[#allocation8 + $0x6a0] sm:$0xf0] }
 0x2b9   :  { %v7306_v30 = vld [vmem:[#allocation8 + $0x60] sm:$0xf0]  ;;  %v8109_v16 = vor.u32 %v9121_v15, %v8106_v21  ;;  %v3060_v21 = vperm.slane %v9265_v54, 2 }
 0x2ba   :  { %v8985_v2 = vld [vmem:[#allocation8 + $0x244] sm:$0xf]  ;;  %4707 = vmatpush.bf16.msra.mxu0 %v7341_v60 }
 0x2bb   :  { %4720 = vmatpush.bf16.msra.mxu1 %v7629_v50  ;;  %4734 = vmatpush.bf16.msra.mxu2 %v7885_v63  ;;  %v7562_v0 = vld [vmem:[#allocation8 + $0x260] sm:$0xf0] }
 0x2bc   :  { %4748 = vmatpush.bf16.msra.mxu3 %v8141_v13  ;;  %v9049_v58 = vld [vmem:[#allocation8 + $0x444] sm:$0xf]  ;;  %v7565_v38 = vor.u32 %v8985_v2, %v7562_v0  ;;  %v3040_v13 = vperm.slane %v9265_v54, 1 }
 0x2bd   :  { %v7818_v19 = vld [vmem:[#allocation8 + $0x460] sm:$0xf0] }
 0x2be   :  { %v9113_v52 = vld [vmem:[#allocation8 + $0x644] sm:$0xf]  ;;  %v7821_v55 = vor.u32 %v9049_v58, %v7818_v19 }
 0x2bf   :  { %v8074_v44 = vld [vmem:[#allocation8 + $0x660] sm:$0xf0]  ;;  %4721 = vmatpush.bf16.msra.mxu1 %v7597_v6 }
 0x2c0   :  { %v8913_v1 = vld [vmem:[#allocation8 + $0x4] sm:$0xf]  ;;  %4749 = vmatpush.bf16.msra.mxu3 %v8109_v16  ;;  %v8077_v39 = vor.u32 %v9113_v52, %v8074_v44  ;;  %v3068_v44 = vperm.slane %v3060_v21, 2 }
 0x2c1   :  { %v8977_v8 = vld [vmem:[#allocation8 + $0x204] sm:$0xf] }
 0x2c2   :  { %v7530_v20 = vld [vmem:[#allocation8 + $0x220] sm:$0xf0] }
 0x2c3   :  { %v9041_v9 = vld [vmem:[#allocation8 + $0x404] sm:$0xf]  ;;  %4722 = vmatpush.bf16.msra.mxu1 %v7565_v38  ;;  %v7533_v40 = vor.u32 %v8977_v8, %v7530_v20 }
 0x2c4   :  { %v7786_v35 = vld [vmem:[#allocation8 + $0x420] sm:$0xf0]  ;;  %4750 = vmatpush.bf16.msra.mxu3 %v8077_v39 }
 0x2c5   :  { %v9105_v27 = vld [vmem:[#allocation8 + $0x604] sm:$0xf]  ;;  %v7789_v42 = vor.u32 %v9041_v9, %v7786_v35 }
 0x2c6   :  { %v8042_v12 = vld [vmem:[#allocation8 + $0x620] sm:$0xf0] }
 0x2c7   :  { %v8045_v50 = vor.u32 %v9105_v27, %v8042_v12  ;;  %4723 = vmatpush.bf16.msra.mxu1 %v7533_v40 }
 0x2c9   :  { %4751 = vmatpush.bf16.msra.mxu3 %v8045_v50 }
 0x301   :  { %v2968_v31 = vpop.xlane.xlu1 %2967 }
 0x302   :  { %v9778_v34 = vmul.f32 0.0019569471, %v2968_v31 }
 0x304   :  { %9257 = vrsqrt.f32 %v9778_v34  ;;  %vm2983_vm1 = vcmp.eq.f32.partialorder %v9778_v34, inf  ;;  %vm2985_vm2 = vcmp.eq.f32.partialorder %v9778_v34, 0.0  ;;  %v2986_v43 = vand.u32 2147483648, %v9778_v34 }
 0x309   :  { %v2973_v26 = vpop.xlane.xlu1 %2972 }
 0x30a   :  { %v9258_v32 = vpop.eup %9257  ;;  %v9781_v5 = vmul.f32 0.0019569471, %v2973_v26  ;;  %v8921_v26 = vld [vmem:[#allocation8 + $0x44] sm:$0xf] }
 0x30b   :  { %v2977_v23 = vmul.f32 %v9258_v32, %v9778_v34  ;;  %v7309_v3 = vor.u32 %v8921_v26, %v7306_v30 }
 0x30c   :  { %9259 = vrsqrt.f32 %v9781_v5  ;;  %vm2995_vm3 = vcmp.eq.f32.partialorder %v9781_v5, inf  ;;  %v2998_v51 = vand.u32 2147483648, %v9781_v5  ;;  %vm2997_vm4 = vcmp.eq.f32.partialorder %v9781_v5, 0.0 }
 0x30d   :  { %v2978_v47 = vmul.f32 %v9258_v32, %v2977_v23  ;;  %4708 = vmatpush.bf16.msra.mxu0 %v7309_v3 }
 0x30f   :  { %v2979_v31 = vmul.f32 0.5, %v2978_v47 }
 0x311   :  { %v2980_v28 = vsub.f32 1.5, %v2979_v31 }
 0x312   :  { %v9260_v45 = vpop.eup %9259 }
 0x313   :  { %v2981_v53 = vmul.f32 %v9258_v32, %v2980_v28  ;;  %v2989_v22 = vmul.f32 %v9260_v45, %v9781_v5  ;;  %v7853_v32 = vor.u32 %v9057_v59, %v7850_v61  ;;  %v9939_v59 = vld [vmem:[#allocation25_spill] sm:$0xff] }
 0x314   :  { %v3042_v61 = vperm.slane %v9939_v59, 1  ;;  %v3062_v6 = vperm.slane %v9939_v59, 2 }
 0x315   :  { %v2982_v10 = vmul.f32 %v2981_v53, %v9778_v34  ;;  %v2990_v57 = vmul.f32 %v9260_v45, %v2989_v22  ;;  %4735 = vmatpush.bf16.msra.mxu2 %v7853_v32  ;;  %v3063_v32 = vperm.slane %v9939_v59, 6 }
 0x316   :  { %v3050_v2 = vperm.slane %v3042_v61, 1 }
 0x317   :  { %v2984_v62 = vsel %vm2983_vm1, %v9778_v34, %v2982_v10  ;;  %v2991_v7 = vmul.f32 0.5, %v2990_v57  ;;  %v7274_v34 = vld [vmem:[#allocation8 + $0x20] sm:$0xf0]  ;;  %v3043_v10 = vperm.slane %v9939_v59, 5  ;;  %v3071_v38 = vperm.slane %v3063_v32, 2 }
 0x318   :  { %v2987_v23 = vsel %vm2985_vm2, %v2986_v43, %v2984_v62  ;;  %v7277_v24 = vor.u32 %v8913_v1, %v7274_v34  ;;  %v3061_v43 = vperm.slane %v9265_v54, 6  ;;  %v3048_v62 = vperm.slane %v3040_v13, 1 }
 0x319   :  { %v3000_v47 = vadd.f32 0.001, %v2987_v23  ;;  %v2992_v25 = vsub.f32 1.5, %v2991_v7  ;;  %4736 = vmatpush.bf16.msra.mxu2 %v7821_v55  ;;  %v3049_v7 = vperm.slane %v3041_v18, 1  ;;  %v3051_v0 = vperm.slane %v3043_v10, 1 }
 0x31a   :  { %4709 = vmatpush.bf16.msra.mxu0 %v7277_v24  ;;  %v3069_v1 = vperm.slane %v3061_v43, 2  ;;  %v3070_v34 = vperm.slane %v3062_v6, 2  ;;  %v8272_v18 = vld [vmem:[#allocation8 + $0x7c8] sm:$0xf] }
 0x31b   :  { %9261 = vrcp.f32 %v3000_v47  ;;  %v2993_v31 = vmul.f32 %v9260_v45, %v2992_v25  ;;  %v3013_v63 = vand.u32 2147483648, %v3000_v47  ;;  %v3011_v14 = vand.u32 2147483647, %v3000_v47 }
 0x31c   :  { %vm3007_vm6 = vweird.f32 %v3000_v47 }
 0x31d   :  { %v2994_v28 = vmul.f32 %v2993_v31, %v9781_v5  ;;  %4737 = vmatpush.bf16.msra.mxu2 %v7789_v42  ;;  %v3014_v57 = vor.u32 1.1754944e-38, %v3013_v63  ;;  %vm3012_vm8 = vcmp.eq.f32.partialorder %v3011_v14, 8.507059e+37 }
 0x31f   :  { %v2996_v45 = vsel %vm2995_vm3, %v9781_v5, %v2994_v28 }
 0x320   :  { %v2999_v33 = vsel %vm2997_vm4, %v2998_v51, %v2996_v45 }
 0x321   :  { %v9262_v48 = vpop.eup %9261  ;;  %v3001_v53 = vadd.f32 0.001, %v2999_v33  ;;  %v8974_v33 = vld [vmem:[#allocation8 + $0x1e4] sm:$0xf0] }
 0x322   :  { %v3003_v36 = vmul.f32 %v9262_v48, %v3000_v47  ;;  %vm3008_vm5 = vweird.f32 %v9262_v48 }
 0x323   :  { %9263 = vrcp.f32 %v3001_v53  ;;  %vm3009_vm7 = vmor %vm3007_vm6, %vm3008_vm5  ;;  %v3028_v16 = vand.u32 2147483648, %v3001_v53  ;;  %v3026_v3 = vand.u32 2147483647, %v3001_v53  ;;  %vm3022_vm10 = vweird.f32 %v3001_v53 }
 0x324   :  { %v3004_v22 = vsub.f32 1.0, %v3003_v36  ;;  %v7760_v36 = vld [vmem:[#allocation8 + $0x3c8] sm:$0xf] }
 0x325   :  { %v3029_v8 = vor.u32 1.1754944e-38, %v3028_v16  ;;  %vm3027_vm12 = vcmp.eq.f32.partialorder %v3026_v3, 8.507059e+37  ;;  %v9094_v16 = vld [vmem:[#allocation8 + $0x5a4] sm:$0xf0] }
 0x326   :  { %v3005_v56 = vmul.f32 %v9262_v48, %v3004_v22  ;;  %v8958_v3 = vld [vmem:[#allocation8 + $0x164] sm:$0xf0] }
 0x328   :  { %v3006_v5 = vadd.f32 %v9262_v48, %v3005_v56  ;;  %v8016_v56 = vld [vmem:[#allocation8 + $0x5c8] sm:$0xf] }
 0x329   :  { %v9264_v60 = vpop.eup %9263 }
 0x32a   :  { %v3010_v15 = vsel %vm3009_vm7, %v9262_v48, %v3006_v5  ;;  %v3018_v26 = vmul.f32 %v9264_v60, %v3001_v53  ;;  %vm3023_vm9 = vweird.f32 %v9264_v60  ;;  %v7504_v48 = vld [vmem:[#allocation8 + $0x1c8] sm:$0xf] }
 0x32b   :  { %v3015_v30 = vsel %vm3012_vm8, %v3014_v57, %v3010_v15  ;;  %vm3024_vm11 = vmor %vm3022_vm10, %vm3023_vm9  ;;  %v9166_v57 = vld [vmem:[#allocation8 + $0x7e4] sm:$0xf0] }
 0x32c   :  { %v3019_v23 = vsub.f32 1.0, %v3018_v26  ;;  %v3032_v58 = vmul.f32 %v3015_v30, %v9745_v41  ;;  %v3033_v19 = vmul.f32 %v3015_v30, %v9748_v49  ;;  %v3034_v52 = vmul.f32 %v3015_v30, %v9750_v4 }
 0x32d   :  { %v3035_v47 = vmul.f32 %v3015_v30, %v9752_v29  ;;  %v8273_v32 = vor.u32 %v9166_v57, %v8272_v18  ;;  %v7600_v18 = vld [vmem:[#allocation8 + $0x288] sm:$0xf] }
 0x32e   :  { %v3020_v25 = vmul.f32 %v9264_v60, %v3019_v23  ;;  %v3052_v31 = vmul.f32 %v3048_v62, %v3032_v58  ;;  %v3053_v39 = vmul.f32 %v3049_v7, %v3033_v19  ;;  %v3054_v41 = vmul.f32 %v3050_v2, %v3034_v52  ;;  %v7984_v23 = vld [vmem:[#allocation8 + $0x588] sm:$0xf] }
 0x32f   :  { %v3055_v20 = vmul.f32 %v3051_v0, %v3035_v47  ;;  %v8240_v58 = vld [vmem:[#allocation8 + $0x788] sm:$0xf] }
 0x330   :  { %v3021_v55 = vadd.f32 %v9264_v60, %v3020_v25  ;;  %v3072_v27 = vadd.f32 %v3068_v44, %v3052_v31  ;;  %v3073_v12 = vadd.f32 %v3069_v1, %v3053_v39  ;;  %v3074_v28 = vadd.f32 %v3070_v34, %v3054_v41  ;;  %v9158_v19 = vld [vmem:[#allocation8 + $0x7a4] sm:$0xf0] }
 0x331   :  { %v3075_v51 = vadd.f32 %v3071_v38, %v3055_v20  ;;  %v7440_v25 = vld [vmem:[#allocation8 + $0x148] sm:$0xf] }
 0x332   :  { %v3025_v49 = vsel %vm3024_vm11, %v9264_v60, %v3021_v55  ;;  %v3080_v14 = vmax.f32 %v3072_v27, 0.0  ;;  %v3082_v54 = vmax.f32 %v3074_v28, 0.0  ;;  %v7505_v60 = vor.u32 %v8974_v33, %v7504_v48  ;;  %v7952_v55 = vld [vmem:[#allocation8 + $0x548] sm:$0xf] }
 0x333   :  { %v3030_v4 = vsel %vm3027_vm12, %v3029_v8, %v3025_v49  ;;  %v3083_v13 = vmax.f32 %v3075_v51, 0.0  ;;  %v9086_v8 = vld [vmem:[#allocation8 + $0x564] sm:$0xf0]  ;;  %v7441_v41 = vor.u32 %v8958_v3, %v7440_v25 }
 0x334   :  { %v3036_v29 = vmul.f32 %v3030_v4, %v9762_v11  ;;  %v3037_v9 = vmul.f32 %v3030_v4, %v9764_v17  ;;  %v3038_v35 = vmul.f32 %v3030_v4, %v9766_v46  ;;  %v3039_v24 = vmul.f32 %v3030_v4, %v9768_v37  ;;  %v9038_v17 = vld [vmem:[#allocation8 + $0x3e4] sm:$0xf0] }
 0x335   :  { %v9102_v46 = vld [vmem:[#allocation8 + $0x5e4] sm:$0xf0]  ;;  %v3081_v37 = vmax.f32 %v3073_v12, 0.0  ;;  %v7761_v15 = vor.u32 %v9038_v17, %v7760_v36 }
 0x336   :  { %v3056_v40 = vmul.f32 %v3048_v62, %v3036_v29  ;;  %v3057_v42 = vmul.f32 %v3049_v7, %v3037_v9  ;;  %v3058_v45 = vmul.f32 %v3050_v2, %v3038_v35  ;;  %v3059_v50 = vmul.f32 %v3051_v0, %v3039_v24  ;;  %v7472_v62 = vld [vmem:[#allocation8 + $0x188] sm:$0xf] }
 0x337   :  { %v8966_v7 = vld [vmem:[#allocation8 + $0x1a4] sm:$0xf0]  ;;  %v8017_v6 = vor.u32 %v9102_v46, %v8016_v56  ;;  %v7953_v29 = vor.u32 %v9086_v8, %v7952_v55 }
 0x338   :  { %v3076_v53 = vadd.f32 %v3068_v44, %v3056_v40  ;;  %v3077_v22 = vadd.f32 %v3069_v1, %v3057_v42  ;;  %v3078_v11 = vadd.f32 %v3070_v34, %v3058_v45  ;;  %v3079_v63 = vadd.f32 %v3071_v38, %v3059_v50  ;;  %v7728_v2 = vld [vmem:[#allocation8 + $0x388] sm:$0xf] }
 0x339   :  { %v9030_v0 = vld [vmem:[#allocation8 + $0x3a4] sm:$0xf0]  ;;  %v7473_v52 = vor.u32 %v8966_v7, %v7472_v62  ;;  %v7985_v44 = vor.u32 %v9094_v16, %v7984_v23  ;;  %v8241_v1 = vor.u32 %v9158_v19, %v8240_v58 }
 0x33a   :  { %v3084_v5 = vmax.f32 %v3076_v53, 0.0  ;;  %v3085_v59 = vmax.f32 %v3077_v22, 0.0  ;;  %v3086_v61 = vmax.f32 %v3078_v11, 0.0  ;;  %v3087_v10 = vmax.f32 %v3079_v63, 0.0  ;;  %v7696_v34 = vld [vmem:[#allocation8 + $0x348] sm:$0xf] }
 0x33b   :  { %v7729_v47 = vor.u32 %v9030_v0, %v7728_v2  ;;  %v9022_v38 = vld [vmem:[#allocation8 + $0x364] sm:$0xf0] }
 0x33c   :  { %v9808_v21 = vpack.c.bf16 %v3084_v5, %v3080_v14  ;;  %v9810_v43 = vpack.c.bf16 %v3085_v59, %v3081_v37  ;;  %v9812_v26 = vpack.c.bf16 %v3086_v61, %v3082_v54  ;;  %v9814_v30 = vpack.c.bf16 %v3087_v10, %v3083_v13  ;;  %v8208_v31 = vld [vmem:[#allocation8 + $0x748] sm:$0xf] }
 0x33d   :  { %v9150_v39 = vld [vmem:[#allocation8 + $0x764] sm:$0xf0]  ;;  %v7697_v20 = vor.u32 %v9022_v38, %v7696_v34 }
 0x33e   :  { %4654 = vmatmul.bf16.vlgmr.msrb.gmra.mxu0 %v9808_v21  ;;  %4668 = vmatmul.bf16.vlgmr.msrb.gmra.mxu1 %v9810_v43  ;;  %v7408_v49 = vld [vmem:[#allocation8 + $0x108] sm:$0xf]  ;;  %v8209_v9 = vor.u32 %v9150_v39, %v8208_v31 }
 0x33f   :  { %4682 = vmatmul.bf16.vlgmr.msrb.gmra.mxu2 %v9812_v26  ;;  %4696 = vmatmul.bf16.vlgmr.msrb.gmra.mxu3 %v9814_v30  ;;  %v8950_v4 = vld [vmem:[#allocation8 + $0x124] sm:$0xf0] }
 0x340   :  { %4758 = vmatpush.bf16.msrb.mxu0 %v7505_v60  ;;  %4772 = vmatpush.bf16.msrb.mxu1 %v7761_v15  ;;  %v7664_v35 = vld [vmem:[#allocation8 + $0x308] sm:$0xf]  ;;  %v7409_v40 = vor.u32 %v8950_v4, %v7408_v49  ;;  %v9034_v49 = vld [vmem:[#allocation8 + $0x3cc] sm:$0xf] }
 0x341   :  { %4786 = vmatpush.bf16.msrb.mxu2 %v8017_v6  ;;  %4800 = vmatpush.bf16.msrb.mxu3 %v8273_v32  ;;  %v9014_v24 = vld [vmem:[#allocation8 + $0x324] sm:$0xf0]  ;;  %v7762_v4 = vld [vmem:[#allocation8 + $0x3e8] sm:$0xf0] }
 0x342   :  { %v7920_v27 = vld [vmem:[#allocation8 + $0x508] sm:$0xf]  ;;  %v7665_v42 = vor.u32 %v9014_v24, %v7664_v35  ;;  %v8018_v24 = vld [vmem:[#allocation8 + $0x5e8] sm:$0xf0] }
 0x343   :  { %v9078_v12 = vld [vmem:[#allocation8 + $0x524] sm:$0xf0] }
 0x344   :  { %4759 = vmatpush.bf16.msrb.mxu0 %v7473_v52  ;;  %4773 = vmatpush.bf16.msrb.mxu1 %v7729_v47  ;;  %v8176_v28 = vld [vmem:[#allocation8 + $0x708] sm:$0xf]  ;;  %v7921_v48 = vor.u32 %v9078_v12, %v7920_v27  ;;  %v9162_v27 = vld [vmem:[#allocation8 + $0x7cc] sm:$0xf] }
 0x345   :  { %4787 = vmatpush.bf16.msrb.mxu2 %v7985_v44  ;;  %4801 = vmatpush.bf16.msrb.mxu3 %v8241_v1  ;;  %v9142_v51 = vld [vmem:[#allocation8 + $0x724] sm:$0xf0]  ;;  %v8274_v12 = vld [vmem:[#allocation8 + $0x7e8] sm:$0xf0] }
 0x346   :  { %v7376_v45 = vld [vmem:[#allocation8 + $0xc8] sm:$0xf]  ;;  %v8177_v33 = vor.u32 %v9142_v51, %v8176_v28 }
 0x347   :  { %v8942_v50 = vld [vmem:[#allocation8 + $0xe4] sm:$0xf0] }
 0x348   :  { %4760 = vmatpush.bf16.msrb.mxu0 %v7441_v41  ;;  %4774 = vmatpush.bf16.msrb.mxu1 %v7697_v20  ;;  %v7632_v36 = vld [vmem:[#allocation8 + $0x2c8] sm:$0xf]  ;;  %v7377_v56 = vor.u32 %v8942_v50, %v7376_v45  ;;  %v8970_v41 = vld [vmem:[#allocation8 + $0x1cc] sm:$0xf] }
 0x349   :  { %4788 = vmatpush.bf16.msrb.mxu2 %v7953_v29  ;;  %4802 = vmatpush.bf16.msrb.mxu3 %v8209_v9  ;;  %v9006_v53 = vld [vmem:[#allocation8 + $0x2e4] sm:$0xf0]  ;;  %v7506_v20 = vld [vmem:[#allocation8 + $0x1e8] sm:$0xf0] }
 0x34a   :  { %v7888_v22 = vld [vmem:[#allocation8 + $0x4c8] sm:$0xf]  ;;  %v7633_v46 = vor.u32 %v9006_v53, %v7632_v36  ;;  %v9098_v29 = vld [vmem:[#allocation8 + $0x5cc] sm:$0xf] }
 0x34b   :  { %v9070_v11 = vld [vmem:[#allocation8 + $0x4e4] sm:$0xf0]  ;;  %v8962_v45 = vld [vmem:[#allocation8 + $0x18c] sm:$0xf] }
 0x34c   :  { %v8144_v63 = vld [vmem:[#allocation8 + $0x6c8] sm:$0xf]  ;;  %4761 = vmatpush.bf16.msrb.mxu0 %v7409_v40  ;;  %4775 = vmatpush.bf16.msrb.mxu1 %v7665_v42  ;;  %v7889_v54 = vor.u32 %v9070_v11, %v7888_v22  ;;  %v7509_v40 = vor.u32 %v8970_v41, %v7506_v20  ;;  %v7765_v42 = vor.u32 %v9034_v49, %v7762_v4  ;;  %v7474_v50 = vld [vmem:[#allocation8 + $0x1a8] sm:$0xf0] }
 0x34d   :  { %v9134_v17 = vld [vmem:[#allocation8 + $0x6e4] sm:$0xf0]  ;;  %4789 = vmatpush.bf16.msrb.mxu2 %v7921_v48  ;;  %4803 = vmatpush.bf16.msrb.mxu3 %v8177_v33  ;;  %v8021_v48 = vor.u32 %v9098_v29, %v8018_v24  ;;  %v8277_v33 = vor.u32 %v9162_v27, %v8274_v12  ;;  %v9026_v36 = vld [vmem:[#allocation8 + $0x38c] sm:$0xf] }
 0x34e   :  { %v7344_v14 = vld [vmem:[#allocation8 + $0x88] sm:$0xf]  ;;  %v8145_v13 = vor.u32 %v9134_v17, %v8144_v63  ;;  %4710 = vmatmul.bf16.vlgmr.msra.gmra.mxu0 %v9808_v21  ;;  %4724 = vmatmul.bf16.vlgmr.msra.gmra.mxu1 %v9810_v43  ;;  %v7730_v53 = vld [vmem:[#allocation8 + $0x3a8] sm:$0xf0] }
 0x34f   :  { %v8934_v37 = vld [vmem:[#allocation8 + $0xa4] sm:$0xf0]  ;;  %4738 = vmatmul.bf16.vlgmr.msra.gmra.mxu2 %v9812_v26  ;;  %4752 = vmatmul.bf16.vlgmr.msra.gmra.mxu3 %v9814_v30  ;;  %v9090_v22 = vld [vmem:[#allocation8 + $0x58c] sm:$0xf] }
 0x350   :  { %v8998_v5 = vld [vmem:[#allocation8 + $0x2a4] sm:$0xf0]  ;;  %4762 = vmatpush.bf16.msrb.mxu0 %v7377_v56  ;;  %4776 = vmatpush.bf16.msrb.mxu1 %v7633_v46  ;;  %v7345_v60 = vor.u32 %v8934_v37, %v7344_v14  ;;  %v7986_v11 = vld [vmem:[#allocation8 + $0x5a8] sm:$0xf0]  ;;  %v7477_v56 = vor.u32 %v8962_v45, %v7474_v50  ;;  %v7733_v46 = vor.u32 %v9026_v36, %v7730_v53 }
 0x351   :  { %v7856_v59 = vld [vmem:[#allocation8 + $0x488] sm:$0xf]  ;;  %v7601_v15 = vor.u32 %v8998_v5, %v7600_v18  ;;  %4790 = vmatpush.bf16.msrb.mxu2 %v7889_v54  ;;  %4804 = vmatpush.bf16.msrb.mxu3 %v8145_v13  ;;  %v9154_v63 = vld [vmem:[#allocation8 + $0x78c] sm:$0xf]  ;;  %v7989_v54 = vor.u32 %v9090_v22, %v7986_v11 }
 0x352   :  { %v9062_v61 = vld [vmem:[#allocation8 + $0x4a4] sm:$0xf0]  ;;  %v8242_v17 = vld [vmem:[#allocation8 + $0x7a8] sm:$0xf0] }
 0x353   :  { %v8112_v10 = vld [vmem:[#allocation8 + $0x688] sm:$0xf]  ;;  %v7857_v6 = vor.u32 %v9062_v61, %v7856_v59  ;;  %v8954_v14 = vld [vmem:[#allocation8 + $0x14c] sm:$0xf]  ;;  %v8245_v13 = vor.u32 %v9154_v63, %v8242_v17 }
 0x354   :  { %v9126_v57 = vld [vmem:[#allocation8 + $0x6a4] sm:$0xf0]  ;;  %4763 = vmatpush.bf16.msrb.mxu0 %v7345_v60  ;;  %4777 = vmatpush.bf16.msrb.mxu1 %v7601_v15  ;;  %v7442_v37 = vld [vmem:[#allocation8 + $0x168] sm:$0xf0] }
 0x355   :  { %v7312_v62 = vld [vmem:[#allocation8 + $0x48] sm:$0xf]  ;;  %v8113_v32 = vor.u32 %v9126_v57, %v8112_v10  ;;  %4791 = vmatpush.bf16.msrb.mxu2 %v7857_v6  ;;  %v9018_v18 = vld [vmem:[#allocation8 + $0x34c] sm:$0xf]  ;;  %v7445_v60 = vor.u32 %v8954_v14, %v7442_v37 }
 0x356   :  { %v8926_v7 = vld [vmem:[#allocation8 + $0x64] sm:$0xf0]  ;;  %v7698_v5 = vld [vmem:[#allocation8 + $0x368] sm:$0xf0] }
 0x357   :  { %v7568_v2 = vld [vmem:[#allocation8 + $0x248] sm:$0xf]  ;;  %v7313_v47 = vor.u32 %v8926_v7, %v7312_v62  ;;  %4805 = vmatpush.bf16.msrb.mxu3 %v8113_v32  ;;  %v9082_v59 = vld [vmem:[#allocation8 + $0x54c] sm:$0xf]  ;;  %v7701_v15 = vor.u32 %v9018_v18, %v7698_v5 }
 0x358   :  { %v8990_v0 = vld [vmem:[#allocation8 + $0x264] sm:$0xf0]  ;;  %v7954_v61 = vld [vmem:[#allocation8 + $0x568] sm:$0xf0] }
 0x359   :  { %v7824_v23 = vld [vmem:[#allocation8 + $0x448] sm:$0xf]  ;;  %v7569_v25 = vor.u32 %v8990_v0, %v7568_v2  ;;  %4764 = vmatpush.bf16.msrb.mxu0 %v7313_v47  ;;  %v9146_v10 = vld [vmem:[#allocation8 + $0x74c] sm:$0xf]  ;;  %v7957_v6 = vor.u32 %v9082_v59, %v7954_v61 }
 0x35a   :  { %v9054_v16 = vld [vmem:[#allocation8 + $0x464] sm:$0xf0]  ;;  %v8210_v57 = vld [vmem:[#allocation8 + $0x768] sm:$0xf0] }
 0x35b   :  { %v8080_v58 = vld [vmem:[#allocation8 + $0x648] sm:$0xf]  ;;  %v7825_v34 = vor.u32 %v9054_v16, %v7824_v23  ;;  %4778 = vmatpush.bf16.msrb.mxu1 %v7569_v25  ;;  %v8946_v62 = vld [vmem:[#allocation8 + $0x10c] sm:$0xf]  ;;  %v8213_v32 = vor.u32 %v9146_v10, %v8210_v57 }
 0x35c   :  { %v9118_v19 = vld [vmem:[#allocation8 + $0x664] sm:$0xf0]  ;;  %v7410_v7 = vld [vmem:[#allocation8 + $0x128] sm:$0xf0] }
 0x35d   :  { %v7280_v52 = vld [vmem:[#allocation8 + $0x8] sm:$0xf]  ;;  %v8081_v38 = vor.u32 %v9118_v19, %v8080_v58  ;;  %4792 = vmatpush.bf16.msrb.mxu2 %v7825_v34  ;;  %v9010_v2 = vld [vmem:[#allocation8 + $0x30c] sm:$0xf] }
 0x35e   :  { %v8918_v3 = vld [vmem:[#allocation8 + $0x24] sm:$0xf0]  ;;  %v7666_v0 = vld [vmem:[#allocation8 + $0x328] sm:$0xf0] }
 0x35f   :  { %v7536_v44 = vld [vmem:[#allocation8 + $0x208] sm:$0xf]  ;;  %v7281_v9 = vor.u32 %v8918_v3, %v7280_v52  ;;  %4806 = vmatpush.bf16.msrb.mxu3 %v8081_v38  ;;  %v9074_v23 = vld [vmem:[#allocation8 + $0x50c] sm:$0xf]  ;;  %v7413_v52 = vor.u32 %v8946_v62, %v7410_v7  ;;  %v7669_v47 = vor.u32 %v9010_v2, %v7666_v0  ;;  %v7768_v62 = vld [vmem:[#allocation8 + $0x3d0] sm:$0xf] }
 0x360   :  { %v8982_v1 = vld [vmem:[#allocation8 + $0x224] sm:$0xf0]  ;;  %v7922_v16 = vld [vmem:[#allocation8 + $0x528] sm:$0xf0]  ;;  %v9039_v7 = vld [vmem:[#allocation8 + $0x3ec] sm:$0xf0] }
 0x361   :  { %v7792_v55 = vld [vmem:[#allocation8 + $0x408] sm:$0xf]  ;;  %v7537_v35 = vor.u32 %v8982_v1, %v7536_v44  ;;  %4765 = vmatpush.bf16.msrb.mxu0 %v7281_v9  ;;  %v9138_v58 = vld [vmem:[#allocation8 + $0x70c] sm:$0xf]  ;;  %v7925_v44 = vor.u32 %v9074_v23, %v7922_v16  ;;  %v9103_v0 = vld [vmem:[#allocation8 + $0x5ec] sm:$0xf0] }
 0x362   :  { %v9046_v8 = vld [vmem:[#allocation8 + $0x424] sm:$0xf0]  ;;  %v8178_v19 = vld [vmem:[#allocation8 + $0x728] sm:$0xf0]  ;;  %v8280_v23 = vld [vmem:[#allocation8 + $0x7d0] sm:$0xf] }
 0x363   :  { %v8048_v31 = vld [vmem:[#allocation8 + $0x608] sm:$0xf]  ;;  %v7793_v28 = vor.u32 %v9046_v8, %v7792_v55  ;;  %4779 = vmatpush.bf16.msrb.mxu1 %v7537_v35  ;;  %v8938_v25 = vld [vmem:[#allocation8 + $0xcc] sm:$0xf]  ;;  %v8181_v1 = vor.u32 %v9138_v58, %v8178_v19  ;;  %v9167_v16 = vld [vmem:[#allocation8 + $0x7ec] sm:$0xf0] }
 0x364   :  { %v9110_v39 = vld [vmem:[#allocation8 + $0x624] sm:$0xf0]  ;;  %4766 = vmatmul.bf16.vlgmr.msrb.gmra.mxu0 %v9808_v21  ;;  %v7378_v3 = vld [vmem:[#allocation8 + $0xe8] sm:$0xf0] }
 0x365   :  { %v8049_v51 = vor.u32 %v9110_v39, %v8048_v31  ;;  %4793 = vmatpush.bf16.msrb.mxu2 %v7793_v28  ;;  %4814 = vmatpush.bf16.msra.mxu0 %v7509_v40  ;;  %v9002_v34 = vld [vmem:[#allocation8 + $0x2cc] sm:$0xf]  ;;  %v7381_v41 = vor.u32 %v8938_v25, %v7378_v3  ;;  %v7480_v25 = vld [vmem:[#allocation8 + $0x190] sm:$0xf] }
 0x366   :  { %4780 = vmatmul.bf16.vlgmr.msrb.gmra.mxu1 %v9810_v43  ;;  %v7634_v38 = vld [vmem:[#allocation8 + $0x2e8] sm:$0xf0]  ;;  %v8967_v3 = vld [vmem:[#allocation8 + $0x1ac] sm:$0xf0] }
 0x367   :  { %4807 = vmatpush.bf16.msrb.mxu3 %v8049_v51  ;;  %4828 = vmatpush.bf16.msra.mxu1 %v7765_v42  ;;  %v9066_v55 = vld [vmem:[#allocation8 + $0x4cc] sm:$0xf]  ;;  %v7637_v20 = vor.u32 %v9002_v34, %v7634_v38  ;;  %v7736_v34 = vld [vmem:[#allocation8 + $0x390] sm:$0xf] }
 0x368   :  { %4794 = vmatmul.bf16.vlgmr.msrb.gmra.mxu2 %v9812_v26  ;;  %v7890_v8 = vld [vmem:[#allocation8 + $0x4e8] sm:$0xf0]  ;;  %v9031_v38 = vld [vmem:[#allocation8 + $0x3ac] sm:$0xf0] }
 0x369   :  { %4842 = vmatpush.bf16.msra.mxu2 %v8021_v48  ;;  %4815 = vmatpush.bf16.msra.mxu0 %v7477_v56  ;;  %v9130_v31 = vld [vmem:[#allocation8 + $0x6cc] sm:$0xf]  ;;  %v7893_v29 = vor.u32 %v9066_v55, %v7890_v8  ;;  %v7992_v55 = vld [vmem:[#allocation8 + $0x590] sm:$0xf] }
 0x36a   :  { %4808 = vmatmul.bf16.vlgmr.msrb.gmra.mxu3 %v9814_v30  ;;  %v8146_v39 = vld [vmem:[#allocation8 + $0x6e8] sm:$0xf0]  ;;  %v9095_v8 = vld [vmem:[#allocation8 + $0x5ac] sm:$0xf0] }
 0x36b   :  { %4856 = vmatpush.bf16.msra.mxu3 %v8277_v33  ;;  %4829 = vmatpush.bf16.msra.mxu1 %v7733_v46  ;;  %v8930_v49 = vld [vmem:[#allocation8 + $0x8c] sm:$0xf]  ;;  %v8149_v9 = vor.u32 %v9130_v31, %v8146_v39  ;;  %v8248_v31 = vld [vmem:[#allocation8 + $0x790] sm:$0xf] }
 0x36c   :  { %v7346_v4 = vld [vmem:[#allocation8 + $0xa8] sm:$0xf0]  ;;  %v9159_v39 = vld [vmem:[#allocation8 + $0x7ac] sm:$0xf0] }
 0x36d   :  { %4843 = vmatpush.bf16.msra.mxu2 %v7989_v54  ;;  %4816 = vmatpush.bf16.msra.mxu0 %v7445_v60  ;;  %v8994_v35 = vld [vmem:[#allocation8 + $0x28c] sm:$0xf]  ;;  %v7349_v40 = vor.u32 %v8930_v49, %v7346_v4  ;;  %v7512_v60 = vld [vmem:[#allocation8 + $0x1d0] sm:$0xf] }
 0x36e   :  { %v7602_v24 = vld [vmem:[#allocation8 + $0x2a8] sm:$0xf0]  ;;  %v7448_v49 = vld [vmem:[#allocation8 + $0x150] sm:$0xf] }
 0x36f   :  { %4857 = vmatpush.bf16.msra.mxu3 %v8245_v13  ;;  %4830 = vmatpush.bf16.msra.mxu1 %v7701_v15  ;;  %v9058_v27 = vld [vmem:[#allocation8 + $0x48c] sm:$0xf]  ;;  %v7605_v42 = vor.u32 %v8994_v35, %v7602_v24  ;;  %v8975_v15 = vld [vmem:[#allocation8 + $0x1ec] sm:$0xf0] }
 0x370   :  { %v7858_v12 = vld [vmem:[#allocation8 + $0x4a8] sm:$0xf0]  ;;  %v8959_v4 = vld [vmem:[#allocation8 + $0x16c] sm:$0xf0] }
 0x371   :  { %4844 = vmatpush.bf16.msra.mxu2 %v7957_v6  ;;  %4817 = vmatpush.bf16.msra.mxu0 %v7413_v52  ;;  %v9122_v28 = vld [vmem:[#allocation8 + $0x68c] sm:$0xf]  ;;  %v7861_v48 = vor.u32 %v9058_v27, %v7858_v12  ;;  %v8024_v6 = vld [vmem:[#allocation8 + $0x5d0] sm:$0xf]  ;;  %v7513_v52 = vor.u32 %v8975_v15, %v7512_v60 }
 0x372   :  { %v8114_v51 = vld [vmem:[#allocation8 + $0x6a8] sm:$0xf0]  ;;  %v7704_v35 = vld [vmem:[#allocation8 + $0x350] sm:$0xf] }
 0x373   :  { %4858 = vmatpush.bf16.msra.mxu3 %v8213_v32  ;;  %4831 = vmatpush.bf16.msra.mxu1 %v7669_v47  ;;  %v8922_v45 = vld [vmem:[#allocation8 + $0x4c] sm:$0xf]  ;;  %v8117_v33 = vor.u32 %v9122_v28, %v8114_v51  ;;  %v7769_v47 = vor.u32 %v9039_v7, %v7768_v62  ;;  %v9023_v24 = vld [vmem:[#allocation8 + $0x36c] sm:$0xf0] }
 0x374   :  { %v7314_v50 = vld [vmem:[#allocation8 + $0x68] sm:$0xf0]  ;;  %v7960_v27 = vld [vmem:[#allocation8 + $0x550] sm:$0xf] }
 0x375   :  { %4845 = vmatpush.bf16.msra.mxu2 %v7925_v44  ;;  %4818 = vmatpush.bf16.msra.mxu0 %v7381_v41  ;;  %v8986_v36 = vld [vmem:[#allocation8 + $0x24c] sm:$0xf]  ;;  %v7317_v46 = vor.u32 %v8922_v45, %v7314_v50  ;;  %v8025_v44 = vor.u32 %v9103_v0, %v8024_v6  ;;  %v7481_v41 = vor.u32 %v8967_v3, %v7480_v25  ;;  %v9087_v12 = vld [vmem:[#allocation8 + $0x56c] sm:$0xf0] }
 0x376   :  { %v7570_v53 = vld [vmem:[#allocation8 + $0x268] sm:$0xf0]  ;;  %v8216_v28 = vld [vmem:[#allocation8 + $0x750] sm:$0xf] }
 0x377   :  { %4859 = vmatpush.bf16.msra.mxu3 %v8181_v1  ;;  %4832 = vmatpush.bf16.msra.mxu1 %v7637_v20  ;;  %v9050_v22 = vld [vmem:[#allocation8 + $0x44c] sm:$0xf]  ;;  %v7573_v14 = vor.u32 %v8986_v36, %v7570_v53  ;;  %v8281_v1 = vor.u32 %v9167_v16, %v8280_v23  ;;  %v7737_v20 = vor.u32 %v9031_v38, %v7736_v34  ;;  %v9151_v51 = vld [vmem:[#allocation8 + $0x76c] sm:$0xf0] }
 0x378   :  { %v7826_v11 = vld [vmem:[#allocation8 + $0x468] sm:$0xf0]  ;;  %v7416_v45 = vld [vmem:[#allocation8 + $0x110] sm:$0xf] }
 0x379   :  { %4846 = vmatpush.bf16.msra.mxu2 %v7893_v29  ;;  %v9114_v63 = vld [vmem:[#allocation8 + $0x64c] sm:$0xf]  ;;  %4819 = vmatpush.bf16.msra.mxu0 %v7349_v40  ;;  %v7829_v18 = vor.u32 %v9050_v22, %v7826_v11  ;;  %v7993_v29 = vor.u32 %v9095_v8, %v7992_v55  ;;  %v7449_v40 = vor.u32 %v8959_v4, %v7448_v49  ;;  %v8951_v50 = vld [vmem:[#allocation8 + $0x12c] sm:$0xf0] }
 0x37a   :  { %v8082_v17 = vld [vmem:[#allocation8 + $0x668] sm:$0xf0]  ;;  %v7672_v36 = vld [vmem:[#allocation8 + $0x310] sm:$0xf] }
 0x37b   :  { %4860 = vmatpush.bf16.msra.mxu3 %v8149_v9  ;;  %v8914_v56 = vld [vmem:[#allocation8 + $0xc] sm:$0xf]  ;;  %4833 = vmatpush.bf16.msra.mxu1 %v7605_v42  ;;  %v8085_v5 = vor.u32 %v9114_v63, %v8082_v17  ;;  %v8249_v9 = vor.u32 %v9159_v39, %v8248_v31  ;;  %v7705_v42 = vor.u32 %v9023_v24, %v7704_v35  ;;  %v9015_v53 = vld [vmem:[#allocation8 + $0x32c] sm:$0xf0] }
 0x37c   :  { %v7282_v37 = vld [vmem:[#allocation8 + $0x28] sm:$0xf0]  ;;  %v7928_v22 = vld [vmem:[#allocation8 + $0x510] sm:$0xf] }
 0x37d   :  { %v8978_v54 = vld [vmem:[#allocation8 + $0x20c] sm:$0xf]  ;;  %4847 = vmatpush.bf16.msra.mxu2 %v7861_v48  ;;  %4820 = vmatpush.bf16.msra.mxu0 %v7317_v46  ;;  %v7285_v32 = vor.u32 %v8914_v56, %v7282_v37  ;;  %v7961_v48 = vor.u32 %v9087_v12, %v7960_v27  ;;  %v9079_v11 = vld [vmem:[#allocation8 + $0x52c] sm:$0xf0]  ;;  %v7417_v56 = vor.u32 %v8951_v50, %v7416_v45  ;;  %v9035_v45 = vld [vmem:[#allocation8 + $0x3d4] sm:$0xf] }
 0x37e   :  { %v7538_v13 = vld [vmem:[#allocation8 + $0x228] sm:$0xf0]  ;;  %v8184_v63 = vld [vmem:[#allocation8 + $0x710] sm:$0xf]  ;;  %v7673_v46 = vor.u32 %v9015_v53, %v7672_v36  ;;  %v7770_v50 = vld [vmem:[#allocation8 + $0x3f0] sm:$0xf0] }
 0x37f   :  { %4861 = vmatpush.bf16.msra.mxu3 %v8117_v33  ;;  %v9042_v59 = vld [vmem:[#allocation8 + $0x40c] sm:$0xf]  ;;  %4834 = vmatpush.bf16.msra.mxu1 %v7573_v14  ;;  %v7541_v2 = vor.u32 %v8978_v54, %v7538_v13  ;;  %v8217_v33 = vor.u32 %v9151_v51, %v8216_v28  ;;  %v9143_v17 = vld [vmem:[#allocation8 + $0x72c] sm:$0xf0]  ;;  %v7929_v54 = vor.u32 %v9079_v11, %v7928_v22  ;;  %v8026_v53 = vld [vmem:[#allocation8 + $0x5f0] sm:$0xf0] }
 0x380   :  { %v7794_v61 = vld [vmem:[#allocation8 + $0x428] sm:$0xf0]  ;;  %v7384_v14 = vld [vmem:[#allocation8 + $0xd0] sm:$0xf]  ;;  %v8185_v13 = vor.u32 %v9143_v17, %v8184_v63  ;;  %v9163_v22 = vld [vmem:[#allocation8 + $0x7d4] sm:$0xf] }
 0x381   :  { %v9106_v10 = vld [vmem:[#allocation8 + $0x60c] sm:$0xf]  ;;  %4848 = vmatpush.bf16.msra.mxu2 %v7829_v18  ;;  %v7797_v58 = vor.u32 %v9042_v59, %v7794_v61  ;;  %4821 = vmatpush.bf16.msra.mxu0 %v7285_v32  ;;  %v8943_v37 = vld [vmem:[#allocation8 + $0xec] sm:$0xf0]  ;;  %v8282_v11 = vld [vmem:[#allocation8 + $0x7f0] sm:$0xf0] }
 0x382   :  { %v8050_v57 = vld [vmem:[#allocation8 + $0x628] sm:$0xf0]  ;;  %v7640_v18 = vld [vmem:[#allocation8 + $0x2d0] sm:$0xf]  ;;  %v7385_v60 = vor.u32 %v8943_v37, %v7384_v14  ;;  %v8963_v14 = vld [vmem:[#allocation8 + $0x194] sm:$0xf] }
 0x383   :  { %4862 = vmatpush.bf16.msra.mxu3 %v8085_v5  ;;  %v8053_v19 = vor.u32 %v9106_v10, %v8050_v57  ;;  %4835 = vmatpush.bf16.msra.mxu1 %v7541_v2  ;;  %v9007_v5 = vld [vmem:[#allocation8 + $0x2ec] sm:$0xf0]  ;;  %v7482_v37 = vld [vmem:[#allocation8 + $0x1b0] sm:$0xf0] }
 0x384   :  { %4822 = vmatmul.bf16.vlgmr.msra.gmra.mxu0 %v9808_v21  ;;  %v7896_v59 = vld [vmem:[#allocation8 + $0x4d0] sm:$0xf]  ;;  %v7641_v15 = vor.u32 %v9007_v5, %v7640_v18  ;;  %v9027_v18 = vld [vmem:[#allocation8 + $0x394] sm:$0xf] }
 0x385   :  { %4849 = vmatpush.bf16.msra.mxu2 %v7797_v58  ;;  %4870 = vmatpush.bf16.msrb.mxu0 %v7513_v52  ;;  %v9071_v61 = vld [vmem:[#allocation8 + $0x4ec] sm:$0xf0]  ;;  %v7738_v5 = vld [vmem:[#allocation8 + $0x3b0] sm:$0xf0] }
 0x386   :  { %4836 = vmatmul.bf16.vlgmr.msra.gmra.mxu1 %v9810_v43  ;;  %v8152_v10 = vld [vmem:[#allocation8 + $0x6d0] sm:$0xf]  ;;  %v7897_v6 = vor.u32 %v9071_v61, %v7896_v59  ;;  %v9091_v59 = vld [vmem:[#allocation8 + $0x594] sm:$0xf] }
 0x387   :  { %4863 = vmatpush.bf16.msra.mxu3 %v8053_v19  ;;  %4884 = vmatpush.bf16.msrb.mxu1 %v7769_v47  ;;  %v9135_v57 = vld [vmem:[#allocation8 + $0x6ec] sm:$0xf0]  ;;  %v7994_v61 = vld [vmem:[#allocation8 + $0x5b0] sm:$0xf0] }
 0x388   :  { %4850 = vmatmul.bf16.vlgmr.msra.gmra.mxu2 %v9812_v26  ;;  %v7352_v62 = vld [vmem:[#allocation8 + $0x90] sm:$0xf]  ;;  %v8153_v32 = vor.u32 %v9135_v57, %v8152_v10  ;;  %v9155_v10 = vld [vmem:[#allocation8 + $0x794] sm:$0xf] }
 0x389   :  { %4898 = vmatpush.bf16.msrb.mxu2 %v8025_v44  ;;  %4871 = vmatpush.bf16.msrb.mxu0 %v7481_v41  ;;  %v8935_v7 = vld [vmem:[#allocation8 + $0xac] sm:$0xf0]  ;;  %v8250_v57 = vld [vmem:[#allocation8 + $0x7b0] sm:$0xf0] }
 0x38a   :  { %4864 = vmatmul.bf16.vlgmr.msra.gmra.mxu3 %v9814_v30  ;;  %v7608_v2 = vld [vmem:[#allocation8 + $0x290] sm:$0xf]  ;;  %v7353_v52 = vor.u32 %v8935_v7, %v7352_v62  ;;  %v8955_v62 = vld [vmem:[#allocation8 + $0x154] sm:$0xf] }
 0x38b   :  { %4912 = vmatpush.bf16.msrb.mxu3 %v8281_v1  ;;  %4885 = vmatpush.bf16.msrb.mxu1 %v7737_v20  ;;  %v8999_v0 = vld [vmem:[#allocation8 + $0x2ac] sm:$0xf0]  ;;  %v7450_v7 = vld [vmem:[#allocation8 + $0x170] sm:$0xf0] }
 0x38c   :  { %v7864_v23 = vld [vmem:[#allocation8 + $0x490] sm:$0xf]  ;;  %v7609_v47 = vor.u32 %v8999_v0, %v7608_v2  ;;  %v9019_v2 = vld [vmem:[#allocation8 + $0x354] sm:$0xf] }
 0x38d   :  { %4899 = vmatpush.bf16.msrb.mxu2 %v7993_v29  ;;  %4872 = vmatpush.bf16.msrb.mxu0 %v7449_v40  ;;  %v9063_v16 = vld [vmem:[#allocation8 + $0x4ac] sm:$0xf0]  ;;  %v8971_v40 = vld [vmem:[#allocation8 + $0x1d4] sm:$0xf] }
 0x38e   :  { %v8120_v58 = vld [vmem:[#allocation8 + $0x690] sm:$0xf]  ;;  %v7865_v44 = vor.u32 %v9063_v16, %v7864_v23  ;;  %v7706_v0 = vld [vmem:[#allocation8 + $0x370] sm:$0xf0] }
 0x38f   :  { %4913 = vmatpush.bf16.msrb.mxu3 %v8249_v9  ;;  %4886 = vmatpush.bf16.msrb.mxu1 %v7705_v42  ;;  %v9127_v19 = vld [vmem:[#allocation8 + $0x6ac] sm:$0xf0]  ;;  %v7514_v42 = vld [vmem:[#allocation8 + $0x1f0] sm:$0xf0] }
 0x390   :  { %v7320_v25 = vld [vmem:[#allocation8 + $0x50] sm:$0xf]  ;;  %v8121_v1 = vor.u32 %v9127_v19, %v8120_v58  ;;  %v9083_v23 = vld [vmem:[#allocation8 + $0x554] sm:$0xf] }
 0x391   :  { %4900 = vmatpush.bf16.msrb.mxu2 %v7961_v48  ;;  %4873 = vmatpush.bf16.msrb.mxu0 %v7417_v56  ;;  %v8927_v3 = vld [vmem:[#allocation8 + $0x6c] sm:$0xf0]  ;;  %v9099_v48 = vld [vmem:[#allocation8 + $0x5d4] sm:$0xf]  ;;  %v7517_v56 = vor.u32 %v8971_v40, %v7514_v42 }
 0x392   :  { %v7576_v34 = vld [vmem:[#allocation8 + $0x250] sm:$0xf]  ;;  %v7321_v20 = vor.u32 %v8927_v3, %v7320_v25  ;;  %v7962_v16 = vld [vmem:[#allocation8 + $0x570] sm:$0xf0] }
 0x393   :  { %4914 = vmatpush.bf16.msrb.mxu3 %v8217_v33  ;;  %4887 = vmatpush.bf16.msrb.mxu1 %v7673_v46  ;;  %v8991_v38 = vld [vmem:[#allocation8 + $0x26c] sm:$0xf0]  ;;  %v7773_v46 = vor.u32 %v9035_v45, %v7770_v50  ;;  %v9147_v58 = vld [vmem:[#allocation8 + $0x754] sm:$0xf] }
 0x394   :  { %v7832_v55 = vld [vmem:[#allocation8 + $0x450] sm:$0xf]  ;;  %v7577_v49 = vor.u32 %v8991_v38, %v7576_v34  ;;  %v8218_v19 = vld [vmem:[#allocation8 + $0x770] sm:$0xf0] }
 0x395   :  { %4901 = vmatpush.bf16.msrb.mxu2 %v7929_v54  ;;  %4874 = vmatpush.bf16.msrb.mxu0 %v7385_v60  ;;  %v9055_v8 = vld [vmem:[#allocation8 + $0x46c] sm:$0xf0]  ;;  %v8029_v54 = vor.u32 %v9099_v48, %v8026_v53  ;;  %v7485_v60 = vor.u32 %v8963_v14, %v7482_v37  ;;  %v8947_v25 = vld [vmem:[#allocation8 + $0x114] sm:$0xf] }
 0x396   :  { %v8088_v31 = vld [vmem:[#allocation8 + $0x650] sm:$0xf]  ;;  %v7833_v35 = vor.u32 %v9055_v8, %v7832_v55  ;;  %v7418_v3 = vld [vmem:[#allocation8 + $0x130] sm:$0xf0] }
 0x397   :  { %4915 = vmatpush.bf16.msrb.mxu3 %v8185_v13  ;;  %4888 = vmatpush.bf16.msrb.mxu1 %v7641_v15  ;;  %v9119_v39 = vld [vmem:[#allocation8 + $0x66c] sm:$0xf0]  ;;  %v8285_v13 = vor.u32 %v9163_v22, %v8282_v11  ;;  %v7741_v15 = vor.u32 %v9027_v18, %v7738_v5  ;;  %v9011_v34 = vld [vmem:[#allocation8 + $0x314] sm:$0xf] }
 0x398   :  { %v7288_v41 = vld [vmem:[#allocation8 + $0x10] sm:$0xf]  ;;  %v8089_v24 = vor.u32 %v9119_v39, %v8088_v31  ;;  %v7674_v38 = vld [vmem:[#allocation8 + $0x330] sm:$0xf0] }
 0x399   :  { %4902 = vmatpush.bf16.msrb.mxu2 %v7897_v6  ;;  %4875 = vmatpush.bf16.msrb.mxu0 %v7353_v52  ;;  %v8919_v4 = vld [vmem:[#allocation8 + $0x2c] sm:$0xf0]  ;;  %v7997_v6 = vor.u32 %v9091_v59, %v7994_v61  ;;  %v7453_v52 = vor.u32 %v8955_v62, %v7450_v7  ;;  %v9075_v55 = vld [vmem:[#allocation8 + $0x514] sm:$0xf] }
 0x39a   :  { %v7544_v29 = vld [vmem:[#allocation8 + $0x210] sm:$0xf]  ;;  %v7289_v33 = vor.u32 %v8919_v4, %v7288_v41  ;;  %v7930_v8 = vld [vmem:[#allocation8 + $0x530] sm:$0xf0]  ;;  %v7421_v41 = vor.u32 %v8947_v25, %v7418_v3  ;;  %v7776_v25 = vld [vmem:[#allocation8 + $0x3d8] sm:$0xf] }
 0x39b   :  { %4916 = vmatpush.bf16.msrb.mxu3 %v8153_v32  ;;  %4889 = vmatpush.bf16.msrb.mxu1 %v7609_v47  ;;  %v8983_v9 = vld [vmem:[#allocation8 + $0x22c] sm:$0xf0]  ;;  %v8253_v32 = vor.u32 %v9155_v10, %v8250_v57  ;;  %v7709_v47 = vor.u32 %v9019_v2, %v7706_v0  ;;  %v9139_v31 = vld [vmem:[#allocation8 + $0x714] sm:$0xf]  ;;  %v9040_v3 = vld [vmem:[#allocation8 + $0x3f4] sm:$0xf0] }
 0x39c   :  { %v7800_v27 = vld [vmem:[#allocation8 + $0x410] sm:$0xf]  ;;  %v7545_v36 = vor.u32 %v8983_v9, %v7544_v29  ;;  %v8186_v39 = vld [vmem:[#allocation8 + $0x730] sm:$0xf0]  ;;  %v7933_v29 = vor.u32 %v9075_v55, %v7930_v8  ;;  %v8288_v55 = vld [vmem:[#allocation8 + $0x7d8] sm:$0xf] }
 0x39d   :  { %4903 = vmatpush.bf16.msrb.mxu2 %v7865_v44  ;;  %v9047_v12 = vld [vmem:[#allocation8 + $0x42c] sm:$0xf0]  ;;  %4876 = vmatpush.bf16.msrb.mxu0 %v7321_v20  ;;  %v7965_v44 = vor.u32 %v9083_v23, %v7962_v16  ;;  %v7677_v20 = vor.u32 %v9011_v34, %v7674_v38  ;;  %v7386_v4 = vld [vmem:[#allocation8 + $0xf0] sm:$0xf0]  ;;  %v8189_v9 = vor.u32 %v9139_v31, %v8186_v39  ;;  %v9104_v38 = vld [vmem:[#allocation8 + $0x5f4] sm:$0xf0] }
 0x39e   :  { %v8056_v28 = vld [vmem:[#allocation8 + $0x610] sm:$0xf]  ;;  %v7801_v63 = vor.u32 %v9047_v12, %v7800_v27  ;;  %v9067_v27 = vld [vmem:[#allocation8 + $0x4d4] sm:$0xf]  ;;  %v9168_v8 = vld [vmem:[#allocation8 + $0x7f4] sm:$0xf0] }
 0x39f   :  { %4917 = vmatpush.bf16.msrb.mxu3 %v8121_v1  ;;  %v9111_v51 = vld [vmem:[#allocation8 + $0x62c] sm:$0xf0]  ;;  %4890 = vmatpush.bf16.msrb.mxu1 %v7577_v49  ;;  %v8221_v1 = vor.u32 %v9147_v58, %v8218_v19  ;;  %v8939_v49 = vld [vmem:[#allocation8 + $0xd4] sm:$0xf] }
 0x3a0   :  { %v8057_v17 = vor.u32 %v9111_v51, %v8056_v28  ;;  %v7898_v12 = vld [vmem:[#allocation8 + $0x4f0] sm:$0xf0]  ;;  %v7389_v40 = vor.u32 %v8939_v49, %v7386_v4  ;;  %v7488_v49 = vld [vmem:[#allocation8 + $0x198] sm:$0xf] }
 0x3a1   :  { %4904 = vmatpush.bf16.msrb.mxu2 %v7833_v35  ;;  %4877 = vmatpush.bf16.msrb.mxu0 %v7289_v33  ;;  %v9003_v35 = vld [vmem:[#allocation8 + $0x2d4] sm:$0xf]  ;;  %v7901_v48 = vor.u32 %v9067_v27, %v7898_v12  ;;  %v8968_v4 = vld [vmem:[#allocation8 + $0x1b4] sm:$0xf0] }
 0x3a2   :  { %v9131_v28 = vld [vmem:[#allocation8 + $0x6d4] sm:$0xf]  ;;  %v8000_v27 = vld [vmem:[#allocation8 + $0x598] sm:$0xf] }
 0x3a3   :  { %4918 = vmatpush.bf16.msrb.mxu3 %v8089_v24  ;;  %4891 = vmatpush.bf16.msrb.mxu1 %v7545_v36  ;;  %v7642_v24 = vld [vmem:[#allocation8 + $0x2f0] sm:$0xf0]  ;;  %v9096_v12 = vld [vmem:[#allocation8 + $0x5b4] sm:$0xf0] }
 0x3a4   :  { %4878 = vmatmul.bf16.vlgmr.msrb.gmra.mxu0 %v9808_v21  ;;  %v8154_v51 = vld [vmem:[#allocation8 + $0x6f0] sm:$0xf0]  ;;  %v7645_v42 = vor.u32 %v9003_v35, %v7642_v24  ;;  %v7744_v35 = vld [vmem:[#allocation8 + $0x398] sm:$0xf] }
 0x3a5   :  { %4905 = vmatpush.bf16.msrb.mxu2 %v7801_v63  ;;  %4926 = vmatpush.bf16.msra.mxu0 %v7517_v56  ;;  %v8931_v45 = vld [vmem:[#allocation8 + $0x94] sm:$0xf]  ;;  %v8157_v33 = vor.u32 %v9131_v28, %v8154_v51  ;;  %v9032_v24 = vld [vmem:[#allocation8 + $0x3b4] sm:$0xf0] }
 0x3a6   :  { %4892 = vmatmul.bf16.vlgmr.msrb.gmra.mxu1 %v9810_v43  ;;  %v7354_v50 = vld [vmem:[#allocation8 + $0xb0] sm:$0xf0]  ;;  %v8256_v28 = vld [vmem:[#allocation8 + $0x798] sm:$0xf] }
 0x3a7   :  { %4919 = vmatpush.bf16.msrb.mxu3 %v8057_v17  ;;  %4940 = vmatpush.bf16.msra.mxu1 %v7773_v46  ;;  %v8995_v36 = vld [vmem:[#allocation8 + $0x294] sm:$0xf]  ;;  %v7357_v56 = vor.u32 %v8931_v45, %v7354_v50  ;;  %v9160_v51 = vld [vmem:[#allocation8 + $0x7b4] sm:$0xf0] }
 0x3a8   :  { %4906 = vmatmul.bf16.vlgmr.msrb.gmra.mxu2 %v9812_v26  ;;  %v7610_v53 = vld [vmem:[#allocation8 + $0x2b0] sm:$0xf0]  ;;  %v7456_v45 = vld [vmem:[#allocation8 + $0x158] sm:$0xf] }
 0x3a9   :  { %4954 = vmatpush.bf16.msra.mxu2 %v8029_v54  ;;  %4927 = vmatpush.bf16.msra.mxu0 %v7485_v60  ;;  %v9059_v22 = vld [vmem:[#allocation8 + $0x494] sm:$0xf]  ;;  %v7613_v46 = vor.u32 %v8995_v36, %v7610_v53  ;;  %v8960_v50 = vld [vmem:[#allocation8 + $0x174] sm:$0xf0] }
 0x3aa   :  { %4920 = vmatmul.bf16.vlgmr.msrb.gmra.mxu3 %v9814_v30  ;;  %v7866_v11 = vld [vmem:[#allocation8 + $0x4b0] sm:$0xf0]  ;;  %v7712_v36 = vld [vmem:[#allocation8 + $0x358] sm:$0xf] }
 0x3ab   :  { %4968 = vmatpush.bf16.msra.mxu3 %v8285_v13  ;;  %4941 = vmatpush.bf16.msra.mxu1 %v7741_v15  ;;  %v9123_v63 = vld [vmem:[#allocation8 + $0x694] sm:$0xf]  ;;  %v7869_v54 = vor.u32 %v9059_v22, %v7866_v11  ;;  %v9024_v53 = vld [vmem:[#allocation8 + $0x374] sm:$0xf0] }
 0x3ac   :  { %v8122_v17 = vld [vmem:[#allocation8 + $0x6b0] sm:$0xf0]  ;;  %v7968_v22 = vld [vmem:[#allocation8 + $0x558] sm:$0xf] }
 0x3ad   :  { %4955 = vmatpush.bf16.msra.mxu2 %v7997_v6  ;;  %4928 = vmatpush.bf16.msra.mxu0 %v7453_v52  ;;  %v8923_v14 = vld [vmem:[#allocation8 + $0x54] sm:$0xf]  ;;  %v8125_v13 = vor.u32 %v9123_v63, %v8122_v17  ;;  %v7520_v52 = vld [vmem:[#allocation8 + $0x1d8] sm:$0xf] }
 0x3ae   :  { %v7322_v37 = vld [vmem:[#allocation8 + $0x70] sm:$0xf0]  ;;  %v9088_v11 = vld [vmem:[#allocation8 + $0x574] sm:$0xf0] }
 0x3af   :  { %4969 = vmatpush.bf16.msra.mxu3 %v8253_v32  ;;  %4942 = vmatpush.bf16.msra.mxu1 %v7709_v47  ;;  %v8987_v18 = vld [vmem:[#allocation8 + $0x254] sm:$0xf]  ;;  %v7325_v15 = vor.u32 %v8923_v14, %v7322_v37  ;;  %v8976_v47 = vld [vmem:[#allocation8 + $0x1f4] sm:$0xf0]  ;;  %v7457_v14 = vor.u32 %v8960_v50, %v7456_v45  ;;  %v7713_v37 = vor.u32 %v9024_v53, %v7712_v36 }
 0x3b0   :  { %v7578_v5 = vld [vmem:[#allocation8 + $0x270] sm:$0xf0]  ;;  %v8224_v63 = vld [vmem:[#allocation8 + $0x758] sm:$0xf] }
 0x3b1   :  { %4956 = vmatpush.bf16.msra.mxu2 %v7965_v44  ;;  %4929 = vmatpush.bf16.msra.mxu0 %v7421_v41  ;;  %v9051_v59 = vld [vmem:[#allocation8 + $0x454] sm:$0xf]  ;;  %v7581_v62 = vor.u32 %v8987_v18, %v7578_v5  ;;  %v8032_v44 = vld [vmem:[#allocation8 + $0x5d8] sm:$0xf]  ;;  %v7521_v41 = vor.u32 %v8976_v47, %v7520_v52  ;;  %v7969_v18 = vor.u32 %v9088_v11, %v7968_v22 }
 0x3b2   :  { %v7834_v61 = vld [vmem:[#allocation8 + $0x470] sm:$0xf0]  ;;  %v9152_v17 = vld [vmem:[#allocation8 + $0x774] sm:$0xf0] }
 0x3b3   :  { %4970 = vmatpush.bf16.msra.mxu3 %v8221_v1  ;;  %4943 = vmatpush.bf16.msra.mxu1 %v7677_v20  ;;  %v9115_v10 = vld [vmem:[#allocation8 + $0x654] sm:$0xf]  ;;  %v7837_v2 = vor.u32 %v9051_v59, %v7834_v61  ;;  %v7777_v20 = vor.u32 %v9040_v3, %v7776_v25  ;;  %v8225_v5 = vor.u32 %v9152_v17, %v8224_v63  ;;  %v7680_v59 = vld [vmem:[#allocation8 + $0x318] sm:$0xf] }
 0x3b4   :  { %v8090_v57 = vld [vmem:[#allocation8 + $0x670] sm:$0xf0]  ;;  %v9016_v61 = vld [vmem:[#allocation8 + $0x334] sm:$0xf0] }
 0x3b5   :  { %4957 = vmatpush.bf16.msra.mxu2 %v7933_v29  ;;  %4930 = vmatpush.bf16.msra.mxu0 %v7389_v40  ;;  %v8915_v60 = vld [vmem:[#allocation8 + $0x14] sm:$0xf]  ;;  %v8093_v0 = vor.u32 %v9115_v10, %v8090_v57  ;;  %v8033_v29 = vor.u32 %v9104_v38, %v8032_v44  ;;  %v7489_v40 = vor.u32 %v8968_v4, %v7488_v49  ;;  %v7936_v10 = vld [vmem:[#allocation8 + $0x518] sm:$0xf] }
 0x3b6   :  { %v7290_v7 = vld [vmem:[#allocation8 + $0x30] sm:$0xf0]  ;;  %v9080_v57 = vld [vmem:[#allocation8 + $0x534] sm:$0xf0] }
 0x3b7   :  { %4971 = vmatpush.bf16.msra.mxu3 %v8189_v9  ;;  %4944 = vmatpush.bf16.msra.mxu1 %v7645_v42  ;;  %v8979_v6 = vld [vmem:[#allocation8 + $0x214] sm:$0xf]  ;;  %v7293_v1 = vor.u32 %v8915_v60, %v7290_v7  ;;  %v8289_v9 = vor.u32 %v9168_v8, %v8288_v55  ;;  %v7745_v42 = vor.u32 %v9032_v24, %v7744_v35  ;;  %v8192_v60 = vld [vmem:[#allocation8 + $0x718] sm:$0xf] }
 0x3b8   :  { %v7546_v32 = vld [vmem:[#allocation8 + $0x230] sm:$0xf0]  ;;  %v7681_v7 = vor.u32 %v9016_v61, %v7680_v59  ;;  %v9072_v47 = vld [vmem:[#allocation8 + $0x4f4] sm:$0xf0] }
 0x3b9   :  { %4958 = vmatpush.bf16.msra.mxu2 %v7901_v48  ;;  %4931 = vmatpush.bf16.msra.mxu0 %v7357_v56  ;;  %v9043_v23 = vld [vmem:[#allocation8 + $0x414] sm:$0xf]  ;;  %v7549_v34 = vor.u32 %v8979_v6, %v7546_v32  ;;  %v8001_v48 = vor.u32 %v9096_v12, %v8000_v27  ;;  %v7392_v6 = vld [vmem:[#allocation8 + $0xd8] sm:$0xf] }
 0x3ba   :  { %v7802_v16 = vld [vmem:[#allocation8 + $0x430] sm:$0xf0]  ;;  %v8944_v32 = vld [vmem:[#allocation8 + $0xf4] sm:$0xf0] }
 0x3bb   :  { %4972 = vmatpush.bf16.msra.mxu3 %v8157_v33  ;;  %4945 = vmatpush.bf16.msra.mxu1 %v7613_v46  ;;  %v9107_v58 = vld [vmem:[#allocation8 + $0x614] sm:$0xf]  ;;  %v7805_v31 = vor.u32 %v9043_v23, %v7802_v16  ;;  %v8257_v33 = vor.u32 %v9160_v51, %v8256_v28  ;;  %v9840_v56 = vpop.f32.mrf.mxu0  ;;  %v9842_v46 = vpop.f32.mrf.mxu1  ;;  %v7648_v23 = vld [vmem:[#allocation8 + $0x2d8] sm:$0xf] }
 0x3bc   :  { %v8058_v19 = vld [vmem:[#allocation8 + $0x630] sm:$0xf0]  ;;  %v9008_v16 = vld [vmem:[#allocation8 + $0x2f4] sm:$0xf0] }
 0x3bd   :  { %4959 = vmatpush.bf16.msra.mxu2 %v7869_v54  ;;  %4932 = vmatpush.bf16.msra.mxu0 %v7325_v15  ;;  %v8061_v39 = vor.u32 %v9107_v58, %v8058_v19  ;;  %v7424_v54 = vld [vmem:[#allocation8 + $0x118] sm:$0xf]  ;;  %v7649_v38 = vor.u32 %v9008_v16, %v7648_v23  ;;  %v7778_v23 = vld [vmem:[#allocation8 + $0x3f8] sm:$0xf0] }
 0x3be   :  { %v9144_v15 = vld [vmem:[#allocation8 + $0x734] sm:$0xf0]  ;;  %v9100_v16 = vld [vmem:[#allocation8 + $0x5dc] sm:$0xf] }
 0x3bf   :  { %4973 = vmatpush.bf16.msra.mxu3 %v8125_v13  ;;  %4946 = vmatpush.bf16.msra.mxu1 %v7581_v62  ;;  %v8952_v13 = vld [vmem:[#allocation8 + $0x134] sm:$0xf0] }
 0x3c0   :  { %v7425_v62 = vor.u32 %v8952_v13, %v7424_v54  ;;  %v7904_v58 = vld [vmem:[#allocation8 + $0x4d8] sm:$0xf] }
 0x3c1   :  { %4960 = vmatpush.bf16.msra.mxu2 %v7837_v2  ;;  %4933 = vmatpush.bf16.msra.mxu0 %v7293_v1  ;;  %v7937_v2 = vor.u32 %v9080_v57, %v7936_v10  ;;  %v8160_v25 = vld [vmem:[#allocation8 + $0x6d8] sm:$0xf]  ;;  %v9850_v1 = vld [vmem:[#allocation10] sm:$0xff] }
 0x3c2   :  { %v9844_v19 = vpop.f32.mrf.mxu2  ;;  %v9846_v52 = vpop.f32.mrf.mxu3  ;;  %v9136_v3 = vld [vmem:[#allocation8 + $0x6f4] sm:$0xf0]  ;;  %v3350_v24 = vperm.slane %v9850_v1, 0 }
 0x3c3   :  { %4974 = vmatpush.bf16.msra.mxu3 %v8093_v0  ;;  %4947 = vmatpush.bf16.msra.mxu1 %v7549_v34  ;;  %v8193_v0 = vor.u32 %v9144_v15, %v8192_v60  ;;  %v9848_v44 = vpop.f32.mrf.mxu0  ;;  %v7393_v34 = vor.u32 %v8944_v32, %v7392_v6  ;;  %v9852_v55 = vpop.f32.mrf.mxu1  ;;  %v7360_v8 = vld [vmem:[#allocation8 + $0x98] sm:$0xf]  ;;  %v8972_v6 = vld [vmem:[#allocation8 + $0x1dc] sm:$0xf] }
 0x3c4   :  { %4934 = vmatmul.bf16.vlgmr.msra.gmra.mxu0 %v9808_v21  ;;  %v9000_v49 = vld [vmem:[#allocation8 + $0x2b4] sm:$0xf0]  ;;  %v4656_v17 = vadd.f32 %v9840_v56, %v3350_v24  ;;  %v7522_v32 = vld [vmem:[#allocation8 + $0x1f8] sm:$0xf0] }
 0x3c5   :  { %4961 = vmatpush.bf16.msra.mxu2 %v7805_v31  ;;  %4982 = vmatpush.bf16.msrb.mxu0 %v7521_v41  ;;  %v8936_v31 = vld [vmem:[#allocation8 + $0xb4] sm:$0xf0]  ;;  %v8161_v41 = vor.u32 %v9136_v3, %v8160_v25  ;;  %v8034_v3 = vld [vmem:[#allocation8 + $0x5f8] sm:$0xf0] }
 0x3c6   :  { %4948 = vmatmul.bf16.vlgmr.msra.gmra.mxu1 %v9810_v43  ;;  %v7872_v4 = vld [vmem:[#allocation8 + $0x498] sm:$0xf]  ;;  %v7361_v27 = vor.u32 %v8936_v31, %v7360_v8 }
 0x3c7   :  { %4975 = vmatpush.bf16.msra.mxu3 %v8061_v39  ;;  %4996 = vmatpush.bf16.msrb.mxu1 %v7777_v20  ;;  %v7905_v39 = vor.u32 %v9072_v47, %v7904_v58  ;;  %v7616_v20 = vld [vmem:[#allocation8 + $0x298] sm:$0xf] }
 0x3c8   :  { %4962 = vmatmul.bf16.vlgmr.msra.gmra.mxu2 %v9812_v26  ;;  %v9128_v35 = vld [vmem:[#allocation8 + $0x6b4] sm:$0xf0]  ;;  %v7617_v12 = vor.u32 %v9000_v49, %v7616_v20 }
 0x3c9   :  { %5010 = vmatpush.bf16.msrb.mxu2 %v8033_v29  ;;  %4983 = vmatpush.bf16.msrb.mxu0 %v7489_v40  ;;  %v9064_v29 = vld [vmem:[#allocation8 + $0x4b4] sm:$0xf0] }
 0x3ca   :  { %4976 = vmatmul.bf16.vlgmr.msra.gmra.mxu3 %v9814_v30  ;;  %v7328_v28 = vld [vmem:[#allocation8 + $0x58] sm:$0xf]  ;;  %v9856_v36 = vpop.f32.mrf.mxu2  ;;  %v9858_v53 = vpop.f32.mrf.mxu3 }
 0x3cb   :  { %5024 = vmatpush.bf16.msrb.mxu3 %v8289_v9  ;;  %4997 = vmatpush.bf16.msrb.mxu1 %v7745_v42  ;;  %v8128_v9 = vld [vmem:[#allocation8 + $0x698] sm:$0xf]  ;;  %v7873_v42 = vor.u32 %v9064_v29, %v7872_v4  ;;  %v4725_v56 = vpop.f32.mrf.mxu1  ;;  %v8964_v4 = vld [vmem:[#allocation8 + $0x19c] sm:$0xf] }
 0x3cc   :  { %v8928_v51 = vld [vmem:[#allocation8 + $0x74] sm:$0xf0]  ;;  %v8129_v45 = vor.u32 %v9128_v35, %v8128_v9  ;;  %v7490_v29 = vld [vmem:[#allocation8 + $0x1b8] sm:$0xf0]  ;;  %v4658_v35 = vadd.f32 %v9848_v44, %v3350_v24 }
 0x3cd   :  { %5011 = vmatpush.bf16.msrb.mxu2 %v8001_v48  ;;  %4984 = vmatpush.bf16.msrb.mxu0 %v7457_v14  ;;  %v7584_v40 = vld [vmem:[#allocation8 + $0x258] sm:$0xf]  ;;  %v4711_v14 = vpop.f32.mrf.mxu0  ;;  %v7329_v54 = vor.u32 %v8928_v51, %v7328_v28  ;;  %v9028_v9 = vld [vmem:[#allocation8 + $0x39c] sm:$0xf]  ;;  %v7493_v44 = vor.u32 %v8964_v4, %v7490_v29 }
 0x3ce   :  { %v8992_v50 = vld [vmem:[#allocation8 + $0x274] sm:$0xf0]  ;;  %v7650_v4 = vld [vmem:[#allocation8 + $0x2f8] sm:$0xf0] }
 0x3cf   :  { %5025 = vmatpush.bf16.msrb.mxu3 %v8257_v33  ;;  %4998 = vmatpush.bf16.msrb.mxu1 %v7713_v37  ;;  %v7840_v48 = vld [vmem:[#allocation8 + $0x458] sm:$0xf]  ;;  %v3351_v33 = vperm.slane %v9850_v1, 1  ;;  %v7585_v13 = vor.u32 %v8992_v50, %v7584_v40  ;;  %v9092_v40 = vld [vmem:[#allocation8 + $0x59c] sm:$0xf] }
 0x3d0   :  { %v9056_v22 = vld [vmem:[#allocation8 + $0x474] sm:$0xf0]  ;;  %v8258_v50 = vld [vmem:[#allocation8 + $0x7b8] sm:$0xf0] }
 0x3d1   :  { %5012 = vmatpush.bf16.msrb.mxu2 %v7969_v18  ;;  %4985 = vmatpush.bf16.msrb.mxu0 %v7425_v62  ;;  %v8096_v11 = vld [vmem:[#allocation8 + $0x658] sm:$0xf]  ;;  %v7841_v61 = vor.u32 %v9056_v22, %v7840_v48  ;;  %v4712_v57 = vadd.f32 %v4711_v14, %v3351_v33  ;;  %v7458_v14 = vld [vmem:[#allocation8 + $0x178] sm:$0xf0] }
 0x3d2   :  { %v9120_v63 = vld [vmem:[#allocation8 + $0x674] sm:$0xf0]  ;;  %v4753_v49 = vpop.f32.mrf.mxu3  ;;  %v9068_v29 = vld [vmem:[#allocation8 + $0x4dc] sm:$0xf] }
 0x3d3   :  { %5026 = vmatpush.bf16.msrb.mxu3 %v8225_v5  ;;  %4999 = vmatpush.bf16.msrb.mxu1 %v7681_v7  ;;  %v7296_v37 = vld [vmem:[#allocation8 + $0x18] sm:$0xf]  ;;  %v8097_v10 = vor.u32 %v9120_v63, %v8096_v11  ;;  %v4726_v31 = vadd.f32 %v4725_v56, %v4712_v57  ;;  %v8948_v56 = vld [vmem:[#allocation8 + $0x11c] sm:$0xf] }
 0x3d4   :  { %v8920_v18 = vld [vmem:[#allocation8 + $0x34] sm:$0xf0] }
 0x3d5   :  { %5013 = vmatpush.bf16.msrb.mxu2 %v7937_v2  ;;  %4986 = vmatpush.bf16.msrb.mxu0 %v7393_v34  ;;  %v7552_v5 = vld [vmem:[#allocation8 + $0x218] sm:$0xf]  ;;  %v4670_v2 = vadd.f32 %v9842_v46, %v4656_v17  ;;  %v7297_v58 = vor.u32 %v8920_v18, %v7296_v37  ;;  %v9164_v34 = vld [vmem:[#allocation8 + $0x7dc] sm:$0xf]  ;;  %v4739_v46 = vpop.f32.mrf.mxu2  ;;  %v4713_v51 = vpop.f32.mrf.mxu0  ;;  %v4672_v37 = vadd.f32 %v9852_v55, %v4658_v35 }
 0x3d6   :  { %v8984_v59 = vld [vmem:[#allocation8 + $0x234] sm:$0xf0]  ;;  %v4740_v28 = vadd.f32 %v4739_v46, %v4726_v31  ;;  %v4714_v11 = vadd.f32 %v4713_v51, %v3351_v33  ;;  %v8956_v17 = vld [vmem:[#allocation8 + $0x15c] sm:$0xf]  ;;  %v4727_v33 = vpop.f32.mrf.mxu1 }
 0x3d7   :  { %5027 = vmatpush.bf16.msrb.mxu3 %v8193_v0  ;;  %5000 = vmatpush.bf16.msrb.mxu1 %v7649_v38  ;;  %v7808_v60 = vld [vmem:[#allocation8 + $0x418] sm:$0xf]  ;;  %v9036_v0 = vld [vmem:[#allocation8 + $0x3dc] sm:$0xf]  ;;  %v7553_v47 = vor.u32 %v8984_v59, %v7552_v5  ;;  %v4684_v8 = vadd.f32 %v9844_v19, %v4670_v2  ;;  %v4686_v57 = vadd.f32 %v9856_v36, %v4672_v37 }
 0x3d8   :  { %v9048_v15 = vld [vmem:[#allocation8 + $0x434] sm:$0xf0]  ;;  %v8290_v38 = vld [vmem:[#allocation8 + $0x7f8] sm:$0xf0]  ;;  %v7781_v20 = vor.u32 %v9036_v0, %v7778_v23  ;;  %v4754_v22 = vadd.f32 %v4753_v49, %v4740_v28  ;;  %v4728_v55 = vadd.f32 %v4727_v33, %v4714_v11 }
 0x3d9   :  { %5014 = vmatpush.bf16.msrb.mxu2 %v7905_v39  ;;  %4987 = vmatpush.bf16.msrb.mxu0 %v7361_v27  ;;  %v8064_v62 = vld [vmem:[#allocation8 + $0x618] sm:$0xf]  ;;  %v7809_v25 = vor.u32 %v9048_v15, %v7808_v60  ;;  %v8037_v27 = vor.u32 %v9100_v16, %v8034_v3  ;;  %v7746_v19 = vld [vmem:[#allocation8 + $0x3b8] sm:$0xf0]  ;;  %v4698_v48 = vadd.f32 %v9846_v52, %v4684_v8 }
 0x3da   :  { %v9112_v7 = vld [vmem:[#allocation8 + $0x634] sm:$0xf0]  ;;  %v7749_v24 = vor.u32 %v9028_v9, %v7746_v19  ;;  %v7714_v18 = vld [vmem:[#allocation8 + $0x378] sm:$0xf0]  ;;  %v7461_v60 = vor.u32 %v8956_v17, %v7458_v14  ;;  %v4755_v16 = vpop.f32.mrf.mxu3  ;;  %v4700_v3 = vadd.f32 %v9858_v53, %v4686_v57 }
 0x3db   :  { %5028 = vmatpush.bf16.msrb.mxu3 %v8161_v41  ;;  %5001 = vmatpush.bf16.msrb.mxu1 %v7617_v12  ;;  %v8065_v39 = vor.u32 %v9112_v7, %v8064_v62  ;;  %v7525_v41 = vor.u32 %v8972_v6, %v7522_v32  ;;  %v8293_v12 = vor.u32 %v9164_v34, %v8290_v38  ;;  %v9084_v5 = vld [vmem:[#allocation8 + $0x55c] sm:$0xf] }
 0x3dc   :  { %v7970_v59 = vld [vmem:[#allocation8 + $0x578] sm:$0xf0] }
 0x3dd   :  { %5015 = vmatpush.bf16.msrb.mxu2 %v7873_v42  ;;  %4988 = vmatpush.bf16.msrb.mxu0 %v7329_v54  ;;  %v8002_v42 = vld [vmem:[#allocation8 + $0x5b8] sm:$0xf0]  ;;  %v9874_v54 = vpack.c.bf16 %v4754_v22, %v4698_v48  ;;  %v4741_v62 = vpop.f32.mrf.mxu2  ;;  %v7973_v6 = vor.u32 %v9084_v5, %v7970_v59 }
 0x3de   :  { %v8005_v63 = vor.u32 %v9092_v40, %v8002_v42  ;;  %v7426_v7 = vld [vmem:[#allocation8 + $0x138] sm:$0xf0]  ;;  %v4742_v2 = vadd.f32 %v4741_v62, %v4728_v55 }
 0x3df   :  { %5029 = vmatpush.bf16.msrb.mxu3 %v8129_v45  ;;  %5002 = vmatpush.bf16.msrb.mxu1 %v7585_v13  ;;  %v9156_v45 = vld [vmem:[#allocation8 + $0x79c] sm:$0xf]  ;;  %5102 = vst [vmem:[#allocation13] sm:$0xff] %v9874_v54  ;;  %v7429_v38 = vor.u32 %v8948_v56, %v7426_v7 }
 0x3e0   :  { %v8261_v52 = vor.u32 %v9156_v45, %v8258_v50  ;;  %v9020_v13 = vld [vmem:[#allocation8 + $0x35c] sm:$0xf]  ;;  %v4756_v34 = vadd.f32 %v4755_v16, %v4742_v2 }
 0x3e1   :  { %5016 = vmatpush.bf16.msrb.mxu2 %v7841_v61  ;;  %4989 = vmatpush.bf16.msrb.mxu0 %v7297_v58  ;;  %v9148_v61 = vld [vmem:[#allocation8 + $0x75c] sm:$0xf]  ;;  %v7717_v15 = vor.u32 %v9020_v13, %v7714_v18 }
 0x3e2   :  { %v9012_v36 = vld [vmem:[#allocation8 + $0x31c] sm:$0xf] }
 0x3e3   :  { %5030 = vmatpush.bf16.msrb.mxu3 %v8097_v10  ;;  %5003 = vmatpush.bf16.msrb.mxu1 %v7553_v47  ;;  %v8226_v10 = vld [vmem:[#allocation8 + $0x778] sm:$0xf0] }
 0x3e4   :  { %4990 = vmatmul.bf16.vlgmr.msrb.gmra.mxu0 %v9808_v21  ;;  %v8229_v32 = vor.u32 %v9148_v61, %v8226_v10  ;;  %v7682_v0 = vld [vmem:[#allocation8 + $0x338] sm:$0xf0]  ;;  %v4767_v61 = vpop.f32.mrf.mxu0 }
 0x3e5   :  { %5017 = vmatpush.bf16.msrb.mxu2 %v7809_v25  ;;  %5038 = vmatpush.bf16.msra.mxu0 %v7525_v41  ;;  %v9076_v23 = vld [vmem:[#allocation8 + $0x51c] sm:$0xf]  ;;  %v7685_v8 = vor.u32 %v9012_v36, %v7682_v0  ;;  %v9883_v41 = vpack.c.bf16 %v4756_v34, %v4700_v3  ;;  %v9176_v34 = vld [vmem:[#allocation11 + $0x38] sm:$0xff] }
 0x3e6   :  { %5004 = vmatmul.bf16.vlgmr.msrb.gmra.mxu1 %v9810_v43  ;;  %v7938_v58 = vld [vmem:[#allocation8 + $0x538] sm:$0xf0] }
 0x3e7   :  { %5031 = vmatpush.bf16.msrb.mxu3 %v8065_v39  ;;  %5052 = vmatpush.bf16.msra.mxu1 %v7781_v20  ;;  %v9140_v47 = vld [vmem:[#allocation8 + $0x71c] sm:$0xf]  ;;  %v7941_v20 = vor.u32 %v9076_v23, %v7938_v58  ;;  %5106 = vst [vmem:[#allocation13 + $0x20] sm:$0xff] %v9883_v41 }
 0x3e8   :  { %5018 = vmatmul.bf16.vlgmr.msrb.gmra.mxu2 %v9812_v26  ;;  %v8194_v25 = vld [vmem:[#allocation8 + $0x738] sm:$0xf0] }
 0x3e9   :  { %5066 = vmatpush.bf16.msra.mxu2 %v8037_v27  ;;  %5039 = vmatpush.bf16.msra.mxu0 %v7493_v44  ;;  %v8940_v31 = vld [vmem:[#allocation8 + $0xdc] sm:$0xf]  ;;  %v8197_v46 = vor.u32 %v9140_v47, %v8194_v25 }
 0x3ea   :  { %5032 = vmatmul.bf16.vlgmr.msrb.gmra.mxu3 %v9814_v30  ;;  %v7394_v39 = vld [vmem:[#allocation8 + $0xf8] sm:$0xf0] }
 0x3eb   :  { %5080 = vmatpush.bf16.msra.mxu3 %v8293_v12  ;;  %5053 = vmatpush.bf16.msra.mxu1 %v7749_v24  ;;  %v9004_v49 = vld [vmem:[#allocation8 + $0x2dc] sm:$0xf]  ;;  %v7397_v53 = vor.u32 %v8940_v31, %v7394_v39  ;;  %v4795_v25 = vpop.f32.mrf.mxu2  ;;  %v9192_v31 = vld [vmem:[#allocation11 + $0xb8] sm:$0xff] }
 0x3ec   :  { %v7906_v9 = vld [vmem:[#allocation8 + $0x4f8] sm:$0xf0]  ;;  %v7653_v12 = vor.u32 %v9004_v49, %v7650_v4  ;;  %v9200_v39 = vld [vmem:[#allocation11 + $0xf8] sm:$0xff]  ;;  %v3352_v4 = vperm.slane %v9850_v1, 2 }
 0x3ed   :  { %5067 = vmatpush.bf16.msra.mxu2 %v8005_v63  ;;  %5040 = vmatpush.bf16.msra.mxu0 %v7461_v60  ;;  %v9132_v35 = vld [vmem:[#allocation8 + $0x6dc] sm:$0xf]  ;;  %v7909_v19 = vor.u32 %v9068_v29, %v7906_v9  ;;  %v9886_v3 = vpop.f32.mrf.mxu3 }
 0x3ee   :  { %v8162_v27 = vld [vmem:[#allocation8 + $0x6f8] sm:$0xf0] }
 0x3ef   :  { %5081 = vmatpush.bf16.msra.mxu3 %v8261_v52  ;;  %5054 = vmatpush.bf16.msra.mxu1 %v7717_v15  ;;  %v8932_v28 = vld [vmem:[#allocation8 + $0x9c] sm:$0xf]  ;;  %v8165_v40 = vor.u32 %v9132_v35, %v8162_v27  ;;  %v9174_v35 = vld [vmem:[#allocation11 + $0x28] sm:$0xff] }
 0x3f0   :  { %v7362_v51 = vld [vmem:[#allocation8 + $0xb8] sm:$0xf0]  ;;  %v9182_v27 = vld [vmem:[#allocation11 + $0x68] sm:$0xff] }
 0x3f1   :  { %5068 = vmatpush.bf16.msra.mxu2 %v7973_v6  ;;  %5041 = vmatpush.bf16.msra.mxu0 %v7429_v38  ;;  %v8996_v42 = vld [vmem:[#allocation8 + $0x29c] sm:$0xf]  ;;  %v7365_v44 = vor.u32 %v8932_v28, %v7362_v51  ;;  %v9184_v38 = vld [vmem:[#allocation11 + $0x78] sm:$0xff]  ;;  %v9198_v28 = vld [vmem:[#allocation11 + $0xe8] sm:$0xff] }
 0x3f2   :  { %v7618_v45 = vld [vmem:[#allocation8 + $0x2b8] sm:$0xf0]  ;;  %v9173_v51 = vld [vmem:[#allocation11 + $0x20] sm:$0xff] }
 0x3f3   :  { %5082 = vmatpush.bf16.msra.mxu3 %v8229_v32  ;;  %5055 = vmatpush.bf16.msra.mxu1 %v7685_v8  ;;  %v9060_v50 = vld [vmem:[#allocation8 + $0x49c] sm:$0xf]  ;;  %v7621_v24 = vor.u32 %v8996_v42, %v7618_v45  ;;  %v4781_v32 = vpop.f32.mrf.mxu1  ;;  %v4769_v8 = vpop.f32.mrf.mxu0 }
 0x3f4   :  { %v7874_v48 = vld [vmem:[#allocation8 + $0x4b8] sm:$0xf0] }
 0x3f5   :  { %5069 = vmatpush.bf16.msra.mxu2 %v7941_v20  ;;  %v9124_v22 = vld [vmem:[#allocation8 + $0x69c] sm:$0xf]  ;;  %5042 = vmatpush.bf16.msra.mxu0 %v7397_v53  ;;  %v7877_v14 = vor.u32 %v9060_v50, %v7874_v48  ;;  %v3353_v53 = vperm.slane %v9850_v1, 3  ;;  %v9189_v50 = vld [vmem:[#allocation11 + $0xa0] sm:$0xff] }
 0x3f6   :  { %v8130_v11 = vld [vmem:[#allocation8 + $0x6b8] sm:$0xf0]  ;;  %v9197_v48 = vld [vmem:[#allocation11 + $0xe0] sm:$0xff] }
 0x3f7   :  { %5083 = vmatpush.bf16.msra.mxu3 %v8197_v46  ;;  %5056 = vmatpush.bf16.msra.mxu1 %v7653_v12  ;;  %v8924_v63 = vld [vmem:[#allocation8 + $0x5c] sm:$0xf]  ;;  %v8133_v37 = vor.u32 %v9124_v22, %v8130_v11  ;;  %v9894_v12 = vpop.f32.mrf.mxu3  ;;  %v9172_v22 = vld [vmem:[#allocation11 + $0x18] sm:$0xff] }
 0x3f8   :  { %v7330_v17 = vld [vmem:[#allocation8 + $0x78] sm:$0xf0]  ;;  %v9180_v11 = vld [vmem:[#allocation11 + $0x58] sm:$0xff] }
 0x3f9   :  { %5070 = vmatpush.bf16.msra.mxu2 %v7909_v19  ;;  %v8988_v52 = vld [vmem:[#allocation8 + $0x25c] sm:$0xf]  ;;  %5043 = vmatpush.bf16.msra.mxu0 %v7365_v44  ;;  %v7333_v10 = vor.u32 %v8924_v63, %v7330_v17  ;;  %v9181_v19 = vld [vmem:[#allocation11 + $0x60] sm:$0xff] }
 0x3fa   :  { %v7586_v13 = vld [vmem:[#allocation8 + $0x278] sm:$0xf0] }
 0x3fb   :  { %5084 = vmatpush.bf16.msra.mxu3 %v8165_v40  ;;  %v9052_v18 = vld [vmem:[#allocation8 + $0x45c] sm:$0xf]  ;;  %5057 = vmatpush.bf16.msra.mxu1 %v7621_v24  ;;  %v7589_v57 = vor.u32 %v8988_v52, %v7586_v13  ;;  %v4783_v49 = vpop.f32.mrf.mxu1  ;;  %v9188_v13 = vld [vmem:[#allocation11 + $0x98] sm:$0xff] }
 0x3fc   :  { %v7842_v5 = vld [vmem:[#allocation8 + $0x478] sm:$0xf0] }
 0x3fd   :  { %v9116_v33 = vld [vmem:[#allocation8 + $0x65c] sm:$0xf]  ;;  %5071 = vmatpush.bf16.msra.mxu2 %v7877_v14  ;;  %v7845_v15 = vor.u32 %v9052_v18, %v7842_v5  ;;  %5044 = vmatpush.bf16.msra.mxu0 %v7333_v10  ;;  %v4770_v14 = vadd.f32 %v4769_v8, %v3352_v4  ;;  %v9196_v18 = vld [vmem:[#allocation11 + $0xd8] sm:$0xff] }
 0x3fe   :  { %v8098_v59 = vld [vmem:[#allocation8 + $0x678] sm:$0xf0]  ;;  %v9208_v8 = vld [vmem:[#allocation11 + $0x138] sm:$0xff] }
 0x3ff   :  { %v8916_v55 = vld [vmem:[#allocation8 + $0x1c] sm:$0xf]  ;;  %5085 = vmatpush.bf16.msra.mxu3 %v8133_v37  ;;  %v8101_v62 = vor.u32 %v9116_v33, %v8098_v59  ;;  %5058 = vmatpush.bf16.msra.mxu1 %v7589_v57  ;;  %v4784_v57 = vadd.f32 %v4783_v49, %v4770_v14 }
 0x400   :  { %v7298_v60 = vld [vmem:[#allocation8 + $0x38] sm:$0xf0] }
 0x401   :  { %v8980_v56 = vld [vmem:[#allocation8 + $0x21c] sm:$0xf]  ;;  %v7301_v23 = vor.u32 %v8916_v55, %v7298_v60  ;;  %5072 = vmatpush.bf16.msra.mxu2 %v7845_v15 }
 0x402   :  { %v7554_v7 = vld [vmem:[#allocation8 + $0x238] sm:$0xf0] }
 0x403   :  { %v9044_v6 = vld [vmem:[#allocation8 + $0x41c] sm:$0xf]  ;;  %v7557_v16 = vor.u32 %v8980_v56, %v7554_v7  ;;  %5086 = vmatpush.bf16.msra.mxu3 %v8101_v62  ;;  %5045 = vmatpush.bf16.msra.mxu0 %v7301_v23  ;;  %v4837_v42 = vpop.f32.mrf.mxu1  ;;  %v9170_v56 = vld [vmem:[#allocation11 + $0x8] sm:$0xff] }
 0x404   :  { %v7810_v2 = vld [vmem:[#allocation8 + $0x438] sm:$0xf0]  ;;  %v9178_v7 = vld [vmem:[#allocation11 + $0x48] sm:$0xff] }
 0x405   :  { %v9108_v36 = vld [vmem:[#allocation8 + $0x61c] sm:$0xf]  ;;  %v7813_v58 = vor.u32 %v9044_v6, %v7810_v2  ;;  %5059 = vmatpush.bf16.msra.mxu1 %v7557_v16  ;;  %v9194_v23 = vld [vmem:[#allocation11 + $0xc8] sm:$0xff]  ;;  %v5254_v16 = vunpack.c.l.b16 %v9883_v41 }
 0x406   :  { %v8066_v0 = vld [vmem:[#allocation8 + $0x638] sm:$0xf0]  ;;  %5046 = vmatmul.bf16.vlgmr.msra.gmra.mxu0 %v9808_v21  ;;  %v4797_v21 = vpop.f32.mrf.mxu2 }
 0x407   :  { %v8069_v47 = vor.u32 %v9108_v36, %v8066_v0  ;;  %5073 = vmatpush.bf16.msra.mxu2 %v7813_v58  ;;  %5662 = vmatpush.bf16.msrb.mxu0 %v9176_v34  ;;  %v9175_v20 = vld [vmem:[#allocation11 + $0x30] sm:$0xff]  ;;  %v4798_v6 = vadd.f32 %v4797_v21, %v4784_v57  ;;  %v9186_v0 = vld [vmem:[#allocation11 + $0x88] sm:$0xff]  ;;  %v5255_v58 = vunpack.c.h.b16 %v9883_v41  ;;  %v9185_v41 = vld [vmem:[#allocation11 + $0x80] sm:$0xff] }
 0x408   :  { %v9183_v46 = vld [vmem:[#allocation11 + $0x70] sm:$0xff]  ;;  %5060 = vmatmul.bf16.vlgmr.msra.gmra.mxu1 %v9810_v43  ;;  %v4768_v43 = vadd.f32 %v4767_v61, %v3352_v4 }
 0x409   :  { %5087 = vmatpush.bf16.msra.mxu3 %v8069_v47  ;;  %5676 = vmatpush.bf16.msrb.mxu1 %v9184_v38  ;;  %v9191_v29 = vld [vmem:[#allocation11 + $0xb0] sm:$0xff]  ;;  %v4812_v34 = vadd.f32 %v9894_v12, %v4798_v6 }
 0x40a   :  { %5074 = vmatmul.bf16.vlgmr.msra.gmra.mxu2 %v9812_v26  ;;  %v9199_v9 = vld [vmem:[#allocation11 + $0xf0] sm:$0xff]  ;;  %v4823_v26 = vpop.f32.mrf.mxu0  ;;  %v4782_v45 = vadd.f32 %v4781_v32, %v4768_v43 }
 0x40b   :  { %5690 = vmatpush.bf16.msrb.mxu2 %v9192_v31  ;;  %5663 = vmatpush.bf16.msrb.mxu0 %v9175_v20  ;;  %v4824_v40 = vadd.f32 %v4823_v26, %v3353_v53  ;;  %v9171_v5 = vld [vmem:[#allocation11 + $0x10] sm:$0xff]  ;;  %v4839_v62 = vpop.f32.mrf.mxu1  ;;  %v9216_v31 = vld [vmem:[#allocation11 + $0x178] sm:$0xff]  ;;  %v5247_v20 = vunpack.c.h.b16 %v9874_v54  ;;  %v9206_v26 = vld [vmem:[#allocation11 + $0x128] sm:$0xff] }
 0x40c   :  { %5088 = vmatmul.bf16.vlgmr.msra.gmra.mxu3 %v9814_v30  ;;  %v9190_v30 = vld [vmem:[#allocation11 + $0xa8] sm:$0xff]  ;;  %v4796_v44 = vadd.f32 %v4795_v25, %v4782_v45  ;;  %v9179_v33 = vld [vmem:[#allocation11 + $0x50] sm:$0xff]  ;;  %v9169_v25 = vld [vmem:[#allocation11] sm:$0xff] }
 0x40d   :  { %5704 = vmatpush.bf16.msrb.mxu3 %v9200_v39  ;;  %5677 = vmatpush.bf16.msrb.mxu1 %v9183_v46  ;;  %v4838_v24 = vadd.f32 %v4837_v42, %v4824_v40  ;;  %v4865_v17 = vpop.f32.mrf.mxu3  ;;  %v9187_v60 = vld [vmem:[#allocation11 + $0x90] sm:$0xff]  ;;  %v5246_v39 = vunpack.c.l.b16 %v9874_v54  ;;  %v5263_v4 = vpack.c.b16 %v5255_v58, %v5247_v20  ;;  %v9212_v40 = vld [vmem:[#allocation11 + $0x158] sm:$0xff] }
 0x40e   :  { %v4851_v63 = vpop.f32.mrf.mxu2  ;;  %v4810_v59 = vadd.f32 %v9886_v3, %v4796_v44  ;;  %v9195_v15 = vld [vmem:[#allocation11 + $0xd0] sm:$0xff]  ;;  %v9177_v3 = vld [vmem:[#allocation11 + $0x40] sm:$0xff] }
 0x40f   :  { %5691 = vmatpush.bf16.msrb.mxu2 %v9191_v29  ;;  %5664 = vmatpush.bf16.msrb.mxu0 %v9174_v35  ;;  %v4852_v37 = vadd.f32 %v4851_v63, %v4838_v24  ;;  %v5262_v49 = vpack.c.b16 %v5254_v16, %v5246_v39  ;;  %v9193_v29 = vld [vmem:[#allocation11 + $0xc0] sm:$0xff]  ;;  %v9207_v21 = vld [vmem:[#allocation11 + $0x130] sm:$0xff] }
 0x410   :  { %v9215_v12 = vld [vmem:[#allocation11 + $0x170] sm:$0xff]  ;;  %v9201_v63 = vld [vmem:[#allocation11 + $0x100] sm:$0xff] }
 0x411   :  { %5705 = vmatpush.bf16.msrb.mxu3 %v9199_v9  ;;  %5678 = vmatpush.bf16.msrb.mxu1 %v9182_v27  ;;  %v4866_v61 = vadd.f32 %v4865_v17, %v4852_v37  ;;  %v9203_v45 = vld [vmem:[#allocation11 + $0x110] sm:$0xff]  ;;  %v9209_v17 = vld [vmem:[#allocation11 + $0x140] sm:$0xff] }
 0x412   :  { %v4825_v52 = vpop.f32.mrf.mxu0  ;;  %v9223_v20 = vld [vmem:[#allocation11 + $0x1b0] sm:$0xff] }
 0x413   :  { %5692 = vmatpush.bf16.msrb.mxu2 %v9190_v30  ;;  %5665 = vmatpush.bf16.msrb.mxu0 %v9173_v51  ;;  %v4826_v10 = vadd.f32 %v4825_v52, %v3353_v53  ;;  %v5095_v55 = vpack.c.bf16 %v4866_v61, %v4810_v59  ;;  %v9214_v30 = vld [vmem:[#allocation11 + $0x168] sm:$0xff]  ;;  %v9213_v51 = vld [vmem:[#allocation11 + $0x160] sm:$0xff]  ;;  %v3354_v52 = vperm.slane %v9850_v1, 4 }
 0x415   :  { %5706 = vmatpush.bf16.msrb.mxu3 %v9198_v28  ;;  %5679 = vmatpush.bf16.msrb.mxu1 %v9181_v19  ;;  %5103 = vst [vmem:[#allocation13 + $0x8] sm:$0xff] %v5095_v55  ;;  %v4840_v32 = vadd.f32 %v4839_v62, %v4826_v10  ;;  %v4867_v47 = vpop.f32.mrf.mxu3  ;;  %v5248_v9 = vunpack.c.l.b16 %v5095_v55  ;;  %v5249_v35 = vunpack.c.h.b16 %v5095_v55  ;;  %v9205_v28 = vld [vmem:[#allocation11 + $0x120] sm:$0xff]  ;;  %v9204_v19 = vld [vmem:[#allocation11 + $0x118] sm:$0xff] }
 0x416   :  { %v4853_v2 = vpop.f32.mrf.mxu2 }
 0x417   :  { %5693 = vmatpush.bf16.msrb.mxu2 %v9189_v50  ;;  %5666 = vmatpush.bf16.msrb.mxu0 %v9172_v22  ;;  %v4854_v36 = vadd.f32 %v4853_v2, %v4840_v32  ;;  %v9211_v50 = vld [vmem:[#allocation11 + $0x150] sm:$0xff]  ;;  %v9202_v22 = vld [vmem:[#allocation11 + $0x108] sm:$0xff] }
 0x419   :  { %5707 = vmatpush.bf16.msrb.mxu3 %v9197_v48  ;;  %5680 = vmatpush.bf16.msrb.mxu1 %v9180_v11  ;;  %v4868_v38 = vadd.f32 %v4867_v47, %v4854_v36  ;;  %v9210_v11 = vld [vmem:[#allocation11 + $0x148] sm:$0xff] }
 0x41b   :  { %5694 = vmatpush.bf16.msrb.mxu2 %v9188_v13  ;;  %5667 = vmatpush.bf16.msrb.mxu0 %v9171_v5  ;;  %v5099_v46 = vpack.c.bf16 %v4868_v38, %v4812_v34  ;;  %v3355_v13 = vperm.slane %v9850_v1, 5  ;;  %v9224_v34 = vld [vmem:[#allocation11 + $0x1b8] sm:$0xff] }
 0x41c   :  { %v9232_v38 = vld [vmem:[#allocation11 + $0x1f8] sm:$0xff] }
 0x41d   :  { %5708 = vmatpush.bf16.msrb.mxu3 %v9196_v18  ;;  %5681 = vmatpush.bf16.msrb.mxu1 %v9179_v33  ;;  %5107 = vst [vmem:[#allocation13 + $0x28] sm:$0xff] %v5099_v46  ;;  %v5256_v27 = vunpack.c.l.b16 %v5099_v46  ;;  %v5257_v53 = vunpack.c.h.b16 %v5099_v46  ;;  %v9231_v46 = vld [vmem:[#allocation11 + $0x1f0] sm:$0xff] }
 0x41f   :  { %5695 = vmatpush.bf16.msrb.mxu2 %v9187_v60  ;;  %5668 = vmatpush.bf16.msrb.mxu0 %v9170_v56  ;;  %v5264_v43 = vpack.c.b16 %v5256_v27, %v5248_v9  ;;  %v5265_v54 = vpack.c.b16 %v5257_v53, %v5249_v35  ;;  %v9222_v53 = vld [vmem:[#allocation11 + $0x1a8] sm:$0xff] }
 0x421   :  { %5709 = vmatpush.bf16.msrb.mxu3 %v9195_v15  ;;  %5682 = vmatpush.bf16.msrb.mxu1 %v9178_v7  ;;  %v4879_v42 = vpop.f32.mrf.mxu0 }
 0x422   :  { %v4880_v33 = vadd.f32 %v4879_v42, %v3354_v52  ;;  %v9226_v42 = vld [vmem:[#allocation11 + $0x1c8] sm:$0xff] }
 0x423   :  { %5696 = vmatpush.bf16.msrb.mxu2 %v9186_v0  ;;  %5669 = vmatpush.bf16.msrb.mxu0 %v9169_v25  ;;  %v4893_v48 = vpop.f32.mrf.mxu1 }
 0x424   :  { %v4894_v57 = vadd.f32 %v4893_v48, %v4880_v33  ;;  %v9217_v48 = vld [vmem:[#allocation11 + $0x180] sm:$0xff] }
 0x425   :  { %5710 = vmatpush.bf16.msrb.mxu3 %v9194_v23  ;;  %5683 = vmatpush.bf16.msrb.mxu1 %v9177_v3 }
 0x426   :  { %5670 = vmatmul.bf16.vlgmr.msrb.gmra.mxu0 %v5262_v49 }
 0x427   :  { %5718 = vmatpush.bf16.msra.mxu0 %v9208_v8  ;;  %5697 = vmatpush.bf16.msrb.mxu2 %v9185_v41 }
 0x428   :  { %5684 = vmatmul.bf16.vlgmr.msrb.gmra.mxu1 %v5263_v4 }
 0x429   :  { %5732 = vmatpush.bf16.msra.mxu1 %v9216_v31  ;;  %5711 = vmatpush.bf16.msrb.mxu3 %v9193_v29  ;;  %v4881_v14 = vpop.f32.mrf.mxu0 }
 0x42a   :  { %5698 = vmatmul.bf16.vlgmr.msrb.gmra.mxu2 %v5264_v43  ;;  %v4882_v56 = vadd.f32 %v4881_v14, %v3354_v52  ;;  %v9229_v43 = vld [vmem:[#allocation11 + $0x1e0] sm:$0xff] }
 0x42b   :  { %5719 = vmatpush.bf16.msra.mxu0 %v9207_v21  ;;  %v4907_v44 = vpop.f32.mrf.mxu2  ;;  %v4895_v37 = vpop.f32.mrf.mxu1  ;;  %5746 = vmatpush.bf16.msra.mxu2 %v9224_v34  ;;  %v9230_v21 = vld [vmem:[#allocation11 + $0x1e8] sm:$0xff] }
 0x42c   :  { %5712 = vmatmul.bf16.vlgmr.msrb.gmra.mxu3 %v5265_v54  ;;  %v4908_v55 = vadd.f32 %v4907_v44, %v4894_v57  ;;  %v4896_v0 = vadd.f32 %v4895_v37, %v4882_v56  ;;  %v9220_v54 = vld [vmem:[#allocation11 + $0x198] sm:$0xff] }
 0x42d   :  { %5733 = vmatpush.bf16.msra.mxu1 %v9215_v12  ;;  %v4921_v24 = vpop.f32.mrf.mxu3  ;;  %5760 = vmatpush.bf16.msra.mxu3 %v9232_v38  ;;  %v9221_v12 = vld [vmem:[#allocation11 + $0x1a0] sm:$0xff] }
 0x42e   :  { %v4922_v32 = vadd.f32 %v4921_v24, %v4908_v55  ;;  %v3356_v24 = vperm.slane %v9850_v1, 6 }
 0x42f   :  { %5720 = vmatpush.bf16.msra.mxu0 %v9206_v26  ;;  %5747 = vmatpush.bf16.msra.mxu2 %v9223_v20  ;;  %v9228_v26 = vld [vmem:[#allocation11 + $0x1d8] sm:$0xff] }
 0x431   :  { %5734 = vmatpush.bf16.msra.mxu1 %v9214_v30  ;;  %5761 = vmatpush.bf16.msra.mxu3 %v9231_v46  ;;  %v9219_v30 = vld [vmem:[#allocation11 + $0x190] sm:$0xff] }
 0x433   :  { %5721 = vmatpush.bf16.msra.mxu0 %v9205_v28  ;;  %v4909_v18 = vpop.f32.mrf.mxu2  ;;  %5748 = vmatpush.bf16.msra.mxu2 %v9222_v53  ;;  %v9227_v28 = vld [vmem:[#allocation11 + $0x1d0] sm:$0xff] }
 0x434   :  { %v4910_v58 = vadd.f32 %v4909_v18, %v4896_v0 }
 0x435   :  { %5735 = vmatpush.bf16.msra.mxu1 %v9213_v51  ;;  %v4923_v5 = vpop.f32.mrf.mxu3  ;;  %5762 = vmatpush.bf16.msra.mxu3 %v9230_v21 }
 0x436   :  { %v4924_v31 = vadd.f32 %v4923_v5, %v4910_v58 }
 0x437   :  { %5722 = vmatpush.bf16.msra.mxu0 %v9204_v19  ;;  %5749 = vmatpush.bf16.msra.mxu2 %v9221_v12 }
 0x439   :  { %5736 = vmatpush.bf16.msra.mxu1 %v9212_v40  ;;  %5763 = vmatpush.bf16.msra.mxu3 %v9229_v43  ;;  %v9218_v40 = vld [vmem:[#allocation11 + $0x188] sm:$0xff] }
 0x43b   :  { %5723 = vmatpush.bf16.msra.mxu0 %v9203_v45  ;;  %5750 = vmatpush.bf16.msra.mxu2 %v9220_v54 }
 0x43d   :  { %5737 = vmatpush.bf16.msra.mxu1 %v9211_v50  ;;  %5764 = vmatpush.bf16.msra.mxu3 %v9228_v26 }
 0x43f   :  { %5724 = vmatpush.bf16.msra.mxu0 %v9202_v22  ;;  %5751 = vmatpush.bf16.msra.mxu2 %v9219_v30  ;;  %v9225_v22 = vld [vmem:[#allocation11 + $0x1c0] sm:$0xff] }
 0x441   :  { %5738 = vmatpush.bf16.msra.mxu1 %v9210_v11  ;;  %v4935_v59 = vpop.f32.mrf.mxu0  ;;  %5765 = vmatpush.bf16.msra.mxu3 %v9227_v28 }
 0x442   :  { %v4936_v61 = vadd.f32 %v4935_v59, %v3355_v13 }
 0x443   :  { %5725 = vmatpush.bf16.msra.mxu0 %v9201_v63  ;;  %v4949_v10 = vpop.f32.mrf.mxu1  ;;  %5752 = vmatpush.bf16.msra.mxu2 %v9218_v40  ;;  %v3357_v63 = vperm.slane %v9850_v1, 7 }
 0x444   :  { %v4950_v60 = vadd.f32 %v4949_v10, %v4936_v61 }
 0x445   :  { %5739 = vmatpush.bf16.msra.mxu1 %v9209_v17  ;;  %5766 = vmatpush.bf16.msra.mxu3 %v9226_v42 }
 0x447   :  { %5753 = vmatpush.bf16.msra.mxu2 %v9217_v48 }
 0x449   :  { %v4937_v6 = vpop.f32.mrf.mxu0  ;;  %5767 = vmatpush.bf16.msra.mxu3 %v9225_v22 }
 0x44a   :  { %v4938_v36 = vadd.f32 %v4937_v6, %v3355_v13 }
 0x44b   :  { %v4963_v15 = vpop.f32.mrf.mxu2  ;;  %v4951_v16 = vpop.f32.mrf.mxu1 }
 0x44c   :  { %v4964_v7 = vadd.f32 %v4963_v15, %v4950_v60  ;;  %v4952_v47 = vadd.f32 %v4951_v16, %v4938_v36 }
 0x44d   :  { %v4977_v62 = vpop.f32.mrf.mxu3 }
 0x44e   :  { %v4978_v2 = vadd.f32 %v4977_v62, %v4964_v7 }
 0x450   :  { %v5096_v23 = vpack.c.bf16 %v4978_v2, %v4922_v32 }
 0x452   :  { %5104 = vst [vmem:[#allocation13 + $0x10] sm:$0xff] %v5096_v23  ;;  %v5250_v4 = vunpack.c.l.b16 %v5096_v23  ;;  %v5251_v41 = vunpack.c.h.b16 %v5096_v23 }
 0x453   :  { %v4965_v25 = vpop.f32.mrf.mxu2 }
 0x454   :  { %v4966_v3 = vadd.f32 %v4965_v25, %v4952_v47 }
 0x455   :  { %v4979_v8 = vpop.f32.mrf.mxu3 }
 0x456   :  { %v4980_v39 = vadd.f32 %v4979_v8, %v4966_v3 }
 0x458   :  { %v5100_v49 = vpack.c.bf16 %v4980_v39, %v4924_v31 }
 0x45a   :  { %5108 = vst [vmem:[#allocation13 + $0x30] sm:$0xff] %v5100_v49  ;;  %v5258_v29 = vunpack.c.l.b16 %v5100_v49  ;;  %v5259_v9 = vunpack.c.h.b16 %v5100_v49 }
 0x45c   :  { %v5266_v35 = vpack.c.b16 %v5258_v29, %v5250_v4  ;;  %v5267_v27 = vpack.c.b16 %v5259_v9, %v5251_v41 }
 0x45e   :  { %5726 = vmatmul.bf16.vlgmr.msra.gmra.mxu0 %v5266_v35  ;;  %5740 = vmatmul.bf16.vlgmr.msra.gmra.mxu1 %v5267_v27 }
 0x461   :  { %v4991_v51 = vpop.f32.mrf.mxu0 }
 0x462   :  { %v4992_v37 = vadd.f32 %v4991_v51, %v3356_v24 }
 0x463   :  { %v5005_v19 = vpop.f32.mrf.mxu1 }
 0x464   :  { %v5006_v5 = vadd.f32 %v5005_v19, %v4992_v37 }
 0x469   :  { %v4993_v11 = vpop.f32.mrf.mxu0 }
 0x46a   :  { %v4994_v57 = vadd.f32 %v4993_v11, %v3356_v24 }
 0x46b   :  { %v5019_v45 = vpop.f32.mrf.mxu2  ;;  %v5007_v44 = vpop.f32.mrf.mxu1 }
 0x46c   :  { %v5020_v33 = vadd.f32 %v5019_v45, %v5006_v5  ;;  %v5008_v7 = vadd.f32 %v5007_v44, %v4994_v57 }
 0x46d   :  { %v5033_v50 = vpop.f32.mrf.mxu3 }
 0x46e   :  { %v5034_v15 = vadd.f32 %v5033_v50, %v5020_v33 }
 0x473   :  { %v5021_v17 = vpop.f32.mrf.mxu2 }
 0x474   :  { %v5022_v32 = vadd.f32 %v5021_v17, %v5008_v7 }
 0x475   :  { %v5035_v14 = vpop.f32.mrf.mxu3 }
 0x476   :  { %v5036_v16 = vadd.f32 %v5035_v14, %v5022_v32 }
 0x483   :  { %v5047_v52 = vpop.f32.mrf.mxu0 }
 0x484   :  { %v5048_v13 = vadd.f32 %v5047_v52, %v3357_v63 }
 0x485   :  { %v5061_v18 = vpop.f32.mrf.mxu1 }
 0x486   :  { %v5062_v59 = vadd.f32 %v5061_v18, %v5048_v13 }
 0x48b   :  { %v5049_v60 = vpop.f32.mrf.mxu0 }
 0x48c   :  { %v5050_v56 = vadd.f32 %v5049_v60, %v3357_v63 }
 0x48d   :  { %v5075_v61 = vpop.f32.mrf.mxu2  ;;  %v5063_v1 = vpop.f32.mrf.mxu1 }
 0x48e   :  { %v5076_v55 = vadd.f32 %v5075_v61, %v5062_v59  ;;  %v5064_v2 = vadd.f32 %v5063_v1, %v5050_v56 }
 0x48f   :  { %v5089_v10 = vpop.f32.mrf.mxu3 }
 0x490   :  { %v5090_v62 = vadd.f32 %v5089_v10, %v5076_v55 }
 0x492   :  { %v5097_v6 = vpack.c.bf16 %v5090_v62, %v5034_v15 }
 0x494   :  { %5105 = vst [vmem:[#allocation13 + $0x18] sm:$0xff] %v5097_v6  ;;  %v5252_v25 = vunpack.c.l.b16 %v5097_v6  ;;  %v5253_v3 = vunpack.c.h.b16 %v5097_v6 }
 0x495   :  { %v5077_v36 = vpop.f32.mrf.mxu2 }
 0x496   :  { %v5078_v0 = vadd.f32 %v5077_v36, %v5064_v2 }
 0x497   :  { %v5091_v23 = vpop.f32.mrf.mxu3 }
 0x498   :  { %v5092_v58 = vadd.f32 %v5091_v23, %v5078_v0 }
 0x49a   :  { %v5101_v47 = vpack.c.bf16 %v5092_v58, %v5036_v16 }
 0x49c   :  { %5109 = vst [vmem:[#allocation13 + $0x38] sm:$0xff] %v5101_v47  ;;  %v5260_v34 = vunpack.c.l.b16 %v5101_v47  ;;  %v5261_v38 = vunpack.c.h.b16 %v5101_v47 }
 0x49d   :  { %5790 = dma.vmem_to_hbm [thread:$0]  %s5783_s5, 1024, %s5785_s15, [#allocation4], %s9474_s13, %s9474_s13, %s9475_s14  }
 0x49e   :  { %v5268_v8 = vpack.c.b16 %v5260_v34, %v5252_v25  ;;  %v5269_v31 = vpack.c.b16 %v5261_v38, %v5253_v3  ;;  %s5795_s13 = sshll.u32 %s9486_s6, 4  ;;  %s5796_s13 = int_to_ptr.vmem [resolvable:$true] %s5795_s13 }
 0x4a0   :  { %5754 = vmatmul.bf16.vlgmr.msra.gmra.mxu2 %v5268_v8  ;;  %5768 = vmatmul.bf16.vlgmr.msra.gmra.mxu3 %v5269_v31 }
 0x4a3   :  { %v5671_v39 = vpop.f32.mrf.mxu0 }
 0x4a5   :  { %v5685_v20 = vpop.f32.mrf.mxu1 }
 0x4a6   :  { %v5686_v27 = vadd.f32 %v5685_v20, %v5671_v39 }
 0x4ab   :  { %v5673_v46 = vpop.f32.mrf.mxu0 }
 0x4ad   :  { %v5699_v49 = vpop.f32.mrf.mxu2  ;;  %v5687_v41 = vpop.f32.mrf.mxu1 }
 0x4ae   :  { %v5688_v53 = vadd.f32 %v5687_v41, %v5673_v46  ;;  %v5700_v21 = vadd.f32 %v5699_v49, %v5686_v27 }
 0x4af   :  { %v5713_v4 = vpop.f32.mrf.mxu3 }
 0x4b0   :  { %v5714_v54 = vadd.f32 %v5713_v4, %v5700_v21 }
 0x4b5   :  { %v5701_v9 = vpop.f32.mrf.mxu2 }
 0x4b6   :  { %v5702_v43 = vadd.f32 %v5701_v9, %v5688_v53 }
 0x4b7   :  { %v5715_v35 = vpop.f32.mrf.mxu3 }
 0x4b8   :  { %v5716_v51 = vadd.f32 %v5715_v35, %v5702_v43 }
 0x4db   :  { %v5727_v29 = vpop.f32.mrf.mxu0  ;;  %v5741_v12 = vpop.f32.mrf.mxu1 }
 0x4dc   :  { %v5728_v19 = vadd.f32 %v5727_v29, %v5714_v54 }
 0x4de   :  { %v5742_v42 = vadd.f32 %v5741_v12, %v5728_v19 }
 0x4e3   :  { %v5729_v26 = vpop.f32.mrf.mxu0  ;;  %v5743_v45 = vpop.f32.mrf.mxu1 }
 0x4e4   :  { %v5730_v40 = vadd.f32 %v5729_v26, %v5716_v51 }
 0x4e6   :  { %v5744_v50 = vadd.f32 %v5743_v45, %v5730_v40 }
 0x523   :  { %v5755_v30 = vpop.f32.mrf.mxu2  ;;  %v5769_v28 = vpop.f32.mrf.mxu3 }
 0x524   :  { %v5756_v48 = vadd.f32 %v5755_v30, %v5742_v42 }
 0x526   :  { %v5770_v24 = vadd.f32 %v5769_v28, %v5756_v48 }
 0x52b   :  { %v5757_v22 = vpop.f32.mrf.mxu2  ;;  %v5771_v44 = vpop.f32.mrf.mxu3 }
 0x52c   :  { %v5758_v11 = vadd.f32 %v5757_v22, %v5744_v50 }
 0x52e   :  { %v5772_v63 = vadd.f32 %v5771_v44, %v5758_v11 }
 0x530   :  { %v9236_v17 = vpack.c.bf16 %v5772_v63, %v5770_v24 }
 0x532   :  { %9237 = vst [vmem:[#allocation14] sm:$0xff] %v9236_v17  }
 0x533   :  { %5803 = dma.vmem_to_hbm [thread:$0]  %s5796_s13, 128, %s5798_s17, [#allocation15], %s9482_s10, %s9482_s10, %s9483_s11  }
 0x534   :  { %9466 = dma.done.wait [#allocation4], 1024  }
 0x535   :  { %9467 = vsyncadd [#allocation4], 4294966272 }
 0x536   :  { %9468 = dma.done.wait [#allocation15], 128  }
 0x537   :  { %9469 = vsyncadd [#allocation15], 4294967168 }
 0x538   :  { %5812 = vsyncpa [#allocation3], 1 }
 0x539   :  { %5813 = vsyncpa [#allocation6], 1 }
 0x53a   :  { %5814 = vsyncpa [#allocation9], 1 }
 0x53b   :  { %5815 = vsyncpa [#allocation12], 1 }
 0x53c   :  { %5816 = vsyncpa [#allocation4], 1 }
 0x53d   :  { %5817 = vsyncpa [#allocation15], 1 }

</bundles_post_ra>
